<compile_context>
chip_gen: v6e
topology: v6e:2x2x1
jax: 0.10.0
libtpu: 0.0.40
codegen_flags: <defaults>
</compile_context>

<pallas_src>
import functools
import math

import jax
import jax.numpy as jnp
from jax import lax
from jax.experimental import pallas as pl
from jax.experimental.pallas import tpu as pltpu

# ----------------------------- config --------------------------------------
BATCH = 2
SRC_SEQ = 8
TGT_SEQ = 8
HIDDEN = 32
HEADS = 4
HEAD_DIM = HIDDEN // HEADS
FFN = 64
VOCAB = 64
LAYERS = 2
NEG_INF = -10000.0          # UER uses (1 - mask) * -10000
LN_EPS = 1e-6

N_SRC = BATCH * SRC_SEQ
N_TGT = BATCH * TGT_SEQ

SLAB_W = 128                # lane-dense f32 weight-slab width
DATA_W = 128                # lane-dense int32 data-slab width (>= HEADS*N_SRC)


def _rnd8(n):
    return -(-n // 8) * 8


# int32 data-slab row layout (static, shared by host packer and kernel).
D_SRC = 0
D_TGT_IN = D_SRC + _rnd8(N_SRC)
D_TGT_OUT = D_TGT_IN + _rnd8(N_TGT)
D_TGT_SEG = D_TGT_OUT + _rnd8(N_TGT)
D_SEG_WIDE = D_TGT_SEG + _rnd8(N_TGT)
D_ROWS = D_SEG_WIDE + 8


def _is_pow2(n):
    return n > 0 and (n & (n - 1)) == 0


def _idiv(x, n):
    if _is_pow2(n):
        return jnp.right_shift(x, int(math.log2(n)))
    return x // n


def _imod(x, n):
    if _is_pow2(n):
        return jnp.bitwise_and(x, n - 1)
    return x % n


# ------------------- iota-built masks (no HBM mask tensors) ------------------
def _block_diag_mask(nq, seqq, nk, seqk, causal, key_valid):
    """Additive mask over (HEADS*nq, HEADS*nk): same-head & same-batch blocks,
    optionally causal within a block, optionally gated by key validity."""
    rows, cols = HEADS * nq, HEADS * nk
    qi = lax.broadcasted_iota(jnp.int32, (rows, cols), 0)
    ki = lax.broadcasted_iota(jnp.int32, (rows, cols), 1)
    qw, kw = _imod(qi, nq), _imod(ki, nk)
    ok = (_idiv(qi, nq) == _idiv(ki, nk))                       # same head
    ok = ok & (_idiv(qw, seqq) == _idiv(kw, seqk))              # same batch
    if causal:
        ok = ok & (_imod(kw, seqk) <= _imod(qw, seqq))
    if key_valid is not None:
        ok = ok & key_valid                                     # (1, HEADS*nk)
    return jnp.where(ok, 0.0, NEG_INF)


def _head_col_mask(nk):
    """(HEADS*nk, HIDDEN) multiplicative mask: row block h keeps head-h columns."""
    r = lax.broadcasted_iota(jnp.int32, (HEADS * nk, HIDDEN), 0)
    c = lax.broadcasted_iota(jnp.int32, (HEADS * nk, HIDDEN), 1)
    return (_idiv(r, nk) == _idiv(c, HEAD_DIM)).astype(jnp.float32)


# --------------------------- fused Pallas kernel ----------------------------
def _text2text_kernel(data_ref, slab_ref, loss_ref, *, offsets, treedef):
    # Rebuild the parameter tree from static 8-row-aligned slices of the slab.
    P = jax.tree_util.tree_unflatten(
        treedef, [slab_ref[pl.ds(o, r), pl.ds(0, c)] for (o, r, c) in offsets])

    scale = 1.0 / math.sqrt(HEAD_DIM)

    # ------------------------- token / segment data -------------------------
    src_ids = data_ref[pl.ds(D_SRC, N_SRC), pl.ds(0, 1)]          # (N_SRC, 1)
    tgt_in_ids = data_ref[pl.ds(D_TGT_IN, N_TGT), pl.ds(0, 1)]    # (N_TGT, 1)
    tgt_out_ids = data_ref[pl.ds(D_TGT_OUT, N_TGT), pl.ds(0, 1)]  # (N_TGT, 1)
    tgt_seg = data_ref[pl.ds(D_TGT_SEG, N_TGT), pl.ds(0, 1)]      # (N_TGT, 1)
    key_valid = data_ref[pl.ds(D_SEG_WIDE, 1), pl.ds(0, HEADS * N_SRC)] > 0

    # ------------------------------- helpers --------------------------------
    def layer_norm(x, ln):
        # E[x] / E[x^2] as independent reductions -> shorter XLU dependence chain.
        m1 = jnp.mean(x, axis=-1, keepdims=True)
        m2 = jnp.mean(x * x, axis=-1, keepdims=True)
        inv = lax.rsqrt(m2 - m1 * m1 + LN_EPS)
        return (x - m1) * inv * ln['g'] + ln['b']

    def embed(ids_col, pos_rep, ln):
        # Gather-free embedding: one-hot(ids) @ word_emb on the MXU.
        # TODO(synk): at realistic VOCAB use a scalar-prefetch DMA row gather.
        n = ids_col.shape[0]
        iota_v = lax.broadcasted_iota(jnp.int32, (n, VOCAB), 1)
        onehot = (iota_v == ids_col).astype(jnp.float32)
        we = jnp.dot(onehot, P['word_emb'], preferred_element_type=jnp.float32)
        return layer_norm(we + pos_rep, ln)

    def attend(q, k, v, add_mask, kv_hmask, wo, bo):
        # Heads folded into rows: one score matmul + one softmax + one ctx
        # matmul + one projection matmul for ALL heads.
        nq = q.shape[0]
        q_w = jnp.concatenate([q] * HEADS, axis=0)                 # (H*nq, HID)
        k_w = jnp.concatenate([k] * HEADS, axis=0) * kv_hmask      # (H*nk, HID)
        v_w = jnp.concatenate([v] * HEADS, axis=0) * kv_hmask
        s = lax.dot_general(q_w, k_w, (((1,), (1,)), ((), ())),
                            preferred_element_type=jnp.float32) * scale + add_mask
        s = s - jnp.max(s, axis=-1, keepdims=True)
        e = jnp.exp(s)
        p_attn = e * pl.reciprocal(jnp.sum(e, axis=-1, keepdims=True),
                                   approx=True)
        ctx = jnp.dot(p_attn, v_w, preferred_element_type=jnp.float32)
        proj = jnp.dot(ctx, wo, preferred_element_type=jnp.float32)  # (H*nq, HID)
        out = proj[0:nq, :]
        for h in range(1, HEADS):          # sum the HEADS aligned row blocks
            out = out + proj[h * nq:(h + 1) * nq, :]
        return out + bo

    def self_mha(x, add_mask, kv_hmask, a):
        qkv = jnp.dot(x, a['wqkv'], preferred_element_type=jnp.float32) + a['bqkv']
        return attend(qkv[:, :HIDDEN], qkv[:, HIDDEN:2 * HIDDEN],
                      qkv[:, 2 * HIDDEN:], add_mask, kv_hmask, a['wo'], a['bo'])

    def cross_mha(x_q, mem, add_mask, kv_hmask, a):
        q = jnp.dot(x_q, a['wq'], preferred_element_type=jnp.float32) + a['bq']
        kv = jnp.dot(mem, a['wkv'], preferred_element_type=jnp.float32) + a['bkv']
        return attend(q, kv[:, :HIDDEN], kv[:, HIDDEN:],
                      add_mask, kv_hmask, a['wo'], a['bo'])

    def ffn(x, f):
        h = jnp.dot(x, f['w1'], preferred_element_type=jnp.float32) + f['b1']
        # TODO(synk): UER's default "gelu" is erf-based; tanh-approx gelu used here.
        h = jax.nn.gelu(h, approximate=True)
        return jnp.dot(h, f['w2'], preferred_element_type=jnp.float32) + f['b2']

    # ----- masks (built once from iota; heads & batch folded into rows) -----
    enc_mask = _block_diag_mask(N_SRC, SRC_SEQ, N_SRC, SRC_SEQ, False, key_valid)
    dec_mask = _block_diag_mask(N_TGT, TGT_SEQ, N_TGT, TGT_SEQ, True, None)
    crs_mask = _block_diag_mask(N_TGT, TGT_SEQ, N_SRC, SRC_SEQ, False, key_valid)
    hmask_src = _head_col_mask(N_SRC)
    hmask_tgt = _head_col_mask(N_TGT)

    # ------------------------------- encoder --------------------------------
    mem = embed(src_ids, P['pos_src'], P['emb_ln'])
    for lp in P['encoder']:
        mem = layer_norm(mem + self_mha(mem, enc_mask, hmask_src, lp['attn']),
                         lp['ln1'])
        mem = layer_norm(mem + ffn(mem, lp['ffn']), lp['ln2'])

    # ------------------------------- decoder --------------------------------
    hid = embed(tgt_in_ids, P['pos_tgt'], P['tgt_emb_ln'])
    for lp in P['decoder']:
        hid = layer_norm(hid + self_mha(hid, dec_mask, hmask_tgt,
                                        lp['self_attn']), lp['ln1'])
        hid = layer_norm(hid + cross_mha(hid, mem, crs_mask, hmask_src,
                                         lp['cross_attn']), lp['ln2'])
        hid = layer_norm(hid + ffn(hid, lp['ffn']), lp['ln3'])

    # --- LmTarget: tied LM head (pre-transposed weight copy) + masked NLL ---
    logits = jnp.dot(hid, P['word_emb_t'],
                     preferred_element_type=jnp.float32) + P['lm_bias']
    lmax = jnp.max(logits, axis=-1, keepdims=True)
    lse = jnp.log(jnp.sum(jnp.exp(logits - lmax), axis=-1, keepdims=True)) + lmax
    iota_v = lax.broadcasted_iota(jnp.int32, (N_TGT, VOCAB), 1)
    picked = jnp.sum(jnp.where(iota_v == tgt_out_ids, logits, 0.0),
                     axis=-1, keepdims=True)
    maskf = (tgt_seg > 0).astype(jnp.float32)
    nll = (lse - picked) * maskf
    num = jnp.sum(nll, keepdims=True)                              # (1, 1)
    den = jnp.sum(maskf, keepdims=True) + 1e-6                     # UER +1e-6 guard
    loss_ref[...] = num / den


# ---------------------------- parameters ------------------------------------
def init_params(key):
    keys = iter(jax.random.split(key, 64))

    def dense(shape, scale=0.02):
        return scale * jax.random.normal(next(keys), shape, dtype=jnp.float32)

    def attn_params():
        return dict(wq=dense((HIDDEN, HIDDEN)), bq=jnp.zeros((HIDDEN,), jnp.float32),
                    wk=dense((HIDDEN, HIDDEN)), bk=jnp.zeros((HIDDEN,), jnp.float32),
                    wv=dense((HIDDEN, HIDDEN)), bv=jnp.zeros((HIDDEN,), jnp.float32),
                    wo=dense((HIDDEN, HIDDEN)), bo=jnp.zeros((HIDDEN,), jnp.float32))

    def ffn_params():
        return dict(w1=dense((HIDDEN, FFN)), b1=jnp.zeros((FFN,), jnp.float32),
                    w2=dense((FFN, HIDDEN)), b2=jnp.zeros((HIDDEN,), jnp.float32))

    def ln_params():
        return dict(g=jnp.ones((HIDDEN,), jnp.float32),
                    b=jnp.zeros((HIDDEN,), jnp.float32))

    return dict(
        word_emb=dense((VOCAB, HIDDEN)),       # shared src/tgt embedding, tied LM head
        pos_emb_src=dense((SRC_SEQ, HIDDEN)),
        pos_emb_tgt=dense((TGT_SEQ, HIDDEN)),
        emb_ln=ln_params(),
        tgt_emb_ln=ln_params(),
        encoder=[dict(attn=attn_params(), ln1=ln_params(),
                      ffn=ffn_params(), ln2=ln_params()) for _ in range(LAYERS)],
        decoder=[dict(self_attn=attn_params(), ln1=ln_params(),
                      cross_attn=attn_params(), ln2=ln_params(),
                      ffn=ffn_params(), ln3=ln_params()) for _ in range(LAYERS)],
        lm_bias=jnp.zeros((VOCAB,), jnp.float32),
    )


# ------------------------ kernel-param preparation ---------------------------
def _row(v):
    return v.reshape(1, -1)


def _prep_ln(l):
    return dict(g=_row(l['g']), b=_row(l['b']))


def _prep_self_attn(a):
    return dict(wqkv=jnp.concatenate([a['wq'], a['wk'], a['wv']], axis=1),
                bqkv=_row(jnp.concatenate([a['bq'], a['bk'], a['bv']])),
                wo=a['wo'], bo=_row(a['bo']))


def _prep_cross_attn(a):
    return dict(wq=a['wq'], bq=_row(a['bq']),
                wkv=jnp.concatenate([a['wk'], a['wv']], axis=1),
                bkv=_row(jnp.concatenate([a['bk'], a['bv']])),
                wo=a['wo'], bo=_row(a['bo']))


def _prep_ffn(f):
    return dict(w1=f['w1'], b1=_row(f['b1']), w2=f['w2'], b2=_row(f['b2']))


def _prepare_kernel_params(p):
    return dict(
        word_emb=p['word_emb'],                  # (V,H): one-hot embedding matmul
        word_emb_t=p['word_emb'].T,              # (H,V): LM head, no in-kernel transpose
        pos_src=jnp.concatenate([p['pos_emb_src']] * BATCH, axis=0),   # (N_SRC,H)
        pos_tgt=jnp.concatenate([p['pos_emb_tgt']] * BATCH, axis=0),   # (N_TGT,H)
        emb_ln=_prep_ln(p['emb_ln']),
        tgt_emb_ln=_prep_ln(p['tgt_emb_ln']),
        lm_bias=_row(p['lm_bias']),
        encoder=[dict(attn=_prep_self_attn(l['attn']), ln1=_prep_ln(l['ln1']),
                      ffn=_prep_ffn(l['ffn']), ln2=_prep_ln(l['ln2']))
                 for l in p['encoder']],
        decoder=[dict(self_attn=_prep_self_attn(l['self_attn']), ln1=_prep_ln(l['ln1']),
                      cross_attn=_prep_cross_attn(l['cross_attn']), ln2=_prep_ln(l['ln2']),
                      ffn=_prep_ffn(l['ffn']), ln3=_prep_ln(l['ln3']))
                 for l in p['decoder']],
    )


def _pack_weights(kparams):
    """Pack every prepared leaf into one lane-dense (rows, SLAB_W) f32 slab.
    Each leaf occupies rows [off, off+r) x cols [0, c); 8-row-aligned offsets."""
    leaves, treedef = jax.tree_util.tree_flatten(kparams)
    pieces, offsets, row = [], [], 0
    for leaf in leaves:
        r, c = leaf.shape
        assert c <= SLAB_W, f"leaf wider than slab: {leaf.shape}"
        r8 = _rnd8(r)
        pieces.append(jnp.pad(leaf.astype(jnp.float32),
                              ((0, r8 - r), (0, SLAB_W - c))))
        offsets.append((row, r, c))
        row += r8
    return jnp.concatenate(pieces, axis=0), tuple(offsets), treedef


def _pack_data(src, tgt_in, tgt_out, seg, tgt_seg):
    """Pack the five small int32 id/seg tensors into one (D_ROWS, DATA_W) slab."""
    def col(v, n):
        v = v.reshape(n, 1).astype(jnp.int32)
        return jnp.pad(v, ((0, _rnd8(n) - n), (0, DATA_W - 1)))
    seg_wide = jnp.tile(seg.reshape(1, N_SRC).astype(jnp.int32), (1, HEADS))
    seg_blk = jnp.pad(seg_wide, ((0, 7), (0, DATA_W - HEADS * N_SRC)))
    return jnp.concatenate([col(src, N_SRC), col(tgt_in, N_TGT),
                            col(tgt_out, N_TGT), col(tgt_seg, N_TGT),
                            seg_blk], axis=0)


# ----------------------------- forward wrapper -------------------------------
def text2text_forward(params, src, tgt, seg, tgt_seg):
    """Mirrors Text2text.forward(src, tgt, seg, tgt_seg) -> (loss, None)."""
    tgt_in, tgt_out = tgt
    slab, offsets, treedef = _pack_weights(_prepare_kernel_params(params))
    data = _pack_data(src, tgt_in, tgt_out, seg, tgt_seg)
    assert data.shape == (D_ROWS, DATA_W)

    kernel = functools.partial(_text2text_kernel, offsets=offsets, treedef=treedef)
    loss = pl.pallas_call(
        kernel,
        out_shape=jax.ShapeDtypeStruct((1, 1), jnp.float32),
        grid=(1,),
        in_specs=[pl.BlockSpec((D_ROWS, DATA_W), lambda i: (0, 0)),
                  pl.BlockSpec(slab.shape, lambda i: (0, 0))],
        out_specs=pl.BlockSpec((1, 1), lambda i: (0, 0)),
        compiler_params=pltpu.CompilerParams(
            dimension_semantics=("arbitrary",)),
    )(data, slab)
    return loss[0, 0], None


# ------------------------------- main ---------------------------------------
if __name__ == "__main__":
    key = jax.random.PRNGKey(0)
    pkey, k1, k2, k3 = jax.random.split(key, 4)
    params = init_params(pkey)

    src = jax.random.randint(k1, (BATCH, SRC_SEQ), 0, VOCAB, dtype=jnp.int32)
    tgt_in = jax.random.randint(k2, (BATCH, TGT_SEQ), 0, VOCAB, dtype=jnp.int32)
    tgt_out = jax.random.randint(k3, (BATCH, TGT_SEQ), 0, VOCAB, dtype=jnp.int32)
    seg = jnp.array([[1, 1, 1, 1, 1, 1, 0, 0],
                     [1, 1, 1, 1, 0, 0, 0, 0]], dtype=jnp.int32)
    tgt_seg = jnp.array([[1, 1, 1, 1, 1, 0, 0, 0],
                         [1, 1, 1, 1, 1, 1, 1, 0]], dtype=jnp.int32)

    fwd = jax.jit(lambda p, s, ti, to, sg, tsg:
                  text2text_forward(p, s, (ti, to), sg, tsg)[0])
    loss = jax.block_until_ready(fwd(params, src, tgt_in, tgt_out, seg, tgt_seg))
    assert jnp.isfinite(loss), "loss is not finite"
    print("KERNEL_OK")
</pallas_src>

<mosaic_0001>
module attributes {stable_mosaic.version = 11 : i64} {
  func.func @_text2text_kernel(%arg0: i32, %arg1: memref<72x128xi32, #tpu.memory_space<vmem>>, %arg2: memref<1336x128xf32, #tpu.memory_space<vmem>>, %arg3: memref<1x1xf32, #tpu.memory_space<vmem>>) attributes {dimension_semantics = [#tpu.dimension_semantics<arbitrary>], iteration_bounds = array<i64: 1>, scalar_prefetch = 0 : i64, scratch_operands = 0 : i64, tpu.core_type = #tpu.core_type<tc>, window_params = [{pipeline_mode = #tpu.pipeline_mode<synchronous>, transform_indices = @transform_0, window_bounds = array<i64: 72, 128>}, {pipeline_mode = #tpu.pipeline_mode<synchronous>, transform_indices = @transform_1, window_bounds = array<i64: 1336, 128>}, {pipeline_mode = #tpu.pipeline_mode<synchronous>, transform_indices = @transform_2, window_bounds = array<i64: 1, 1>}]} {
    %c0 = arith.constant 0 : index
    %c0_0 = arith.constant 0 : index
    %0 = vector.load %arg2[%c0, %c0_0] : memref<1336x128xf32, #tpu.memory_space<vmem>>, vector<1x64xf32>
    %c8 = arith.constant 8 : index
    %c0_1 = arith.constant 0 : index
    %1 = vector.load %arg2[%c8, %c0_1] : memref<1336x128xf32, #tpu.memory_space<vmem>>, vector<1x32xf32>
    %c16 = arith.constant 16 : index
    %c0_2 = arith.constant 0 : index
    %2 = vector.load %arg2[%c16, %c0_2] : memref<1336x128xf32, #tpu.memory_space<vmem>>, vector<1x32xf32>
    %c24 = arith.constant 24 : index
    %c0_3 = arith.constant 0 : index
    %3 = vector.load %arg2[%c24, %c0_3] : memref<1336x128xf32, #tpu.memory_space<vmem>>, vector<32x64xf32>
    %c56 = arith.constant 56 : index
    %c0_4 = arith.constant 0 : index
    %4 = vector.load %arg2[%c56, %c0_4] : memref<1336x128xf32, #tpu.memory_space<vmem>>, vector<32x32xf32>
    %c88 = arith.constant 88 : index
    %c0_5 = arith.constant 0 : index
    %5 = vector.load %arg2[%c88, %c0_5] : memref<1336x128xf32, #tpu.memory_space<vmem>>, vector<32x32xf32>
    %c120 = arith.constant 120 : index
    %c0_6 = arith.constant 0 : index
    %6 = vector.load %arg2[%c120, %c0_6] : memref<1336x128xf32, #tpu.memory_space<vmem>>, vector<1x64xf32>
    %c128 = arith.constant 128 : index
    %c0_7 = arith.constant 0 : index
    %7 = vector.load %arg2[%c128, %c0_7] : memref<1336x128xf32, #tpu.memory_space<vmem>>, vector<1x32xf32>
    %c136 = arith.constant 136 : index
    %c0_8 = arith.constant 0 : index
    %8 = vector.load %arg2[%c136, %c0_8] : memref<1336x128xf32, #tpu.memory_space<vmem>>, vector<32x64xf32>
    %c168 = arith.constant 168 : index
    %c0_9 = arith.constant 0 : index
    %9 = vector.load %arg2[%c168, %c0_9] : memref<1336x128xf32, #tpu.memory_space<vmem>>, vector<64x32xf32>
    %c232 = arith.constant 232 : index
    %c0_10 = arith.constant 0 : index
    %10 = vector.load %arg2[%c232, %c0_10] : memref<1336x128xf32, #tpu.memory_space<vmem>>, vector<1x32xf32>
    %c240 = arith.constant 240 : index
    %c0_11 = arith.constant 0 : index
    %11 = vector.load %arg2[%c240, %c0_11] : memref<1336x128xf32, #tpu.memory_space<vmem>>, vector<1x32xf32>
    %c248 = arith.constant 248 : index
    %c0_12 = arith.constant 0 : index
    %12 = vector.load %arg2[%c248, %c0_12] : memref<1336x128xf32, #tpu.memory_space<vmem>>, vector<1x32xf32>
    %c256 = arith.constant 256 : index
    %c0_13 = arith.constant 0 : index
    %13 = vector.load %arg2[%c256, %c0_13] : memref<1336x128xf32, #tpu.memory_space<vmem>>, vector<1x32xf32>
    %c264 = arith.constant 264 : index
    %c0_14 = arith.constant 0 : index
    %14 = vector.load %arg2[%c264, %c0_14] : memref<1336x128xf32, #tpu.memory_space<vmem>>, vector<1x32xf32>
    %c272 = arith.constant 272 : index
    %c0_15 = arith.constant 0 : index
    %15 = vector.load %arg2[%c272, %c0_15] : memref<1336x128xf32, #tpu.memory_space<vmem>>, vector<1x32xf32>
    %c280 = arith.constant 280 : index
    %c0_16 = arith.constant 0 : index
    %16 = vector.load %arg2[%c280, %c0_16] : memref<1336x128xf32, #tpu.memory_space<vmem>>, vector<1x32xf32>
    %c288 = arith.constant 288 : index
    %c0_17 = arith.constant 0 : index
    %17 = vector.load %arg2[%c288, %c0_17] : memref<1336x128xf32, #tpu.memory_space<vmem>>, vector<1x96xf32>
    %c296 = arith.constant 296 : index
    %c0_18 = arith.constant 0 : index
    %18 = vector.load %arg2[%c296, %c0_18] : memref<1336x128xf32, #tpu.memory_space<vmem>>, vector<32x32xf32>
    %c328 = arith.constant 328 : index
    %c0_19 = arith.constant 0 : index
    %19 = vector.load %arg2[%c328, %c0_19] : memref<1336x128xf32, #tpu.memory_space<vmem>>, vector<32x96xf32>
    %c360 = arith.constant 360 : index
    %c0_20 = arith.constant 0 : index
    %20 = vector.load %arg2[%c360, %c0_20] : memref<1336x128xf32, #tpu.memory_space<vmem>>, vector<1x64xf32>
    %c368 = arith.constant 368 : index
    %c0_21 = arith.constant 0 : index
    %21 = vector.load %arg2[%c368, %c0_21] : memref<1336x128xf32, #tpu.memory_space<vmem>>, vector<1x32xf32>
    %c376 = arith.constant 376 : index
    %c0_22 = arith.constant 0 : index
    %22 = vector.load %arg2[%c376, %c0_22] : memref<1336x128xf32, #tpu.memory_space<vmem>>, vector<1x32xf32>
    %c384 = arith.constant 384 : index
    %c0_23 = arith.constant 0 : index
    %23 = vector.load %arg2[%c384, %c0_23] : memref<1336x128xf32, #tpu.memory_space<vmem>>, vector<32x64xf32>
    %c416 = arith.constant 416 : index
    %c0_24 = arith.constant 0 : index
    %24 = vector.load %arg2[%c416, %c0_24] : memref<1336x128xf32, #tpu.memory_space<vmem>>, vector<32x32xf32>
    %c448 = arith.constant 448 : index
    %c0_25 = arith.constant 0 : index
    %25 = vector.load %arg2[%c448, %c0_25] : memref<1336x128xf32, #tpu.memory_space<vmem>>, vector<32x32xf32>
    %c480 = arith.constant 480 : index
    %c0_26 = arith.constant 0 : index
    %26 = vector.load %arg2[%c480, %c0_26] : memref<1336x128xf32, #tpu.memory_space<vmem>>, vector<1x64xf32>
    %c488 = arith.constant 488 : index
    %c0_27 = arith.constant 0 : index
    %27 = vector.load %arg2[%c488, %c0_27] : memref<1336x128xf32, #tpu.memory_space<vmem>>, vector<1x32xf32>
    %c496 = arith.constant 496 : index
    %c0_28 = arith.constant 0 : index
    %28 = vector.load %arg2[%c496, %c0_28] : memref<1336x128xf32, #tpu.memory_space<vmem>>, vector<32x64xf32>
    %c528 = arith.constant 528 : index
    %c0_29 = arith.constant 0 : index
    %29 = vector.load %arg2[%c528, %c0_29] : memref<1336x128xf32, #tpu.memory_space<vmem>>, vector<64x32xf32>
    %c592 = arith.constant 592 : index
    %c0_30 = arith.constant 0 : index
    %30 = vector.load %arg2[%c592, %c0_30] : memref<1336x128xf32, #tpu.memory_space<vmem>>, vector<1x32xf32>
    %c600 = arith.constant 600 : index
    %c0_31 = arith.constant 0 : index
    %31 = vector.load %arg2[%c600, %c0_31] : memref<1336x128xf32, #tpu.memory_space<vmem>>, vector<1x32xf32>
    %c608 = arith.constant 608 : index
    %c0_32 = arith.constant 0 : index
    %32 = vector.load %arg2[%c608, %c0_32] : memref<1336x128xf32, #tpu.memory_space<vmem>>, vector<1x32xf32>
    %c616 = arith.constant 616 : index
    %c0_33 = arith.constant 0 : index
    %33 = vector.load %arg2[%c616, %c0_33] : memref<1336x128xf32, #tpu.memory_space<vmem>>, vector<1x32xf32>
    %c624 = arith.constant 624 : index
    %c0_34 = arith.constant 0 : index
    %34 = vector.load %arg2[%c624, %c0_34] : memref<1336x128xf32, #tpu.memory_space<vmem>>, vector<1x32xf32>
    %c632 = arith.constant 632 : index
    %c0_35 = arith.constant 0 : index
    %35 = vector.load %arg2[%c632, %c0_35] : memref<1336x128xf32, #tpu.memory_space<vmem>>, vector<1x32xf32>
    %c640 = arith.constant 640 : index
    %c0_36 = arith.constant 0 : index
    %36 = vector.load %arg2[%c640, %c0_36] : memref<1336x128xf32, #tpu.memory_space<vmem>>, vector<1x32xf32>
    %c648 = arith.constant 648 : index
    %c0_37 = arith.constant 0 : index
    %37 = vector.load %arg2[%c648, %c0_37] : memref<1336x128xf32, #tpu.memory_space<vmem>>, vector<1x96xf32>
    %c656 = arith.constant 656 : index
    %c0_38 = arith.constant 0 : index
    %38 = vector.load %arg2[%c656, %c0_38] : memref<1336x128xf32, #tpu.memory_space<vmem>>, vector<32x32xf32>
    %c688 = arith.constant 688 : index
    %c0_39 = arith.constant 0 : index
    %39 = vector.load %arg2[%c688, %c0_39] : memref<1336x128xf32, #tpu.memory_space<vmem>>, vector<32x96xf32>
    %c720 = arith.constant 720 : index
    %c0_40 = arith.constant 0 : index
    %40 = vector.load %arg2[%c720, %c0_40] : memref<1336x128xf32, #tpu.memory_space<vmem>>, vector<1x32xf32>
    %c728 = arith.constant 728 : index
    %c0_41 = arith.constant 0 : index
    %41 = vector.load %arg2[%c728, %c0_41] : memref<1336x128xf32, #tpu.memory_space<vmem>>, vector<1x32xf32>
    %c736 = arith.constant 736 : index
    %c0_42 = arith.constant 0 : index
    %42 = vector.load %arg2[%c736, %c0_42] : memref<1336x128xf32, #tpu.memory_space<vmem>>, vector<1x32xf32>
    %c744 = arith.constant 744 : index
    %c0_43 = arith.constant 0 : index
    %43 = vector.load %arg2[%c744, %c0_43] : memref<1336x128xf32, #tpu.memory_space<vmem>>, vector<1x96xf32>
    %c752 = arith.constant 752 : index
    %c0_44 = arith.constant 0 : index
    %44 = vector.load %arg2[%c752, %c0_44] : memref<1336x128xf32, #tpu.memory_space<vmem>>, vector<32x32xf32>
    %c784 = arith.constant 784 : index
    %c0_45 = arith.constant 0 : index
    %45 = vector.load %arg2[%c784, %c0_45] : memref<1336x128xf32, #tpu.memory_space<vmem>>, vector<32x96xf32>
    %c816 = arith.constant 816 : index
    %c0_46 = arith.constant 0 : index
    %46 = vector.load %arg2[%c816, %c0_46] : memref<1336x128xf32, #tpu.memory_space<vmem>>, vector<1x64xf32>
    %c824 = arith.constant 824 : index
    %c0_47 = arith.constant 0 : index
    %47 = vector.load %arg2[%c824, %c0_47] : memref<1336x128xf32, #tpu.memory_space<vmem>>, vector<1x32xf32>
    %c832 = arith.constant 832 : index
    %c0_48 = arith.constant 0 : index
    %48 = vector.load %arg2[%c832, %c0_48] : memref<1336x128xf32, #tpu.memory_space<vmem>>, vector<32x64xf32>
    %c864 = arith.constant 864 : index
    %c0_49 = arith.constant 0 : index
    %49 = vector.load %arg2[%c864, %c0_49] : memref<1336x128xf32, #tpu.memory_space<vmem>>, vector<64x32xf32>
    %c928 = arith.constant 928 : index
    %c0_50 = arith.constant 0 : index
    %50 = vector.load %arg2[%c928, %c0_50] : memref<1336x128xf32, #tpu.memory_space<vmem>>, vector<1x32xf32>
    %c936 = arith.constant 936 : index
    %c0_51 = arith.constant 0 : index
    %51 = vector.load %arg2[%c936, %c0_51] : memref<1336x128xf32, #tpu.memory_space<vmem>>, vector<1x32xf32>
    %c944 = arith.constant 944 : index
    %c0_52 = arith.constant 0 : index
    %52 = vector.load %arg2[%c944, %c0_52] : memref<1336x128xf32, #tpu.memory_space<vmem>>, vector<1x32xf32>
    %c952 = arith.constant 952 : index
    %c0_53 = arith.constant 0 : index
    %53 = vector.load %arg2[%c952, %c0_53] : memref<1336x128xf32, #tpu.memory_space<vmem>>, vector<1x32xf32>
    %c960 = arith.constant 960 : index
    %c0_54 = arith.constant 0 : index
    %54 = vector.load %arg2[%c960, %c0_54] : memref<1336x128xf32, #tpu.memory_space<vmem>>, vector<1x32xf32>
    %c968 = arith.constant 968 : index
    %c0_55 = arith.constant 0 : index
    %55 = vector.load %arg2[%c968, %c0_55] : memref<1336x128xf32, #tpu.memory_space<vmem>>, vector<1x96xf32>
    %c976 = arith.constant 976 : index
    %c0_56 = arith.constant 0 : index
    %56 = vector.load %arg2[%c976, %c0_56] : memref<1336x128xf32, #tpu.memory_space<vmem>>, vector<32x32xf32>
    %c1008 = arith.constant 1008 : index
    %c0_57 = arith.constant 0 : index
    %57 = vector.load %arg2[%c1008, %c0_57] : memref<1336x128xf32, #tpu.memory_space<vmem>>, vector<32x96xf32>
    %c1040 = arith.constant 1040 : index
    %c0_58 = arith.constant 0 : index
    %58 = vector.load %arg2[%c1040, %c0_58] : memref<1336x128xf32, #tpu.memory_space<vmem>>, vector<1x64xf32>
    %c1048 = arith.constant 1048 : index
    %c0_59 = arith.constant 0 : index
    %59 = vector.load %arg2[%c1048, %c0_59] : memref<1336x128xf32, #tpu.memory_space<vmem>>, vector<1x32xf32>
    %c1056 = arith.constant 1056 : index
    %c0_60 = arith.constant 0 : index
    %60 = vector.load %arg2[%c1056, %c0_60] : memref<1336x128xf32, #tpu.memory_space<vmem>>, vector<32x64xf32>
    %c1088 = arith.constant 1088 : index
    %c0_61 = arith.constant 0 : index
    %61 = vector.load %arg2[%c1088, %c0_61] : memref<1336x128xf32, #tpu.memory_space<vmem>>, vector<64x32xf32>
    %c1152 = arith.constant 1152 : index
    %c0_62 = arith.constant 0 : index
    %62 = vector.load %arg2[%c1152, %c0_62] : memref<1336x128xf32, #tpu.memory_space<vmem>>, vector<1x32xf32>
    %c1160 = arith.constant 1160 : index
    %c0_63 = arith.constant 0 : index
    %63 = vector.load %arg2[%c1160, %c0_63] : memref<1336x128xf32, #tpu.memory_space<vmem>>, vector<1x32xf32>
    %c1168 = arith.constant 1168 : index
    %c0_64 = arith.constant 0 : index
    %64 = vector.load %arg2[%c1168, %c0_64] : memref<1336x128xf32, #tpu.memory_space<vmem>>, vector<1x32xf32>
    %c1176 = arith.constant 1176 : index
    %c0_65 = arith.constant 0 : index
    %65 = vector.load %arg2[%c1176, %c0_65] : memref<1336x128xf32, #tpu.memory_space<vmem>>, vector<1x32xf32>
    %c1184 = arith.constant 1184 : index
    %c0_66 = arith.constant 0 : index
    %66 = vector.load %arg2[%c1184, %c0_66] : memref<1336x128xf32, #tpu.memory_space<vmem>>, vector<1x64xf32>
    %c1192 = arith.constant 1192 : index
    %c0_67 = arith.constant 0 : index
    %67 = vector.load %arg2[%c1192, %c0_67] : memref<1336x128xf32, #tpu.memory_space<vmem>>, vector<16x32xf32>
    %c1208 = arith.constant 1208 : index
    %c0_68 = arith.constant 0 : index
    %68 = vector.load %arg2[%c1208, %c0_68] : memref<1336x128xf32, #tpu.memory_space<vmem>>, vector<16x32xf32>
    %c1224 = arith.constant 1224 : index
    %c0_69 = arith.constant 0 : index
    %69 = vector.load %arg2[%c1224, %c0_69] : memref<1336x128xf32, #tpu.memory_space<vmem>>, vector<1x32xf32>
    %c1232 = arith.constant 1232 : index
    %c0_70 = arith.constant 0 : index
    %70 = vector.load %arg2[%c1232, %c0_70] : memref<1336x128xf32, #tpu.memory_space<vmem>>, vector<1x32xf32>
    %c1240 = arith.constant 1240 : index
    %c0_71 = arith.constant 0 : index
    %71 = vector.load %arg2[%c1240, %c0_71] : memref<1336x128xf32, #tpu.memory_space<vmem>>, vector<64x32xf32>
    %c1304 = arith.constant 1304 : index
    %c0_72 = arith.constant 0 : index
    %72 = vector.load %arg2[%c1304, %c0_72] : memref<1336x128xf32, #tpu.memory_space<vmem>>, vector<32x64xf32>
    %c0_73 = arith.constant 0 : index
    %c0_74 = arith.constant 0 : index
    %73 = vector.load %arg1[%c0_73, %c0_74] : memref<72x128xi32, #tpu.memory_space<vmem>>, vector<16x1xi32>
    %c16_75 = arith.constant 16 : index
    %c0_76 = arith.constant 0 : index
    %74 = vector.load %arg1[%c16_75, %c0_76] : memref<72x128xi32, #tpu.memory_space<vmem>>, vector<16x1xi32>
    %c32 = arith.constant 32 : index
    %c0_77 = arith.constant 0 : index
    %75 = vector.load %arg1[%c32, %c0_77] : memref<72x128xi32, #tpu.memory_space<vmem>>, vector<16x1xi32>
    %c48 = arith.constant 48 : index
    %c0_78 = arith.constant 0 : index
    %76 = vector.load %arg1[%c48, %c0_78] : memref<72x128xi32, #tpu.memory_space<vmem>>, vector<16x1xi32>
    %c64 = arith.constant 64 : index
    %c0_79 = arith.constant 0 : index
    %77 = vector.load %arg1[%c64, %c0_79] : memref<72x128xi32, #tpu.memory_space<vmem>>, vector<1x64xi32>
    %c0_i32 = arith.constant 0 : i32
    %78 = vector.broadcast %c0_i32 : i32 to vector<1x64xi32>
    %79 = arith.cmpi sgt, %77, %78 : vector<1x64xi32>
    %80 = tpu.iota {dimensions = array<i32: 0>} : vector<64x64xi32>
    %81 = tpu.iota {dimensions = array<i32: 1>} : vector<64x64xi32>
    %c15_i32 = arith.constant 15 : i32
    %82 = vector.broadcast %c15_i32 : i32 to vector<64x64xi32>
    %83 = arith.andi %80, %82 : vector<64x64xi32>
    %c15_i32_80 = arith.constant 15 : i32
    %84 = vector.broadcast %c15_i32_80 : i32 to vector<64x64xi32>
    %85 = arith.andi %81, %84 : vector<64x64xi32>
    %c4_i32 = arith.constant 4 : i32
    %86 = vector.broadcast %c4_i32 : i32 to vector<64x64xi32>
    %87 = arith.shrsi %80, %86 : vector<64x64xi32>
    %c4_i32_81 = arith.constant 4 : i32
    %88 = vector.broadcast %c4_i32_81 : i32 to vector<64x64xi32>
    %89 = arith.shrsi %81, %88 : vector<64x64xi32>
    %90 = arith.cmpi eq, %87, %89 : vector<64x64xi32>
    %c3_i32 = arith.constant 3 : i32
    %91 = vector.broadcast %c3_i32 : i32 to vector<64x64xi32>
    %92 = arith.shrsi %83, %91 : vector<64x64xi32>
    %c3_i32_82 = arith.constant 3 : i32
    %93 = vector.broadcast %c3_i32_82 : i32 to vector<64x64xi32>
    %94 = arith.shrsi %85, %93 : vector<64x64xi32>
    %95 = arith.cmpi eq, %92, %94 : vector<64x64xi32>
    %96 = arith.andi %90, %95 : vector<64x64xi1>
    %97 = vector.broadcast %79 : vector<1x64xi1> to vector<64x64xi1>
    %98 = arith.andi %96, %97 : vector<64x64xi1>
    %cst = arith.constant 0.000000e+00 : f32
    %cst_83 = arith.constant -1.000000e+04 : f32
    %99 = vector.broadcast %cst : f32 to vector<64x64xf32>
    %100 = vector.broadcast %cst_83 : f32 to vector<64x64xf32>
    %101 = arith.select %98, %99, %100 : vector<64x64xi1>, vector<64x64xf32>
    %102 = tpu.iota {dimensions = array<i32: 0>} : vector<64x64xi32>
    %103 = tpu.iota {dimensions = array<i32: 1>} : vector<64x64xi32>
    %c15_i32_84 = arith.constant 15 : i32
    %104 = vector.broadcast %c15_i32_84 : i32 to vector<64x64xi32>
    %105 = arith.andi %102, %104 : vector<64x64xi32>
    %c15_i32_85 = arith.constant 15 : i32
    %106 = vector.broadcast %c15_i32_85 : i32 to vector<64x64xi32>
    %107 = arith.andi %103, %106 : vector<64x64xi32>
    %c4_i32_86 = arith.constant 4 : i32
    %108 = vector.broadcast %c4_i32_86 : i32 to vector<64x64xi32>
    %109 = arith.shrsi %102, %108 : vector<64x64xi32>
    %c4_i32_87 = arith.constant 4 : i32
    %110 = vector.broadcast %c4_i32_87 : i32 to vector<64x64xi32>
    %111 = arith.shrsi %103, %110 : vector<64x64xi32>
    %112 = arith.cmpi eq, %109, %111 : vector<64x64xi32>
    %c3_i32_88 = arith.constant 3 : i32
    %113 = vector.broadcast %c3_i32_88 : i32 to vector<64x64xi32>
    %114 = arith.shrsi %105, %113 : vector<64x64xi32>
    %c3_i32_89 = arith.constant 3 : i32
    %115 = vector.broadcast %c3_i32_89 : i32 to vector<64x64xi32>
    %116 = arith.shrsi %107, %115 : vector<64x64xi32>
    %117 = arith.cmpi eq, %114, %116 : vector<64x64xi32>
    %118 = arith.andi %112, %117 : vector<64x64xi1>
    %c7_i32 = arith.constant 7 : i32
    %119 = vector.broadcast %c7_i32 : i32 to vector<64x64xi32>
    %120 = arith.andi %107, %119 : vector<64x64xi32>
    %c7_i32_90 = arith.constant 7 : i32
    %121 = vector.broadcast %c7_i32_90 : i32 to vector<64x64xi32>
    %122 = arith.andi %105, %121 : vector<64x64xi32>
    %123 = arith.cmpi sle, %120, %122 : vector<64x64xi32>
    %124 = arith.andi %118, %123 : vector<64x64xi1>
    %cst_91 = arith.constant 0.000000e+00 : f32
    %cst_92 = arith.constant -1.000000e+04 : f32
    %125 = vector.broadcast %cst_91 : f32 to vector<64x64xf32>
    %126 = vector.broadcast %cst_92 : f32 to vector<64x64xf32>
    %127 = arith.select %124, %125, %126 : vector<64x64xi1>, vector<64x64xf32>
    %128 = tpu.iota {dimensions = array<i32: 0>} : vector<64x64xi32>
    %129 = tpu.iota {dimensions = array<i32: 1>} : vector<64x64xi32>
    %c15_i32_93 = arith.constant 15 : i32
    %130 = vector.broadcast %c15_i32_93 : i32 to vector<64x64xi32>
    %131 = arith.andi %128, %130 : vector<64x64xi32>
    %c15_i32_94 = arith.constant 15 : i32
    %132 = vector.broadcast %c15_i32_94 : i32 to vector<64x64xi32>
    %133 = arith.andi %129, %132 : vector<64x64xi32>
    %c4_i32_95 = arith.constant 4 : i32
    %134 = vector.broadcast %c4_i32_95 : i32 to vector<64x64xi32>
    %135 = arith.shrsi %128, %134 : vector<64x64xi32>
    %c4_i32_96 = arith.constant 4 : i32
    %136 = vector.broadcast %c4_i32_96 : i32 to vector<64x64xi32>
    %137 = arith.shrsi %129, %136 : vector<64x64xi32>
    %138 = arith.cmpi eq, %135, %137 : vector<64x64xi32>
    %c3_i32_97 = arith.constant 3 : i32
    %139 = vector.broadcast %c3_i32_97 : i32 to vector<64x64xi32>
    %140 = arith.shrsi %131, %139 : vector<64x64xi32>
    %c3_i32_98 = arith.constant 3 : i32
    %141 = vector.broadcast %c3_i32_98 : i32 to vector<64x64xi32>
    %142 = arith.shrsi %133, %141 : vector<64x64xi32>
    %143 = arith.cmpi eq, %140, %142 : vector<64x64xi32>
    %144 = arith.andi %138, %143 : vector<64x64xi1>
    %145 = vector.broadcast %79 : vector<1x64xi1> to vector<64x64xi1>
    %146 = arith.andi %144, %145 : vector<64x64xi1>
    %cst_99 = arith.constant 0.000000e+00 : f32
    %cst_100 = arith.constant -1.000000e+04 : f32
    %147 = vector.broadcast %cst_99 : f32 to vector<64x64xf32>
    %148 = vector.broadcast %cst_100 : f32 to vector<64x64xf32>
    %149 = arith.select %146, %147, %148 : vector<64x64xi1>, vector<64x64xf32>
    %150 = tpu.iota {dimensions = array<i32: 0>} : vector<64x32xi32>
    %151 = tpu.iota {dimensions = array<i32: 1>} : vector<64x32xi32>
    %c4_i32_101 = arith.constant 4 : i32
    %152 = vector.broadcast %c4_i32_101 : i32 to vector<64x32xi32>
    %153 = arith.shrsi %150, %152 : vector<64x32xi32>
    %c3_i32_102 = arith.constant 3 : i32
    %154 = vector.broadcast %c3_i32_102 : i32 to vector<64x32xi32>
    %155 = arith.shrsi %151, %154 : vector<64x32xi32>
    %156 = arith.cmpi eq, %153, %155 : vector<64x32xi32>
    %157 = arith.extui %156 : vector<64x32xi1> to vector<64x32xi32>
    %158 = arith.sitofp %157 : vector<64x32xi32> to vector<64x32xf32>
    %159 = tpu.iota {dimensions = array<i32: 0>} : vector<64x32xi32>
    %160 = tpu.iota {dimensions = array<i32: 1>} : vector<64x32xi32>
    %c4_i32_103 = arith.constant 4 : i32
    %161 = vector.broadcast %c4_i32_103 : i32 to vector<64x32xi32>
    %162 = arith.shrsi %159, %161 : vector<64x32xi32>
    %c3_i32_104 = arith.constant 3 : i32
    %163 = vector.broadcast %c3_i32_104 : i32 to vector<64x32xi32>
    %164 = arith.shrsi %160, %163 : vector<64x32xi32>
    %165 = arith.cmpi eq, %162, %164 : vector<64x32xi32>
    %166 = arith.extui %165 : vector<64x32xi1> to vector<64x32xi32>
    %167 = arith.sitofp %166 : vector<64x32xi32> to vector<64x32xf32>
    %168 = tpu.iota {dimensions = array<i32: 1>} : vector<16x64xi32>
    %169 = vector.broadcast %73 : vector<16x1xi32> to vector<16x64xi32>
    %170 = arith.cmpi eq, %168, %169 : vector<16x64xi32>
    %171 = arith.extui %170 : vector<16x64xi1> to vector<16x64xi32>
    %172 = arith.sitofp %171 : vector<16x64xi32> to vector<16x64xf32>
    %cst_105 = arith.constant dense<0.000000e+00> : vector<16x32xf32>
    %173 = tpu.matmul %172, %71, %cst_105 {dimension_numbers = #tpu.dot_dimension_numbers<[1], [0], [0], [1], [0, 0, 1, 1], [], []>} : vector<16x64xf32>, vector<64x32xf32>, vector<16x32xf32> -> vector<16x32xf32>
    %174 = arith.addf %173, %67 : vector<16x32xf32>
    %cst_106 = arith.constant dense<0.000000e+00> : vector<16xf32>
    %175 = vector.multi_reduction <add>, %174, %cst_106 [1] : vector<16x32xf32> to vector<16xf32>
    %176 = vector.shape_cast %175 : vector<16xf32> to vector<16x1xf32>
    %cst_107 = arith.constant 3.200000e+01 : f32
    %177 = vector.broadcast %cst_107 : f32 to vector<16x1xf32>
    %178 = arith.divf %176, %177 : vector<16x1xf32>
    %179 = arith.mulf %174, %174 : vector<16x32xf32>
    %cst_108 = arith.constant dense<0.000000e+00> : vector<16xf32>
    %180 = vector.multi_reduction <add>, %179, %cst_108 [1] : vector<16x32xf32> to vector<16xf32>
    %181 = vector.shape_cast %180 : vector<16xf32> to vector<16x1xf32>
    %cst_109 = arith.constant 3.200000e+01 : f32
    %182 = vector.broadcast %cst_109 : f32 to vector<16x1xf32>
    %183 = arith.divf %181, %182 : vector<16x1xf32>
    %184 = arith.mulf %178, %178 : vector<16x1xf32>
    %185 = arith.subf %183, %184 : vector<16x1xf32>
    %cst_110 = arith.constant 9.99999997E-7 : f32
    %186 = vector.broadcast %cst_110 : f32 to vector<16x1xf32>
    %187 = arith.addf %185, %186 : vector<16x1xf32>
    %188 = math.rsqrt %187 : vector<16x1xf32>
    %189 = vector.broadcast %178 : vector<16x1xf32> to vector<16x32xf32>
    %190 = arith.subf %174, %189 : vector<16x32xf32>
    %191 = vector.broadcast %188 : vector<16x1xf32> to vector<16x32xf32>
    %192 = arith.mulf %190, %191 : vector<16x32xf32>
    %193 = vector.broadcast %41 : vector<1x32xf32> to vector<16x32xf32>
    %194 = arith.mulf %192, %193 : vector<16x32xf32>
    %195 = vector.broadcast %40 : vector<1x32xf32> to vector<16x32xf32>
    %196 = arith.addf %194, %195 : vector<16x32xf32>
    %cst_111 = arith.constant dense<0.000000e+00> : vector<16x96xf32>
    %197 = tpu.matmul %196, %45, %cst_111 {dimension_numbers = #tpu.dot_dimension_numbers<[1], [0], [0], [1], [0, 0, 1, 1], [], []>} : vector<16x32xf32>, vector<32x96xf32>, vector<16x96xf32> -> vector<16x96xf32>
    %198 = vector.broadcast %43 : vector<1x96xf32> to vector<16x96xf32>
    %199 = arith.addf %197, %198 : vector<16x96xf32>
    %200 = vector.extract_strided_slice %199 {offsets = [0, 0], sizes = [16, 32], strides = [1, 1]} : vector<16x96xf32> to vector<16x32xf32>
    %201 = vector.extract_strided_slice %199 {offsets = [0, 32], sizes = [16, 32], strides = [1, 1]} : vector<16x96xf32> to vector<16x32xf32>
    %202 = vector.extract_strided_slice %199 {offsets = [0, 64], sizes = [16, 32], strides = [1, 1]} : vector<16x96xf32> to vector<16x32xf32>
    %203 = tpu.concatenate %200, %200, %200, %200 in 0 : vector<16x32xf32>, vector<16x32xf32>, vector<16x32xf32>, vector<16x32xf32> -> vector<64x32xf32>
    %204 = tpu.concatenate %201, %201, %201, %201 in 0 : vector<16x32xf32>, vector<16x32xf32>, vector<16x32xf32>, vector<16x32xf32> -> vector<64x32xf32>
    %205 = arith.mulf %204, %158 : vector<64x32xf32>
    %206 = tpu.concatenate %202, %202, %202, %202 in 0 : vector<16x32xf32>, vector<16x32xf32>, vector<16x32xf32>, vector<16x32xf32> -> vector<64x32xf32>
    %207 = arith.mulf %206, %158 : vector<64x32xf32>
    %cst_112 = arith.constant dense<0.000000e+00> : vector<64x64xf32>
    %208 = tpu.matmul %203, %205, %cst_112 {dimension_numbers = #tpu.dot_dimension_numbers<[1], [1], [0], [0], [0, 0, 1, 0], [], []>} : vector<64x32xf32>, vector<64x32xf32>, vector<64x64xf32> -> vector<64x64xf32>
    %cst_113 = arith.constant 0.353553385 : f32
    %209 = vector.broadcast %cst_113 : f32 to vector<64x64xf32>
    %210 = arith.mulf %208, %209 : vector<64x64xf32>
    %211 = arith.addf %210, %101 : vector<64x64xf32>
    %cst_114 = arith.constant dense<0xFF800000> : vector<64xf32>
    %212 = vector.multi_reduction <maximumf>, %211, %cst_114 [1] : vector<64x64xf32> to vector<64xf32>
    %213 = vector.shape_cast %212 : vector<64xf32> to vector<64x1xf32>
    %214 = vector.broadcast %213 : vector<64x1xf32> to vector<64x64xf32>
    %215 = arith.subf %211, %214 : vector<64x64xf32>
    %216 = math.exp %215 : vector<64x64xf32>
    %cst_115 = arith.constant dense<0.000000e+00> : vector<64xf32>
    %217 = vector.multi_reduction <add>, %216, %cst_115 [1] : vector<64x64xf32> to vector<64xf32>
    %218 = vector.shape_cast %217 : vector<64xf32> to vector<64x1xf32>
    %219 = tpu.reciprocal %218 {approx = true} : vector<64x1xf32> -> vector<64x1xf32>
    %220 = vector.broadcast %219 : vector<64x1xf32> to vector<64x64xf32>
    %221 = arith.mulf %216, %220 : vector<64x64xf32>
    %cst_116 = arith.constant dense<0.000000e+00> : vector<64x32xf32>
    %222 = tpu.matmul %221, %207, %cst_116 {dimension_numbers = #tpu.dot_dimension_numbers<[1], [0], [0], [1], [0, 0, 1, 1], [], []>} : vector<64x64xf32>, vector<64x32xf32>, vector<64x32xf32> -> vector<64x32xf32>
    %cst_117 = arith.constant dense<0.000000e+00> : vector<64x32xf32>
    %223 = tpu.matmul %222, %44, %cst_117 {dimension_numbers = #tpu.dot_dimension_numbers<[1], [0], [0], [1], [0, 0, 1, 1], [], []>} : vector<64x32xf32>, vector<32x32xf32>, vector<64x32xf32> -> vector<64x32xf32>
    %224 = vector.extract_strided_slice %223 {offsets = [0, 0], sizes = [16, 32], strides = [1, 1]} : vector<64x32xf32> to vector<16x32xf32>
    %225 = vector.extract_strided_slice %223 {offsets = [16, 0], sizes = [16, 32], strides = [1, 1]} : vector<64x32xf32> to vector<16x32xf32>
    %226 = arith.addf %224, %225 : vector<16x32xf32>
    %227 = vector.extract_strided_slice %223 {offsets = [32, 0], sizes = [16, 32], strides = [1, 1]} : vector<64x32xf32> to vector<16x32xf32>
    %228 = arith.addf %226, %227 : vector<16x32xf32>
    %229 = vector.extract_strided_slice %223 {offsets = [48, 0], sizes = [16, 32], strides = [1, 1]} : vector<64x32xf32> to vector<16x32xf32>
    %230 = arith.addf %228, %229 : vector<16x32xf32>
    %231 = vector.broadcast %42 : vector<1x32xf32> to vector<16x32xf32>
    %232 = arith.addf %230, %231 : vector<16x32xf32>
    %233 = arith.addf %196, %232 : vector<16x32xf32>
    %cst_118 = arith.constant dense<0.000000e+00> : vector<16xf32>
    %234 = vector.multi_reduction <add>, %233, %cst_118 [1] : vector<16x32xf32> to vector<16xf32>
    %235 = vector.shape_cast %234 : vector<16xf32> to vector<16x1xf32>
    %cst_119 = arith.constant 3.200000e+01 : f32
    %236 = vector.broadcast %cst_119 : f32 to vector<16x1xf32>
    %237 = arith.divf %235, %236 : vector<16x1xf32>
    %238 = arith.mulf %233, %233 : vector<16x32xf32>
    %cst_120 = arith.constant dense<0.000000e+00> : vector<16xf32>
    %239 = vector.multi_reduction <add>, %238, %cst_120 [1] : vector<16x32xf32> to vector<16xf32>
    %240 = vector.shape_cast %239 : vector<16xf32> to vector<16x1xf32>
    %cst_121 = arith.constant 3.200000e+01 : f32
    %241 = vector.broadcast %cst_121 : f32 to vector<16x1xf32>
    %242 = arith.divf %240, %241 : vector<16x1xf32>
    %243 = arith.mulf %237, %237 : vector<16x1xf32>
    %244 = arith.subf %242, %243 : vector<16x1xf32>
    %cst_122 = arith.constant 9.99999997E-7 : f32
    %245 = vector.broadcast %cst_122 : f32 to vector<16x1xf32>
    %246 = arith.addf %244, %245 : vector<16x1xf32>
    %247 = math.rsqrt %246 : vector<16x1xf32>
    %248 = vector.broadcast %237 : vector<16x1xf32> to vector<16x32xf32>
    %249 = arith.subf %233, %248 : vector<16x32xf32>
    %250 = vector.broadcast %247 : vector<16x1xf32> to vector<16x32xf32>
    %251 = arith.mulf %249, %250 : vector<16x32xf32>
    %252 = vector.broadcast %51 : vector<1x32xf32> to vector<16x32xf32>
    %253 = arith.mulf %251, %252 : vector<16x32xf32>
    %254 = vector.broadcast %50 : vector<1x32xf32> to vector<16x32xf32>
    %255 = arith.addf %253, %254 : vector<16x32xf32>
    %cst_123 = arith.constant dense<0.000000e+00> : vector<16x64xf32>
    %256 = tpu.matmul %255, %48, %cst_123 {dimension_numbers = #tpu.dot_dimension_numbers<[1], [0], [0], [1], [0, 0, 1, 1], [], []>} : vector<16x32xf32>, vector<32x64xf32>, vector<16x64xf32> -> vector<16x64xf32>
    %257 = vector.broadcast %46 : vector<1x64xf32> to vector<16x64xf32>
    %258 = arith.addf %256, %257 : vector<16x64xf32>
    %259 = arith.mulf %258, %258 : vector<16x64xf32>
    %260 = arith.mulf %258, %259 : vector<16x64xf32>
    %cst_124 = arith.constant 4.471500e-02 : f32
    %261 = vector.broadcast %cst_124 : f32 to vector<16x64xf32>
    %262 = arith.mulf %261, %260 : vector<16x64xf32>
    %263 = arith.addf %258, %262 : vector<16x64xf32>
    %cst_125 = arith.constant 0.797884583 : f32
    %264 = vector.broadcast %cst_125 : f32 to vector<16x64xf32>
    %265 = arith.mulf %264, %263 : vector<16x64xf32>
    %266 = math.tanh %265 : vector<16x64xf32>
    %cst_126 = arith.constant 1.000000e+00 : f32
    %267 = vector.broadcast %cst_126 : f32 to vector<16x64xf32>
    %268 = arith.addf %267, %266 : vector<16x64xf32>
    %cst_127 = arith.constant 5.000000e-01 : f32
    %269 = vector.broadcast %cst_127 : f32 to vector<16x64xf32>
    %270 = arith.mulf %269, %268 : vector<16x64xf32>
    %271 = arith.mulf %258, %270 : vector<16x64xf32>
    %cst_128 = arith.constant dense<0.000000e+00> : vector<16x32xf32>
    %272 = tpu.matmul %271, %49, %cst_128 {dimension_numbers = #tpu.dot_dimension_numbers<[1], [0], [0], [1], [0, 0, 1, 1], [], []>} : vector<16x64xf32>, vector<64x32xf32>, vector<16x32xf32> -> vector<16x32xf32>
    %273 = vector.broadcast %47 : vector<1x32xf32> to vector<16x32xf32>
    %274 = arith.addf %272, %273 : vector<16x32xf32>
    %275 = arith.addf %255, %274 : vector<16x32xf32>
    %cst_129 = arith.constant dense<0.000000e+00> : vector<16xf32>
    %276 = vector.multi_reduction <add>, %275, %cst_129 [1] : vector<16x32xf32> to vector<16xf32>
    %277 = vector.shape_cast %276 : vector<16xf32> to vector<16x1xf32>
    %cst_130 = arith.constant 3.200000e+01 : f32
    %278 = vector.broadcast %cst_130 : f32 to vector<16x1xf32>
    %279 = arith.divf %277, %278 : vector<16x1xf32>
    %280 = arith.mulf %275, %275 : vector<16x32xf32>
    %cst_131 = arith.constant dense<0.000000e+00> : vector<16xf32>
    %281 = vector.multi_reduction <add>, %280, %cst_131 [1] : vector<16x32xf32> to vector<16xf32>
    %282 = vector.shape_cast %281 : vector<16xf32> to vector<16x1xf32>
    %cst_132 = arith.constant 3.200000e+01 : f32
    %283 = vector.broadcast %cst_132 : f32 to vector<16x1xf32>
    %284 = arith.divf %282, %283 : vector<16x1xf32>
    %285 = arith.mulf %279, %279 : vector<16x1xf32>
    %286 = arith.subf %284, %285 : vector<16x1xf32>
    %cst_133 = arith.constant 9.99999997E-7 : f32
    %287 = vector.broadcast %cst_133 : f32 to vector<16x1xf32>
    %288 = arith.addf %286, %287 : vector<16x1xf32>
    %289 = math.rsqrt %288 : vector<16x1xf32>
    %290 = vector.broadcast %279 : vector<16x1xf32> to vector<16x32xf32>
    %291 = arith.subf %275, %290 : vector<16x32xf32>
    %292 = vector.broadcast %289 : vector<16x1xf32> to vector<16x32xf32>
    %293 = arith.mulf %291, %292 : vector<16x32xf32>
    %294 = vector.broadcast %53 : vector<1x32xf32> to vector<16x32xf32>
    %295 = arith.mulf %293, %294 : vector<16x32xf32>
    %296 = vector.broadcast %52 : vector<1x32xf32> to vector<16x32xf32>
    %297 = arith.addf %295, %296 : vector<16x32xf32>
    %cst_134 = arith.constant dense<0.000000e+00> : vector<16x96xf32>
    %298 = tpu.matmul %297, %57, %cst_134 {dimension_numbers = #tpu.dot_dimension_numbers<[1], [0], [0], [1], [0, 0, 1, 1], [], []>} : vector<16x32xf32>, vector<32x96xf32>, vector<16x96xf32> -> vector<16x96xf32>
    %299 = vector.broadcast %55 : vector<1x96xf32> to vector<16x96xf32>
    %300 = arith.addf %298, %299 : vector<16x96xf32>
    %301 = vector.extract_strided_slice %300 {offsets = [0, 0], sizes = [16, 32], strides = [1, 1]} : vector<16x96xf32> to vector<16x32xf32>
    %302 = vector.extract_strided_slice %300 {offsets = [0, 32], sizes = [16, 32], strides = [1, 1]} : vector<16x96xf32> to vector<16x32xf32>
    %303 = vector.extract_strided_slice %300 {offsets = [0, 64], sizes = [16, 32], strides = [1, 1]} : vector<16x96xf32> to vector<16x32xf32>
    %304 = tpu.concatenate %301, %301, %301, %301 in 0 : vector<16x32xf32>, vector<16x32xf32>, vector<16x32xf32>, vector<16x32xf32> -> vector<64x32xf32>
    %305 = tpu.concatenate %302, %302, %302, %302 in 0 : vector<16x32xf32>, vector<16x32xf32>, vector<16x32xf32>, vector<16x32xf32> -> vector<64x32xf32>
    %306 = arith.mulf %305, %158 : vector<64x32xf32>
    %307 = tpu.concatenate %303, %303, %303, %303 in 0 : vector<16x32xf32>, vector<16x32xf32>, vector<16x32xf32>, vector<16x32xf32> -> vector<64x32xf32>
    %308 = arith.mulf %307, %158 : vector<64x32xf32>
    %cst_135 = arith.constant dense<0.000000e+00> : vector<64x64xf32>
    %309 = tpu.matmul %304, %306, %cst_135 {dimension_numbers = #tpu.dot_dimension_numbers<[1], [1], [0], [0], [0, 0, 1, 0], [], []>} : vector<64x32xf32>, vector<64x32xf32>, vector<64x64xf32> -> vector<64x64xf32>
    %cst_136 = arith.constant 0.353553385 : f32
    %310 = vector.broadcast %cst_136 : f32 to vector<64x64xf32>
    %311 = arith.mulf %309, %310 : vector<64x64xf32>
    %312 = arith.addf %311, %101 : vector<64x64xf32>
    %cst_137 = arith.constant dense<0xFF800000> : vector<64xf32>
    %313 = vector.multi_reduction <maximumf>, %312, %cst_137 [1] : vector<64x64xf32> to vector<64xf32>
    %314 = vector.shape_cast %313 : vector<64xf32> to vector<64x1xf32>
    %315 = vector.broadcast %314 : vector<64x1xf32> to vector<64x64xf32>
    %316 = arith.subf %312, %315 : vector<64x64xf32>
    %317 = math.exp %316 : vector<64x64xf32>
    %cst_138 = arith.constant dense<0.000000e+00> : vector<64xf32>
    %318 = vector.multi_reduction <add>, %317, %cst_138 [1] : vector<64x64xf32> to vector<64xf32>
    %319 = vector.shape_cast %318 : vector<64xf32> to vector<64x1xf32>
    %320 = tpu.reciprocal %319 {approx = true} : vector<64x1xf32> -> vector<64x1xf32>
    %321 = vector.broadcast %320 : vector<64x1xf32> to vector<64x64xf32>
    %322 = arith.mulf %317, %321 : vector<64x64xf32>
    %cst_139 = arith.constant dense<0.000000e+00> : vector<64x32xf32>
    %323 = tpu.matmul %322, %308, %cst_139 {dimension_numbers = #tpu.dot_dimension_numbers<[1], [0], [0], [1], [0, 0, 1, 1], [], []>} : vector<64x64xf32>, vector<64x32xf32>, vector<64x32xf32> -> vector<64x32xf32>
    %cst_140 = arith.constant dense<0.000000e+00> : vector<64x32xf32>
    %324 = tpu.matmul %323, %56, %cst_140 {dimension_numbers = #tpu.dot_dimension_numbers<[1], [0], [0], [1], [0, 0, 1, 1], [], []>} : vector<64x32xf32>, vector<32x32xf32>, vector<64x32xf32> -> vector<64x32xf32>
    %325 = vector.extract_strided_slice %324 {offsets = [0, 0], sizes = [16, 32], strides = [1, 1]} : vector<64x32xf32> to vector<16x32xf32>
    %326 = vector.extract_strided_slice %324 {offsets = [16, 0], sizes = [16, 32], strides = [1, 1]} : vector<64x32xf32> to vector<16x32xf32>
    %327 = arith.addf %325, %326 : vector<16x32xf32>
    %328 = vector.extract_strided_slice %324 {offsets = [32, 0], sizes = [16, 32], strides = [1, 1]} : vector<64x32xf32> to vector<16x32xf32>
    %329 = arith.addf %327, %328 : vector<16x32xf32>
    %330 = vector.extract_strided_slice %324 {offsets = [48, 0], sizes = [16, 32], strides = [1, 1]} : vector<64x32xf32> to vector<16x32xf32>
    %331 = arith.addf %329, %330 : vector<16x32xf32>
    %332 = vector.broadcast %54 : vector<1x32xf32> to vector<16x32xf32>
    %333 = arith.addf %331, %332 : vector<16x32xf32>
    %334 = arith.addf %297, %333 : vector<16x32xf32>
    %cst_141 = arith.constant dense<0.000000e+00> : vector<16xf32>
    %335 = vector.multi_reduction <add>, %334, %cst_141 [1] : vector<16x32xf32> to vector<16xf32>
    %336 = vector.shape_cast %335 : vector<16xf32> to vector<16x1xf32>
    %cst_142 = arith.constant 3.200000e+01 : f32
    %337 = vector.broadcast %cst_142 : f32 to vector<16x1xf32>
    %338 = arith.divf %336, %337 : vector<16x1xf32>
    %339 = arith.mulf %334, %334 : vector<16x32xf32>
    %cst_143 = arith.constant dense<0.000000e+00> : vector<16xf32>
    %340 = vector.multi_reduction <add>, %339, %cst_143 [1] : vector<16x32xf32> to vector<16xf32>
    %341 = vector.shape_cast %340 : vector<16xf32> to vector<16x1xf32>
    %cst_144 = arith.constant 3.200000e+01 : f32
    %342 = vector.broadcast %cst_144 : f32 to vector<16x1xf32>
    %343 = arith.divf %341, %342 : vector<16x1xf32>
    %344 = arith.mulf %338, %338 : vector<16x1xf32>
    %345 = arith.subf %343, %344 : vector<16x1xf32>
    %cst_145 = arith.constant 9.99999997E-7 : f32
    %346 = vector.broadcast %cst_145 : f32 to vector<16x1xf32>
    %347 = arith.addf %345, %346 : vector<16x1xf32>
    %348 = math.rsqrt %347 : vector<16x1xf32>
    %349 = vector.broadcast %338 : vector<16x1xf32> to vector<16x32xf32>
    %350 = arith.subf %334, %349 : vector<16x32xf32>
    %351 = vector.broadcast %348 : vector<16x1xf32> to vector<16x32xf32>
    %352 = arith.mulf %350, %351 : vector<16x32xf32>
    %353 = vector.broadcast %63 : vector<1x32xf32> to vector<16x32xf32>
    %354 = arith.mulf %352, %353 : vector<16x32xf32>
    %355 = vector.broadcast %62 : vector<1x32xf32> to vector<16x32xf32>
    %356 = arith.addf %354, %355 : vector<16x32xf32>
    %cst_146 = arith.constant dense<0.000000e+00> : vector<16x64xf32>
    %357 = tpu.matmul %356, %60, %cst_146 {dimension_numbers = #tpu.dot_dimension_numbers<[1], [0], [0], [1], [0, 0, 1, 1], [], []>} : vector<16x32xf32>, vector<32x64xf32>, vector<16x64xf32> -> vector<16x64xf32>
    %358 = vector.broadcast %58 : vector<1x64xf32> to vector<16x64xf32>
    %359 = arith.addf %357, %358 : vector<16x64xf32>
    %360 = arith.mulf %359, %359 : vector<16x64xf32>
    %361 = arith.mulf %359, %360 : vector<16x64xf32>
    %cst_147 = arith.constant 4.471500e-02 : f32
    %362 = vector.broadcast %cst_147 : f32 to vector<16x64xf32>
    %363 = arith.mulf %362, %361 : vector<16x64xf32>
    %364 = arith.addf %359, %363 : vector<16x64xf32>
    %cst_148 = arith.constant 0.797884583 : f32
    %365 = vector.broadcast %cst_148 : f32 to vector<16x64xf32>
    %366 = arith.mulf %365, %364 : vector<16x64xf32>
    %367 = math.tanh %366 : vector<16x64xf32>
    %cst_149 = arith.constant 1.000000e+00 : f32
    %368 = vector.broadcast %cst_149 : f32 to vector<16x64xf32>
    %369 = arith.addf %368, %367 : vector<16x64xf32>
    %cst_150 = arith.constant 5.000000e-01 : f32
    %370 = vector.broadcast %cst_150 : f32 to vector<16x64xf32>
    %371 = arith.mulf %370, %369 : vector<16x64xf32>
    %372 = arith.mulf %359, %371 : vector<16x64xf32>
    %cst_151 = arith.constant dense<0.000000e+00> : vector<16x32xf32>
    %373 = tpu.matmul %372, %61, %cst_151 {dimension_numbers = #tpu.dot_dimension_numbers<[1], [0], [0], [1], [0, 0, 1, 1], [], []>} : vector<16x64xf32>, vector<64x32xf32>, vector<16x32xf32> -> vector<16x32xf32>
    %374 = vector.broadcast %59 : vector<1x32xf32> to vector<16x32xf32>
    %375 = arith.addf %373, %374 : vector<16x32xf32>
    %376 = arith.addf %356, %375 : vector<16x32xf32>
    %cst_152 = arith.constant dense<0.000000e+00> : vector<16xf32>
    %377 = vector.multi_reduction <add>, %376, %cst_152 [1] : vector<16x32xf32> to vector<16xf32>
    %378 = vector.shape_cast %377 : vector<16xf32> to vector<16x1xf32>
    %cst_153 = arith.constant 3.200000e+01 : f32
    %379 = vector.broadcast %cst_153 : f32 to vector<16x1xf32>
    %380 = arith.divf %378, %379 : vector<16x1xf32>
    %381 = arith.mulf %376, %376 : vector<16x32xf32>
    %cst_154 = arith.constant dense<0.000000e+00> : vector<16xf32>
    %382 = vector.multi_reduction <add>, %381, %cst_154 [1] : vector<16x32xf32> to vector<16xf32>
    %383 = vector.shape_cast %382 : vector<16xf32> to vector<16x1xf32>
    %cst_155 = arith.constant 3.200000e+01 : f32
    %384 = vector.broadcast %cst_155 : f32 to vector<16x1xf32>
    %385 = arith.divf %383, %384 : vector<16x1xf32>
    %386 = arith.mulf %380, %380 : vector<16x1xf32>
    %387 = arith.subf %385, %386 : vector<16x1xf32>
    %cst_156 = arith.constant 9.99999997E-7 : f32
    %388 = vector.broadcast %cst_156 : f32 to vector<16x1xf32>
    %389 = arith.addf %387, %388 : vector<16x1xf32>
    %390 = math.rsqrt %389 : vector<16x1xf32>
    %391 = vector.broadcast %380 : vector<16x1xf32> to vector<16x32xf32>
    %392 = arith.subf %376, %391 : vector<16x32xf32>
    %393 = vector.broadcast %390 : vector<16x1xf32> to vector<16x32xf32>
    %394 = arith.mulf %392, %393 : vector<16x32xf32>
    %395 = vector.broadcast %65 : vector<1x32xf32> to vector<16x32xf32>
    %396 = arith.mulf %394, %395 : vector<16x32xf32>
    %397 = vector.broadcast %64 : vector<1x32xf32> to vector<16x32xf32>
    %398 = arith.addf %396, %397 : vector<16x32xf32>
    %399 = tpu.iota {dimensions = array<i32: 1>} : vector<16x64xi32>
    %400 = vector.broadcast %74 : vector<16x1xi32> to vector<16x64xi32>
    %401 = arith.cmpi eq, %399, %400 : vector<16x64xi32>
    %402 = arith.extui %401 : vector<16x64xi1> to vector<16x64xi32>
    %403 = arith.sitofp %402 : vector<16x64xi32> to vector<16x64xf32>
    %cst_157 = arith.constant dense<0.000000e+00> : vector<16x32xf32>
    %404 = tpu.matmul %403, %71, %cst_157 {dimension_numbers = #tpu.dot_dimension_numbers<[1], [0], [0], [1], [0, 0, 1, 1], [], []>} : vector<16x64xf32>, vector<64x32xf32>, vector<16x32xf32> -> vector<16x32xf32>
    %405 = arith.addf %404, %68 : vector<16x32xf32>
    %cst_158 = arith.constant dense<0.000000e+00> : vector<16xf32>
    %406 = vector.multi_reduction <add>, %405, %cst_158 [1] : vector<16x32xf32> to vector<16xf32>
    %407 = vector.shape_cast %406 : vector<16xf32> to vector<16x1xf32>
    %cst_159 = arith.constant 3.200000e+01 : f32
    %408 = vector.broadcast %cst_159 : f32 to vector<16x1xf32>
    %409 = arith.divf %407, %408 : vector<16x1xf32>
    %410 = arith.mulf %405, %405 : vector<16x32xf32>
    %cst_160 = arith.constant dense<0.000000e+00> : vector<16xf32>
    %411 = vector.multi_reduction <add>, %410, %cst_160 [1] : vector<16x32xf32> to vector<16xf32>
    %412 = vector.shape_cast %411 : vector<16xf32> to vector<16x1xf32>
    %cst_161 = arith.constant 3.200000e+01 : f32
    %413 = vector.broadcast %cst_161 : f32 to vector<16x1xf32>
    %414 = arith.divf %412, %413 : vector<16x1xf32>
    %415 = arith.mulf %409, %409 : vector<16x1xf32>
    %416 = arith.subf %414, %415 : vector<16x1xf32>
    %cst_162 = arith.constant 9.99999997E-7 : f32
    %417 = vector.broadcast %cst_162 : f32 to vector<16x1xf32>
    %418 = arith.addf %416, %417 : vector<16x1xf32>
    %419 = math.rsqrt %418 : vector<16x1xf32>
    %420 = vector.broadcast %409 : vector<16x1xf32> to vector<16x32xf32>
    %421 = arith.subf %405, %420 : vector<16x32xf32>
    %422 = vector.broadcast %419 : vector<16x1xf32> to vector<16x32xf32>
    %423 = arith.mulf %421, %422 : vector<16x32xf32>
    %424 = vector.broadcast %70 : vector<1x32xf32> to vector<16x32xf32>
    %425 = arith.mulf %423, %424 : vector<16x32xf32>
    %426 = vector.broadcast %69 : vector<1x32xf32> to vector<16x32xf32>
    %427 = arith.addf %425, %426 : vector<16x32xf32>
    %cst_163 = arith.constant dense<0.000000e+00> : vector<16x96xf32>
    %428 = tpu.matmul %427, %19, %cst_163 {dimension_numbers = #tpu.dot_dimension_numbers<[1], [0], [0], [1], [0, 0, 1, 1], [], []>} : vector<16x32xf32>, vector<32x96xf32>, vector<16x96xf32> -> vector<16x96xf32>
    %429 = vector.broadcast %17 : vector<1x96xf32> to vector<16x96xf32>
    %430 = arith.addf %428, %429 : vector<16x96xf32>
    %431 = vector.extract_strided_slice %430 {offsets = [0, 0], sizes = [16, 32], strides = [1, 1]} : vector<16x96xf32> to vector<16x32xf32>
    %432 = vector.extract_strided_slice %430 {offsets = [0, 32], sizes = [16, 32], strides = [1, 1]} : vector<16x96xf32> to vector<16x32xf32>
    %433 = vector.extract_strided_slice %430 {offsets = [0, 64], sizes = [16, 32], strides = [1, 1]} : vector<16x96xf32> to vector<16x32xf32>
    %434 = tpu.concatenate %431, %431, %431, %431 in 0 : vector<16x32xf32>, vector<16x32xf32>, vector<16x32xf32>, vector<16x32xf32> -> vector<64x32xf32>
    %435 = tpu.concatenate %432, %432, %432, %432 in 0 : vector<16x32xf32>, vector<16x32xf32>, vector<16x32xf32>, vector<16x32xf32> -> vector<64x32xf32>
    %436 = arith.mulf %435, %167 : vector<64x32xf32>
    %437 = tpu.concatenate %433, %433, %433, %433 in 0 : vector<16x32xf32>, vector<16x32xf32>, vector<16x32xf32>, vector<16x32xf32> -> vector<64x32xf32>
    %438 = arith.mulf %437, %167 : vector<64x32xf32>
    %cst_164 = arith.constant dense<0.000000e+00> : vector<64x64xf32>
    %439 = tpu.matmul %434, %436, %cst_164 {dimension_numbers = #tpu.dot_dimension_numbers<[1], [1], [0], [0], [0, 0, 1, 0], [], []>} : vector<64x32xf32>, vector<64x32xf32>, vector<64x64xf32> -> vector<64x64xf32>
    %cst_165 = arith.constant 0.353553385 : f32
    %440 = vector.broadcast %cst_165 : f32 to vector<64x64xf32>
    %441 = arith.mulf %439, %440 : vector<64x64xf32>
    %442 = arith.addf %441, %127 : vector<64x64xf32>
    %cst_166 = arith.constant dense<0xFF800000> : vector<64xf32>
    %443 = vector.multi_reduction <maximumf>, %442, %cst_166 [1] : vector<64x64xf32> to vector<64xf32>
    %444 = vector.shape_cast %443 : vector<64xf32> to vector<64x1xf32>
    %445 = vector.broadcast %444 : vector<64x1xf32> to vector<64x64xf32>
    %446 = arith.subf %442, %445 : vector<64x64xf32>
    %447 = math.exp %446 : vector<64x64xf32>
    %cst_167 = arith.constant dense<0.000000e+00> : vector<64xf32>
    %448 = vector.multi_reduction <add>, %447, %cst_167 [1] : vector<64x64xf32> to vector<64xf32>
    %449 = vector.shape_cast %448 : vector<64xf32> to vector<64x1xf32>
    %450 = tpu.reciprocal %449 {approx = true} : vector<64x1xf32> -> vector<64x1xf32>
    %451 = vector.broadcast %450 : vector<64x1xf32> to vector<64x64xf32>
    %452 = arith.mulf %447, %451 : vector<64x64xf32>
    %cst_168 = arith.constant dense<0.000000e+00> : vector<64x32xf32>
    %453 = tpu.matmul %452, %438, %cst_168 {dimension_numbers = #tpu.dot_dimension_numbers<[1], [0], [0], [1], [0, 0, 1, 1], [], []>} : vector<64x64xf32>, vector<64x32xf32>, vector<64x32xf32> -> vector<64x32xf32>
    %cst_169 = arith.constant dense<0.000000e+00> : vector<64x32xf32>
    %454 = tpu.matmul %453, %18, %cst_169 {dimension_numbers = #tpu.dot_dimension_numbers<[1], [0], [0], [1], [0, 0, 1, 1], [], []>} : vector<64x32xf32>, vector<32x32xf32>, vector<64x32xf32> -> vector<64x32xf32>
    %455 = vector.extract_strided_slice %454 {offsets = [0, 0], sizes = [16, 32], strides = [1, 1]} : vector<64x32xf32> to vector<16x32xf32>
    %456 = vector.extract_strided_slice %454 {offsets = [16, 0], sizes = [16, 32], strides = [1, 1]} : vector<64x32xf32> to vector<16x32xf32>
    %457 = arith.addf %455, %456 : vector<16x32xf32>
    %458 = vector.extract_strided_slice %454 {offsets = [32, 0], sizes = [16, 32], strides = [1, 1]} : vector<64x32xf32> to vector<16x32xf32>
    %459 = arith.addf %457, %458 : vector<16x32xf32>
    %460 = vector.extract_strided_slice %454 {offsets = [48, 0], sizes = [16, 32], strides = [1, 1]} : vector<64x32xf32> to vector<16x32xf32>
    %461 = arith.addf %459, %460 : vector<16x32xf32>
    %462 = vector.broadcast %16 : vector<1x32xf32> to vector<16x32xf32>
    %463 = arith.addf %461, %462 : vector<16x32xf32>
    %464 = arith.addf %427, %463 : vector<16x32xf32>
    %cst_170 = arith.constant dense<0.000000e+00> : vector<16xf32>
    %465 = vector.multi_reduction <add>, %464, %cst_170 [1] : vector<16x32xf32> to vector<16xf32>
    %466 = vector.shape_cast %465 : vector<16xf32> to vector<16x1xf32>
    %cst_171 = arith.constant 3.200000e+01 : f32
    %467 = vector.broadcast %cst_171 : f32 to vector<16x1xf32>
    %468 = arith.divf %466, %467 : vector<16x1xf32>
    %469 = arith.mulf %464, %464 : vector<16x32xf32>
    %cst_172 = arith.constant dense<0.000000e+00> : vector<16xf32>
    %470 = vector.multi_reduction <add>, %469, %cst_172 [1] : vector<16x32xf32> to vector<16xf32>
    %471 = vector.shape_cast %470 : vector<16xf32> to vector<16x1xf32>
    %cst_173 = arith.constant 3.200000e+01 : f32
    %472 = vector.broadcast %cst_173 : f32 to vector<16x1xf32>
    %473 = arith.divf %471, %472 : vector<16x1xf32>
    %474 = arith.mulf %468, %468 : vector<16x1xf32>
    %475 = arith.subf %473, %474 : vector<16x1xf32>
    %cst_174 = arith.constant 9.99999997E-7 : f32
    %476 = vector.broadcast %cst_174 : f32 to vector<16x1xf32>
    %477 = arith.addf %475, %476 : vector<16x1xf32>
    %478 = math.rsqrt %477 : vector<16x1xf32>
    %479 = vector.broadcast %468 : vector<16x1xf32> to vector<16x32xf32>
    %480 = arith.subf %464, %479 : vector<16x32xf32>
    %481 = vector.broadcast %478 : vector<16x1xf32> to vector<16x32xf32>
    %482 = arith.mulf %480, %481 : vector<16x32xf32>
    %483 = vector.broadcast %11 : vector<1x32xf32> to vector<16x32xf32>
    %484 = arith.mulf %482, %483 : vector<16x32xf32>
    %485 = vector.broadcast %10 : vector<1x32xf32> to vector<16x32xf32>
    %486 = arith.addf %484, %485 : vector<16x32xf32>
    %cst_175 = arith.constant dense<0.000000e+00> : vector<16x32xf32>
    %487 = tpu.matmul %486, %5, %cst_175 {dimension_numbers = #tpu.dot_dimension_numbers<[1], [0], [0], [1], [0, 0, 1, 1], [], []>} : vector<16x32xf32>, vector<32x32xf32>, vector<16x32xf32> -> vector<16x32xf32>
    %488 = vector.broadcast %2 : vector<1x32xf32> to vector<16x32xf32>
    %489 = arith.addf %487, %488 : vector<16x32xf32>
    %cst_176 = arith.constant dense<0.000000e+00> : vector<16x64xf32>
    %490 = tpu.matmul %398, %3, %cst_176 {dimension_numbers = #tpu.dot_dimension_numbers<[1], [0], [0], [1], [0, 0, 1, 1], [], []>} : vector<16x32xf32>, vector<32x64xf32>, vector<16x64xf32> -> vector<16x64xf32>
    %491 = vector.broadcast %0 : vector<1x64xf32> to vector<16x64xf32>
    %492 = arith.addf %490, %491 : vector<16x64xf32>
    %493 = vector.extract_strided_slice %492 {offsets = [0, 0], sizes = [16, 32], strides = [1, 1]} : vector<16x64xf32> to vector<16x32xf32>
    %494 = vector.extract_strided_slice %492 {offsets = [0, 32], sizes = [16, 32], strides = [1, 1]} : vector<16x64xf32> to vector<16x32xf32>
    %495 = tpu.concatenate %489, %489, %489, %489 in 0 : vector<16x32xf32>, vector<16x32xf32>, vector<16x32xf32>, vector<16x32xf32> -> vector<64x32xf32>
    %496 = tpu.concatenate %493, %493, %493, %493 in 0 : vector<16x32xf32>, vector<16x32xf32>, vector<16x32xf32>, vector<16x32xf32> -> vector<64x32xf32>
    %497 = arith.mulf %496, %158 : vector<64x32xf32>
    %498 = tpu.concatenate %494, %494, %494, %494 in 0 : vector<16x32xf32>, vector<16x32xf32>, vector<16x32xf32>, vector<16x32xf32> -> vector<64x32xf32>
    %499 = arith.mulf %498, %158 : vector<64x32xf32>
    %cst_177 = arith.constant dense<0.000000e+00> : vector<64x64xf32>
    %500 = tpu.matmul %495, %497, %cst_177 {dimension_numbers = #tpu.dot_dimension_numbers<[1], [1], [0], [0], [0, 0, 1, 0], [], []>} : vector<64x32xf32>, vector<64x32xf32>, vector<64x64xf32> -> vector<64x64xf32>
    %cst_178 = arith.constant 0.353553385 : f32
    %501 = vector.broadcast %cst_178 : f32 to vector<64x64xf32>
    %502 = arith.mulf %500, %501 : vector<64x64xf32>
    %503 = arith.addf %502, %149 : vector<64x64xf32>
    %cst_179 = arith.constant dense<0xFF800000> : vector<64xf32>
    %504 = vector.multi_reduction <maximumf>, %503, %cst_179 [1] : vector<64x64xf32> to vector<64xf32>
    %505 = vector.shape_cast %504 : vector<64xf32> to vector<64x1xf32>
    %506 = vector.broadcast %505 : vector<64x1xf32> to vector<64x64xf32>
    %507 = arith.subf %503, %506 : vector<64x64xf32>
    %508 = math.exp %507 : vector<64x64xf32>
    %cst_180 = arith.constant dense<0.000000e+00> : vector<64xf32>
    %509 = vector.multi_reduction <add>, %508, %cst_180 [1] : vector<64x64xf32> to vector<64xf32>
    %510 = vector.shape_cast %509 : vector<64xf32> to vector<64x1xf32>
    %511 = tpu.reciprocal %510 {approx = true} : vector<64x1xf32> -> vector<64x1xf32>
    %512 = vector.broadcast %511 : vector<64x1xf32> to vector<64x64xf32>
    %513 = arith.mulf %508, %512 : vector<64x64xf32>
    %cst_181 = arith.constant dense<0.000000e+00> : vector<64x32xf32>
    %514 = tpu.matmul %513, %499, %cst_181 {dimension_numbers = #tpu.dot_dimension_numbers<[1], [0], [0], [1], [0, 0, 1, 1], [], []>} : vector<64x64xf32>, vector<64x32xf32>, vector<64x32xf32> -> vector<64x32xf32>
    %cst_182 = arith.constant dense<0.000000e+00> : vector<64x32xf32>
    %515 = tpu.matmul %514, %4, %cst_182 {dimension_numbers = #tpu.dot_dimension_numbers<[1], [0], [0], [1], [0, 0, 1, 1], [], []>} : vector<64x32xf32>, vector<32x32xf32>, vector<64x32xf32> -> vector<64x32xf32>
    %516 = vector.extract_strided_slice %515 {offsets = [0, 0], sizes = [16, 32], strides = [1, 1]} : vector<64x32xf32> to vector<16x32xf32>
    %517 = vector.extract_strided_slice %515 {offsets = [16, 0], sizes = [16, 32], strides = [1, 1]} : vector<64x32xf32> to vector<16x32xf32>
    %518 = arith.addf %516, %517 : vector<16x32xf32>
    %519 = vector.extract_strided_slice %515 {offsets = [32, 0], sizes = [16, 32], strides = [1, 1]} : vector<64x32xf32> to vector<16x32xf32>
    %520 = arith.addf %518, %519 : vector<16x32xf32>
    %521 = vector.extract_strided_slice %515 {offsets = [48, 0], sizes = [16, 32], strides = [1, 1]} : vector<64x32xf32> to vector<16x32xf32>
    %522 = arith.addf %520, %521 : vector<16x32xf32>
    %523 = vector.broadcast %1 : vector<1x32xf32> to vector<16x32xf32>
    %524 = arith.addf %522, %523 : vector<16x32xf32>
    %525 = arith.addf %486, %524 : vector<16x32xf32>
    %cst_183 = arith.constant dense<0.000000e+00> : vector<16xf32>
    %526 = vector.multi_reduction <add>, %525, %cst_183 [1] : vector<16x32xf32> to vector<16xf32>
    %527 = vector.shape_cast %526 : vector<16xf32> to vector<16x1xf32>
    %cst_184 = arith.constant 3.200000e+01 : f32
    %528 = vector.broadcast %cst_184 : f32 to vector<16x1xf32>
    %529 = arith.divf %527, %528 : vector<16x1xf32>
    %530 = arith.mulf %525, %525 : vector<16x32xf32>
    %cst_185 = arith.constant dense<0.000000e+00> : vector<16xf32>
    %531 = vector.multi_reduction <add>, %530, %cst_185 [1] : vector<16x32xf32> to vector<16xf32>
    %532 = vector.shape_cast %531 : vector<16xf32> to vector<16x1xf32>
    %cst_186 = arith.constant 3.200000e+01 : f32
    %533 = vector.broadcast %cst_186 : f32 to vector<16x1xf32>
    %534 = arith.divf %532, %533 : vector<16x1xf32>
    %535 = arith.mulf %529, %529 : vector<16x1xf32>
    %536 = arith.subf %534, %535 : vector<16x1xf32>
    %cst_187 = arith.constant 9.99999997E-7 : f32
    %537 = vector.broadcast %cst_187 : f32 to vector<16x1xf32>
    %538 = arith.addf %536, %537 : vector<16x1xf32>
    %539 = math.rsqrt %538 : vector<16x1xf32>
    %540 = vector.broadcast %529 : vector<16x1xf32> to vector<16x32xf32>
    %541 = arith.subf %525, %540 : vector<16x32xf32>
    %542 = vector.broadcast %539 : vector<16x1xf32> to vector<16x32xf32>
    %543 = arith.mulf %541, %542 : vector<16x32xf32>
    %544 = vector.broadcast %13 : vector<1x32xf32> to vector<16x32xf32>
    %545 = arith.mulf %543, %544 : vector<16x32xf32>
    %546 = vector.broadcast %12 : vector<1x32xf32> to vector<16x32xf32>
    %547 = arith.addf %545, %546 : vector<16x32xf32>
    %cst_188 = arith.constant dense<0.000000e+00> : vector<16x64xf32>
    %548 = tpu.matmul %547, %8, %cst_188 {dimension_numbers = #tpu.dot_dimension_numbers<[1], [0], [0], [1], [0, 0, 1, 1], [], []>} : vector<16x32xf32>, vector<32x64xf32>, vector<16x64xf32> -> vector<16x64xf32>
    %549 = vector.broadcast %6 : vector<1x64xf32> to vector<16x64xf32>
    %550 = arith.addf %548, %549 : vector<16x64xf32>
    %551 = arith.mulf %550, %550 : vector<16x64xf32>
    %552 = arith.mulf %550, %551 : vector<16x64xf32>
    %cst_189 = arith.constant 4.471500e-02 : f32
    %553 = vector.broadcast %cst_189 : f32 to vector<16x64xf32>
    %554 = arith.mulf %553, %552 : vector<16x64xf32>
    %555 = arith.addf %550, %554 : vector<16x64xf32>
    %cst_190 = arith.constant 0.797884583 : f32
    %556 = vector.broadcast %cst_190 : f32 to vector<16x64xf32>
    %557 = arith.mulf %556, %555 : vector<16x64xf32>
    %558 = math.tanh %557 : vector<16x64xf32>
    %cst_191 = arith.constant 1.000000e+00 : f32
    %559 = vector.broadcast %cst_191 : f32 to vector<16x64xf32>
    %560 = arith.addf %559, %558 : vector<16x64xf32>
    %cst_192 = arith.constant 5.000000e-01 : f32
    %561 = vector.broadcast %cst_192 : f32 to vector<16x64xf32>
    %562 = arith.mulf %561, %560 : vector<16x64xf32>
    %563 = arith.mulf %550, %562 : vector<16x64xf32>
    %cst_193 = arith.constant dense<0.000000e+00> : vector<16x32xf32>
    %564 = tpu.matmul %563, %9, %cst_193 {dimension_numbers = #tpu.dot_dimension_numbers<[1], [0], [0], [1], [0, 0, 1, 1], [], []>} : vector<16x64xf32>, vector<64x32xf32>, vector<16x32xf32> -> vector<16x32xf32>
    %565 = vector.broadcast %7 : vector<1x32xf32> to vector<16x32xf32>
    %566 = arith.addf %564, %565 : vector<16x32xf32>
    %567 = arith.addf %547, %566 : vector<16x32xf32>
    %cst_194 = arith.constant dense<0.000000e+00> : vector<16xf32>
    %568 = vector.multi_reduction <add>, %567, %cst_194 [1] : vector<16x32xf32> to vector<16xf32>
    %569 = vector.shape_cast %568 : vector<16xf32> to vector<16x1xf32>
    %cst_195 = arith.constant 3.200000e+01 : f32
    %570 = vector.broadcast %cst_195 : f32 to vector<16x1xf32>
    %571 = arith.divf %569, %570 : vector<16x1xf32>
    %572 = arith.mulf %567, %567 : vector<16x32xf32>
    %cst_196 = arith.constant dense<0.000000e+00> : vector<16xf32>
    %573 = vector.multi_reduction <add>, %572, %cst_196 [1] : vector<16x32xf32> to vector<16xf32>
    %574 = vector.shape_cast %573 : vector<16xf32> to vector<16x1xf32>
    %cst_197 = arith.constant 3.200000e+01 : f32
    %575 = vector.broadcast %cst_197 : f32 to vector<16x1xf32>
    %576 = arith.divf %574, %575 : vector<16x1xf32>
    %577 = arith.mulf %571, %571 : vector<16x1xf32>
    %578 = arith.subf %576, %577 : vector<16x1xf32>
    %cst_198 = arith.constant 9.99999997E-7 : f32
    %579 = vector.broadcast %cst_198 : f32 to vector<16x1xf32>
    %580 = arith.addf %578, %579 : vector<16x1xf32>
    %581 = math.rsqrt %580 : vector<16x1xf32>
    %582 = vector.broadcast %571 : vector<16x1xf32> to vector<16x32xf32>
    %583 = arith.subf %567, %582 : vector<16x32xf32>
    %584 = vector.broadcast %581 : vector<16x1xf32> to vector<16x32xf32>
    %585 = arith.mulf %583, %584 : vector<16x32xf32>
    %586 = vector.broadcast %15 : vector<1x32xf32> to vector<16x32xf32>
    %587 = arith.mulf %585, %586 : vector<16x32xf32>
    %588 = vector.broadcast %14 : vector<1x32xf32> to vector<16x32xf32>
    %589 = arith.addf %587, %588 : vector<16x32xf32>
    %cst_199 = arith.constant dense<0.000000e+00> : vector<16x96xf32>
    %590 = tpu.matmul %589, %39, %cst_199 {dimension_numbers = #tpu.dot_dimension_numbers<[1], [0], [0], [1], [0, 0, 1, 1], [], []>} : vector<16x32xf32>, vector<32x96xf32>, vector<16x96xf32> -> vector<16x96xf32>
    %591 = vector.broadcast %37 : vector<1x96xf32> to vector<16x96xf32>
    %592 = arith.addf %590, %591 : vector<16x96xf32>
    %593 = vector.extract_strided_slice %592 {offsets = [0, 0], sizes = [16, 32], strides = [1, 1]} : vector<16x96xf32> to vector<16x32xf32>
    %594 = vector.extract_strided_slice %592 {offsets = [0, 32], sizes = [16, 32], strides = [1, 1]} : vector<16x96xf32> to vector<16x32xf32>
    %595 = vector.extract_strided_slice %592 {offsets = [0, 64], sizes = [16, 32], strides = [1, 1]} : vector<16x96xf32> to vector<16x32xf32>
    %596 = tpu.concatenate %593, %593, %593, %593 in 0 : vector<16x32xf32>, vector<16x32xf32>, vector<16x32xf32>, vector<16x32xf32> -> vector<64x32xf32>
    %597 = tpu.concatenate %594, %594, %594, %594 in 0 : vector<16x32xf32>, vector<16x32xf32>, vector<16x32xf32>, vector<16x32xf32> -> vector<64x32xf32>
    %598 = arith.mulf %597, %167 : vector<64x32xf32>
    %599 = tpu.concatenate %595, %595, %595, %595 in 0 : vector<16x32xf32>, vector<16x32xf32>, vector<16x32xf32>, vector<16x32xf32> -> vector<64x32xf32>
    %600 = arith.mulf %599, %167 : vector<64x32xf32>
    %cst_200 = arith.constant dense<0.000000e+00> : vector<64x64xf32>
    %601 = tpu.matmul %596, %598, %cst_200 {dimension_numbers = #tpu.dot_dimension_numbers<[1], [1], [0], [0], [0, 0, 1, 0], [], []>} : vector<64x32xf32>, vector<64x32xf32>, vector<64x64xf32> -> vector<64x64xf32>
    %cst_201 = arith.constant 0.353553385 : f32
    %602 = vector.broadcast %cst_201 : f32 to vector<64x64xf32>
    %603 = arith.mulf %601, %602 : vector<64x64xf32>
    %604 = arith.addf %603, %127 : vector<64x64xf32>
    %cst_202 = arith.constant dense<0xFF800000> : vector<64xf32>
    %605 = vector.multi_reduction <maximumf>, %604, %cst_202 [1] : vector<64x64xf32> to vector<64xf32>
    %606 = vector.shape_cast %605 : vector<64xf32> to vector<64x1xf32>
    %607 = vector.broadcast %606 : vector<64x1xf32> to vector<64x64xf32>
    %608 = arith.subf %604, %607 : vector<64x64xf32>
    %609 = math.exp %608 : vector<64x64xf32>
    %cst_203 = arith.constant dense<0.000000e+00> : vector<64xf32>
    %610 = vector.multi_reduction <add>, %609, %cst_203 [1] : vector<64x64xf32> to vector<64xf32>
    %611 = vector.shape_cast %610 : vector<64xf32> to vector<64x1xf32>
    %612 = tpu.reciprocal %611 {approx = true} : vector<64x1xf32> -> vector<64x1xf32>
    %613 = vector.broadcast %612 : vector<64x1xf32> to vector<64x64xf32>
    %614 = arith.mulf %609, %613 : vector<64x64xf32>
    %cst_204 = arith.constant dense<0.000000e+00> : vector<64x32xf32>
    %615 = tpu.matmul %614, %600, %cst_204 {dimension_numbers = #tpu.dot_dimension_numbers<[1], [0], [0], [1], [0, 0, 1, 1], [], []>} : vector<64x64xf32>, vector<64x32xf32>, vector<64x32xf32> -> vector<64x32xf32>
    %cst_205 = arith.constant dense<0.000000e+00> : vector<64x32xf32>
    %616 = tpu.matmul %615, %38, %cst_205 {dimension_numbers = #tpu.dot_dimension_numbers<[1], [0], [0], [1], [0, 0, 1, 1], [], []>} : vector<64x32xf32>, vector<32x32xf32>, vector<64x32xf32> -> vector<64x32xf32>
    %617 = vector.extract_strided_slice %616 {offsets = [0, 0], sizes = [16, 32], strides = [1, 1]} : vector<64x32xf32> to vector<16x32xf32>
    %618 = vector.extract_strided_slice %616 {offsets = [16, 0], sizes = [16, 32], strides = [1, 1]} : vector<64x32xf32> to vector<16x32xf32>
    %619 = arith.addf %617, %618 : vector<16x32xf32>
    %620 = vector.extract_strided_slice %616 {offsets = [32, 0], sizes = [16, 32], strides = [1, 1]} : vector<64x32xf32> to vector<16x32xf32>
    %621 = arith.addf %619, %620 : vector<16x32xf32>
    %622 = vector.extract_strided_slice %616 {offsets = [48, 0], sizes = [16, 32], strides = [1, 1]} : vector<64x32xf32> to vector<16x32xf32>
    %623 = arith.addf %621, %622 : vector<16x32xf32>
    %624 = vector.broadcast %36 : vector<1x32xf32> to vector<16x32xf32>
    %625 = arith.addf %623, %624 : vector<16x32xf32>
    %626 = arith.addf %589, %625 : vector<16x32xf32>
    %cst_206 = arith.constant dense<0.000000e+00> : vector<16xf32>
    %627 = vector.multi_reduction <add>, %626, %cst_206 [1] : vector<16x32xf32> to vector<16xf32>
    %628 = vector.shape_cast %627 : vector<16xf32> to vector<16x1xf32>
    %cst_207 = arith.constant 3.200000e+01 : f32
    %629 = vector.broadcast %cst_207 : f32 to vector<16x1xf32>
    %630 = arith.divf %628, %629 : vector<16x1xf32>
    %631 = arith.mulf %626, %626 : vector<16x32xf32>
    %cst_208 = arith.constant dense<0.000000e+00> : vector<16xf32>
    %632 = vector.multi_reduction <add>, %631, %cst_208 [1] : vector<16x32xf32> to vector<16xf32>
    %633 = vector.shape_cast %632 : vector<16xf32> to vector<16x1xf32>
    %cst_209 = arith.constant 3.200000e+01 : f32
    %634 = vector.broadcast %cst_209 : f32 to vector<16x1xf32>
    %635 = arith.divf %633, %634 : vector<16x1xf32>
    %636 = arith.mulf %630, %630 : vector<16x1xf32>
    %637 = arith.subf %635, %636 : vector<16x1xf32>
    %cst_210 = arith.constant 9.99999997E-7 : f32
    %638 = vector.broadcast %cst_210 : f32 to vector<16x1xf32>
    %639 = arith.addf %637, %638 : vector<16x1xf32>
    %640 = math.rsqrt %639 : vector<16x1xf32>
    %641 = vector.broadcast %630 : vector<16x1xf32> to vector<16x32xf32>
    %642 = arith.subf %626, %641 : vector<16x32xf32>
    %643 = vector.broadcast %640 : vector<16x1xf32> to vector<16x32xf32>
    %644 = arith.mulf %642, %643 : vector<16x32xf32>
    %645 = vector.broadcast %31 : vector<1x32xf32> to vector<16x32xf32>
    %646 = arith.mulf %644, %645 : vector<16x32xf32>
    %647 = vector.broadcast %30 : vector<1x32xf32> to vector<16x32xf32>
    %648 = arith.addf %646, %647 : vector<16x32xf32>
    %cst_211 = arith.constant dense<0.000000e+00> : vector<16x32xf32>
    %649 = tpu.matmul %648, %25, %cst_211 {dimension_numbers = #tpu.dot_dimension_numbers<[1], [0], [0], [1], [0, 0, 1, 1], [], []>} : vector<16x32xf32>, vector<32x32xf32>, vector<16x32xf32> -> vector<16x32xf32>
    %650 = vector.broadcast %22 : vector<1x32xf32> to vector<16x32xf32>
    %651 = arith.addf %649, %650 : vector<16x32xf32>
    %cst_212 = arith.constant dense<0.000000e+00> : vector<16x64xf32>
    %652 = tpu.matmul %398, %23, %cst_212 {dimension_numbers = #tpu.dot_dimension_numbers<[1], [0], [0], [1], [0, 0, 1, 1], [], []>} : vector<16x32xf32>, vector<32x64xf32>, vector<16x64xf32> -> vector<16x64xf32>
    %653 = vector.broadcast %20 : vector<1x64xf32> to vector<16x64xf32>
    %654 = arith.addf %652, %653 : vector<16x64xf32>
    %655 = vector.extract_strided_slice %654 {offsets = [0, 0], sizes = [16, 32], strides = [1, 1]} : vector<16x64xf32> to vector<16x32xf32>
    %656 = vector.extract_strided_slice %654 {offsets = [0, 32], sizes = [16, 32], strides = [1, 1]} : vector<16x64xf32> to vector<16x32xf32>
    %657 = tpu.concatenate %651, %651, %651, %651 in 0 : vector<16x32xf32>, vector<16x32xf32>, vector<16x32xf32>, vector<16x32xf32> -> vector<64x32xf32>
    %658 = tpu.concatenate %655, %655, %655, %655 in 0 : vector<16x32xf32>, vector<16x32xf32>, vector<16x32xf32>, vector<16x32xf32> -> vector<64x32xf32>
    %659 = arith.mulf %658, %158 : vector<64x32xf32>
    %660 = tpu.concatenate %656, %656, %656, %656 in 0 : vector<16x32xf32>, vector<16x32xf32>, vector<16x32xf32>, vector<16x32xf32> -> vector<64x32xf32>
    %661 = arith.mulf %660, %158 : vector<64x32xf32>
    %cst_213 = arith.constant dense<0.000000e+00> : vector<64x64xf32>
    %662 = tpu.matmul %657, %659, %cst_213 {dimension_numbers = #tpu.dot_dimension_numbers<[1], [1], [0], [0], [0, 0, 1, 0], [], []>} : vector<64x32xf32>, vector<64x32xf32>, vector<64x64xf32> -> vector<64x64xf32>
    %cst_214 = arith.constant 0.353553385 : f32
    %663 = vector.broadcast %cst_214 : f32 to vector<64x64xf32>
    %664 = arith.mulf %662, %663 : vector<64x64xf32>
    %665 = arith.addf %664, %149 : vector<64x64xf32>
    %cst_215 = arith.constant dense<0xFF800000> : vector<64xf32>
    %666 = vector.multi_reduction <maximumf>, %665, %cst_215 [1] : vector<64x64xf32> to vector<64xf32>
    %667 = vector.shape_cast %666 : vector<64xf32> to vector<64x1xf32>
    %668 = vector.broadcast %667 : vector<64x1xf32> to vector<64x64xf32>
    %669 = arith.subf %665, %668 : vector<64x64xf32>
    %670 = math.exp %669 : vector<64x64xf32>
    %cst_216 = arith.constant dense<0.000000e+00> : vector<64xf32>
    %671 = vector.multi_reduction <add>, %670, %cst_216 [1] : vector<64x64xf32> to vector<64xf32>
    %672 = vector.shape_cast %671 : vector<64xf32> to vector<64x1xf32>
    %673 = tpu.reciprocal %672 {approx = true} : vector<64x1xf32> -> vector<64x1xf32>
    %674 = vector.broadcast %673 : vector<64x1xf32> to vector<64x64xf32>
    %675 = arith.mulf %670, %674 : vector<64x64xf32>
    %cst_217 = arith.constant dense<0.000000e+00> : vector<64x32xf32>
    %676 = tpu.matmul %675, %661, %cst_217 {dimension_numbers = #tpu.dot_dimension_numbers<[1], [0], [0], [1], [0, 0, 1, 1], [], []>} : vector<64x64xf32>, vector<64x32xf32>, vector<64x32xf32> -> vector<64x32xf32>
    %cst_218 = arith.constant dense<0.000000e+00> : vector<64x32xf32>
    %677 = tpu.matmul %676, %24, %cst_218 {dimension_numbers = #tpu.dot_dimension_numbers<[1], [0], [0], [1], [0, 0, 1, 1], [], []>} : vector<64x32xf32>, vector<32x32xf32>, vector<64x32xf32> -> vector<64x32xf32>
    %678 = vector.extract_strided_slice %677 {offsets = [0, 0], sizes = [16, 32], strides = [1, 1]} : vector<64x32xf32> to vector<16x32xf32>
    %679 = vector.extract_strided_slice %677 {offsets = [16, 0], sizes = [16, 32], strides = [1, 1]} : vector<64x32xf32> to vector<16x32xf32>
    %680 = arith.addf %678, %679 : vector<16x32xf32>
    %681 = vector.extract_strided_slice %677 {offsets = [32, 0], sizes = [16, 32], strides = [1, 1]} : vector<64x32xf32> to vector<16x32xf32>
    %682 = arith.addf %680, %681 : vector<16x32xf32>
    %683 = vector.extract_strided_slice %677 {offsets = [48, 0], sizes = [16, 32], strides = [1, 1]} : vector<64x32xf32> to vector<16x32xf32>
    %684 = arith.addf %682, %683 : vector<16x32xf32>
    %685 = vector.broadcast %21 : vector<1x32xf32> to vector<16x32xf32>
    %686 = arith.addf %684, %685 : vector<16x32xf32>
    %687 = arith.addf %648, %686 : vector<16x32xf32>
    %cst_219 = arith.constant dense<0.000000e+00> : vector<16xf32>
    %688 = vector.multi_reduction <add>, %687, %cst_219 [1] : vector<16x32xf32> to vector<16xf32>
    %689 = vector.shape_cast %688 : vector<16xf32> to vector<16x1xf32>
    %cst_220 = arith.constant 3.200000e+01 : f32
    %690 = vector.broadcast %cst_220 : f32 to vector<16x1xf32>
    %691 = arith.divf %689, %690 : vector<16x1xf32>
    %692 = arith.mulf %687, %687 : vector<16x32xf32>
    %cst_221 = arith.constant dense<0.000000e+00> : vector<16xf32>
    %693 = vector.multi_reduction <add>, %692, %cst_221 [1] : vector<16x32xf32> to vector<16xf32>
    %694 = vector.shape_cast %693 : vector<16xf32> to vector<16x1xf32>
    %cst_222 = arith.constant 3.200000e+01 : f32
    %695 = vector.broadcast %cst_222 : f32 to vector<16x1xf32>
    %696 = arith.divf %694, %695 : vector<16x1xf32>
    %697 = arith.mulf %691, %691 : vector<16x1xf32>
    %698 = arith.subf %696, %697 : vector<16x1xf32>
    %cst_223 = arith.constant 9.99999997E-7 : f32
    %699 = vector.broadcast %cst_223 : f32 to vector<16x1xf32>
    %700 = arith.addf %698, %699 : vector<16x1xf32>
    %701 = math.rsqrt %700 : vector<16x1xf32>
    %702 = vector.broadcast %691 : vector<16x1xf32> to vector<16x32xf32>
    %703 = arith.subf %687, %702 : vector<16x32xf32>
    %704 = vector.broadcast %701 : vector<16x1xf32> to vector<16x32xf32>
    %705 = arith.mulf %703, %704 : vector<16x32xf32>
    %706 = vector.broadcast %33 : vector<1x32xf32> to vector<16x32xf32>
    %707 = arith.mulf %705, %706 : vector<16x32xf32>
    %708 = vector.broadcast %32 : vector<1x32xf32> to vector<16x32xf32>
    %709 = arith.addf %707, %708 : vector<16x32xf32>
    %cst_224 = arith.constant dense<0.000000e+00> : vector<16x64xf32>
    %710 = tpu.matmul %709, %28, %cst_224 {dimension_numbers = #tpu.dot_dimension_numbers<[1], [0], [0], [1], [0, 0, 1, 1], [], []>} : vector<16x32xf32>, vector<32x64xf32>, vector<16x64xf32> -> vector<16x64xf32>
    %711 = vector.broadcast %26 : vector<1x64xf32> to vector<16x64xf32>
    %712 = arith.addf %710, %711 : vector<16x64xf32>
    %713 = arith.mulf %712, %712 : vector<16x64xf32>
    %714 = arith.mulf %712, %713 : vector<16x64xf32>
    %cst_225 = arith.constant 4.471500e-02 : f32
    %715 = vector.broadcast %cst_225 : f32 to vector<16x64xf32>
    %716 = arith.mulf %715, %714 : vector<16x64xf32>
    %717 = arith.addf %712, %716 : vector<16x64xf32>
    %cst_226 = arith.constant 0.797884583 : f32
    %718 = vector.broadcast %cst_226 : f32 to vector<16x64xf32>
    %719 = arith.mulf %718, %717 : vector<16x64xf32>
    %720 = math.tanh %719 : vector<16x64xf32>
    %cst_227 = arith.constant 1.000000e+00 : f32
    %721 = vector.broadcast %cst_227 : f32 to vector<16x64xf32>
    %722 = arith.addf %721, %720 : vector<16x64xf32>
    %cst_228 = arith.constant 5.000000e-01 : f32
    %723 = vector.broadcast %cst_228 : f32 to vector<16x64xf32>
    %724 = arith.mulf %723, %722 : vector<16x64xf32>
    %725 = arith.mulf %712, %724 : vector<16x64xf32>
    %cst_229 = arith.constant dense<0.000000e+00> : vector<16x32xf32>
    %726 = tpu.matmul %725, %29, %cst_229 {dimension_numbers = #tpu.dot_dimension_numbers<[1], [0], [0], [1], [0, 0, 1, 1], [], []>} : vector<16x64xf32>, vector<64x32xf32>, vector<16x32xf32> -> vector<16x32xf32>
    %727 = vector.broadcast %27 : vector<1x32xf32> to vector<16x32xf32>
    %728 = arith.addf %726, %727 : vector<16x32xf32>
    %729 = arith.addf %709, %728 : vector<16x32xf32>
    %cst_230 = arith.constant dense<0.000000e+00> : vector<16xf32>
    %730 = vector.multi_reduction <add>, %729, %cst_230 [1] : vector<16x32xf32> to vector<16xf32>
    %731 = vector.shape_cast %730 : vector<16xf32> to vector<16x1xf32>
    %cst_231 = arith.constant 3.200000e+01 : f32
    %732 = vector.broadcast %cst_231 : f32 to vector<16x1xf32>
    %733 = arith.divf %731, %732 : vector<16x1xf32>
    %734 = arith.mulf %729, %729 : vector<16x32xf32>
    %cst_232 = arith.constant dense<0.000000e+00> : vector<16xf32>
    %735 = vector.multi_reduction <add>, %734, %cst_232 [1] : vector<16x32xf32> to vector<16xf32>
    %736 = vector.shape_cast %735 : vector<16xf32> to vector<16x1xf32>
    %cst_233 = arith.constant 3.200000e+01 : f32
    %737 = vector.broadcast %cst_233 : f32 to vector<16x1xf32>
    %738 = arith.divf %736, %737 : vector<16x1xf32>
    %739 = arith.mulf %733, %733 : vector<16x1xf32>
    %740 = arith.subf %738, %739 : vector<16x1xf32>
    %cst_234 = arith.constant 9.99999997E-7 : f32
    %741 = vector.broadcast %cst_234 : f32 to vector<16x1xf32>
    %742 = arith.addf %740, %741 : vector<16x1xf32>
    %743 = math.rsqrt %742 : vector<16x1xf32>
    %744 = vector.broadcast %733 : vector<16x1xf32> to vector<16x32xf32>
    %745 = arith.subf %729, %744 : vector<16x32xf32>
    %746 = vector.broadcast %743 : vector<16x1xf32> to vector<16x32xf32>
    %747 = arith.mulf %745, %746 : vector<16x32xf32>
    %748 = vector.broadcast %35 : vector<1x32xf32> to vector<16x32xf32>
    %749 = arith.mulf %747, %748 : vector<16x32xf32>
    %750 = vector.broadcast %34 : vector<1x32xf32> to vector<16x32xf32>
    %751 = arith.addf %749, %750 : vector<16x32xf32>
    %cst_235 = arith.constant dense<0.000000e+00> : vector<16x64xf32>
    %752 = tpu.matmul %751, %72, %cst_235 {dimension_numbers = #tpu.dot_dimension_numbers<[1], [0], [0], [1], [0, 0, 1, 1], [], []>} : vector<16x32xf32>, vector<32x64xf32>, vector<16x64xf32> -> vector<16x64xf32>
    %753 = vector.broadcast %66 : vector<1x64xf32> to vector<16x64xf32>
    %754 = arith.addf %752, %753 : vector<16x64xf32>
    %cst_236 = arith.constant dense<0xFF800000> : vector<16xf32>
    %755 = vector.multi_reduction <maximumf>, %754, %cst_236 [1] : vector<16x64xf32> to vector<16xf32>
    %756 = vector.shape_cast %755 : vector<16xf32> to vector<16x1xf32>
    %757 = vector.broadcast %756 : vector<16x1xf32> to vector<16x64xf32>
    %758 = arith.subf %754, %757 : vector<16x64xf32>
    %759 = math.exp %758 : vector<16x64xf32>
    %cst_237 = arith.constant dense<0.000000e+00> : vector<16xf32>
    %760 = vector.multi_reduction <add>, %759, %cst_237 [1] : vector<16x64xf32> to vector<16xf32>
    %761 = vector.shape_cast %760 : vector<16xf32> to vector<16x1xf32>
    %762 = math.log %761 : vector<16x1xf32>
    %763 = arith.addf %762, %756 : vector<16x1xf32>
    %764 = tpu.iota {dimensions = array<i32: 1>} : vector<16x64xi32>
    %765 = vector.broadcast %75 : vector<16x1xi32> to vector<16x64xi32>
    %766 = arith.cmpi eq, %764, %765 : vector<16x64xi32>
    %cst_238 = arith.constant 0.000000e+00 : f32
    %767 = vector.broadcast %cst_238 : f32 to vector<16x64xf32>
    %768 = arith.select %766, %754, %767 : vector<16x64xi1>, vector<16x64xf32>
    %cst_239 = arith.constant dense<0.000000e+00> : vector<16xf32>
    %769 = vector.multi_reduction <add>, %768, %cst_239 [1] : vector<16x64xf32> to vector<16xf32>
    %770 = vector.shape_cast %769 : vector<16xf32> to vector<16x1xf32>
    %c0_i32_240 = arith.constant 0 : i32
    %771 = vector.broadcast %c0_i32_240 : i32 to vector<16x1xi32>
    %772 = arith.cmpi sgt, %76, %771 : vector<16x1xi32>
    %773 = arith.extui %772 : vector<16x1xi1> to vector<16x1xi32>
    %774 = arith.sitofp %773 : vector<16x1xi32> to vector<16x1xf32>
    %775 = arith.subf %763, %770 : vector<16x1xf32>
    %776 = arith.mulf %775, %774 : vector<16x1xf32>
    %777 = vector.shape_cast %776 : vector<16x1xf32> to vector<1x16x1xf32>
    %cst_241 = arith.constant dense<0.000000e+00> : vector<1xf32>
    %778 = vector.multi_reduction <add>, %777, %cst_241 [1, 2] : vector<1x16x1xf32> to vector<1xf32>
    %779 = vector.shape_cast %778 : vector<1xf32> to vector<1x1x1xf32>
    %780 = vector.extract %779[0, 0, 0] : f32 from vector<1x1x1xf32>
    %781 = vector.broadcast %780 : f32 to vector<1x1xf32>
    %782 = vector.shape_cast %774 : vector<16x1xf32> to vector<1x16x1xf32>
    %cst_242 = arith.constant dense<0.000000e+00> : vector<1xf32>
    %783 = vector.multi_reduction <add>, %782, %cst_242 [1, 2] : vector<1x16x1xf32> to vector<1xf32>
    %784 = vector.shape_cast %783 : vector<1xf32> to vector<1x1x1xf32>
    %785 = vector.extract %784[0, 0, 0] : f32 from vector<1x1x1xf32>
    %786 = vector.broadcast %785 : f32 to vector<1x1xf32>
    %cst_243 = arith.constant 9.99999997E-7 : f32
    %787 = vector.broadcast %cst_243 : f32 to vector<1x1xf32>
    %788 = arith.addf %786, %787 : vector<1x1xf32>
    %789 = arith.divf %781, %788 : vector<1x1xf32>
    %c0_244 = arith.constant 0 : index
    %c0_245 = arith.constant 0 : index
    %790 = vector.load %arg3[%c0_244, %c0_245] : memref<1x1xf32, #tpu.memory_space<vmem>>, vector<1x1xf32>
    tpu.vector_store %arg3[%c0_244, %c0_245], %789 {strides = array<i32>} : memref<1x1xf32, #tpu.memory_space<vmem>>, vector<1x1xf32>,
    return
  }
  func.func @transform_0(%arg0: i32) -> (i32, i32) {
    %c0_i32 = arith.constant 0 : i32
    %c0_i32_0 = arith.constant 0 : i32
    %c0_i32_1 = arith.constant 0 : i32
    return %c0_i32, %c0_i32_0 : i32, i32
  }
  func.func @transform_1(%arg0: i32) -> (i32, i32) {
    %c0_i32 = arith.constant 0 : i32
    %c0_i32_0 = arith.constant 0 : i32
    %c0_i32_1 = arith.constant 0 : i32
    return %c0_i32, %c0_i32_0 : i32, i32
  }
  func.func @transform_2(%arg0: i32) -> (i32, i32) {
    %c0_i32 = arith.constant 0 : i32
    %c0_i32_0 = arith.constant 0 : i32
    %c0_i32_1 = arith.constant 0 : i32
    return %c0_i32, %c0_i32_0 : i32, i32
  }
}

</mosaic_0001>

<bundles_post_ra>
// kernel: _lambda_.1
= control target key start
LH: loop header
LB: loop body
LE: loop exit
PB: predicated region body
PF: predicated region fallthrough
CT: control target
= control target key end

     0   :  { %v7828_v1 = vmov 0   ;;  %s9890_s0 = inlined_call_operand.vmem [shape: s32[72,128], index: 0, kind: input, shape index: {}]   ;;  %s9891_s1 = inlined_call_operand.vmem [shape: f32[1336,128], index: 1, kind: input, shape index: {}]   ;;  %s9892_s2 = inlined_call_operand.hbm [shape: f32[1,1], index: 2, kind: output, shape index: {}]  }
   0x1   :  { %v179_v0 = vld [vmem:[%s9890_s0] sm:$0xff]  ;;  %7530 = vset.pattern.permute.xlu0 %v7828_v1  ;;  %v174_v2 = vld [vmem:[%s9891_s1 + $0x510] sm:$0xff]  ;;  %v173_v3 = vld [vmem:[%s9891_s1 + $0x508] sm:$0xff]  ;;  %7531 = vset.pattern.permute.xlu1 %v7828_v1 }
   0x2   :  { %332 = vperm.xlu0 %7530, %v179_v0   ;;  %6806 = vmatprep.subr.mxu0 %v174_v2  ;;  %v180_v4 = vld [vmem:[%s9890_s0 + $0x8] sm:$0xff]  ;;  %v172_v5 = vld [vmem:[%s9891_s1 + $0x500] sm:$0xff] }
   0x3   :  { %6807 = vmatpush3.msra.mxu0 %v174_v2 }
   0x4   :  { %7 = vsyncpa [#allocation3], 0  ;;  %6808 = vmatprep.subr.mxu0 %v173_v3  ;;  %v171_v6 = vld [vmem:[%s9891_s1 + $0x4f8] sm:$0xff]  ;;  %v170_v7 = vld [vmem:[%s9891_s1 + $0x4f0] sm:$0xff]  ;;  %v189_v11 = vlaneseq  ;;  %vm343_vm0 = vcmask 523264   ;;  %v9904_v14 = vmov 0.0  }
   0x5   :  { %6809 = vmatpush3.msra.mxu0 %v173_v3  ;;  %v169_v8 = vld [vmem:[%s9891_s1 + $0x4e8] sm:$0xff]  ;;  %v168_v9 = vld [vmem:[%s9891_s1 + $0x4e0] sm:$0xff]  ;;  %v167_v10 = vld [vmem:[%s9891_s1 + $0x4d8] sm:$0xff]  ;;  %vm425_vm3 = vcmask 261120   ;;  %s7830_s13 = smov 32   ;;  %s7831_s20 = smov 96  }
   0x6   :  { %335 = vperm.xlu0 %7530, %v180_v4   ;;  %6810 = vmatprep.subr.mxu0 %v172_v5  ;;  %v7882_v12 = vand.u32 127, %v189_v11  ;;  %v162_v18 = vld [vmem:[%s9891_s1 + $0x4b0] sm:$0xff]  ;;  %v161_v20 = vld [vmem:[%s9891_s1 + $0x4a8] sm:$0xff]  ;;  %v112_v31 = vld [vmem:[%s9891_s1 + $0x320] sm:$0xff]  ;;  %v7922_v34 = vshrl.u32 %v189_v11, 7  ;;  %s7832_s21 = smov 64  }
   0x7   :  { %6811 = vmatpush3.msra.mxu0 %v172_v5  ;;  %v113_v30 = vld [vmem:[%s9891_s1 + $0x328] sm:$0xff]  ;;  %v111_v32 = vld [vmem:[%s9891_s1 + $0x318] sm:$0xff]  ;;  %v110_v33 = vld [vmem:[%s9891_s1 + $0x310] sm:$0xff]  ;;  %s7834_s5 = smov [#allocation2]  }
   0x8   :  { %6812 = vmatprep.subr.mxu0 %v171_v6  ;;  %9938 = vst [vmem:[#allocation5_spill] sm:$0xff] %v7882_v12  ;;  %6825 = vmatprep.subr.mxu1 %v113_v30  ;;  %v7925_v35 = vadd.s32 56, %v7922_v34  ;;  %v306_v36 = vshra.s32 %v7882_v12, 3  ;;  %v7929_v37 = vadd.s32 48, %v7922_v34  ;;  %v7932_v38 = vadd.s32 40, %v7922_v34  ;;  %s6105_s6 = sshll.u32 %s7834_s5, 4  ;;  %s6106_s6 = int_to_ptr.vmem [resolvable:$true] %s6105_s6 }
   0x9   :  { %6813 = vmatpush3.msra.mxu0 %v171_v6  ;;  %6826 = vmatpush3.msra.mxu1 %v113_v30  ;;  %v7942_v42 = vadd.s32 32, %v7922_v34  ;;  %v7955_v46 = vadd.s32 16, %v7922_v34  ;;  %v7958_v47 = vadd.s32 24, %v7922_v34  ;;  %v7969_v51 = vadd.s32 8, %v7922_v34  ;;  %s7806_s7 = scalar_lea.vmem %s6106_s6, 16  ;;  %s7810_s8 = scalar_lea.vmem %s6106_s6, 32 }
   0xa   :  { %6814 = vmatprep.subr.mxu0 %v170_v7  ;;  %6827 = vmatprep.subr.mxu1 %v112_v31  ;;  %9939 = vst [vmem:[#allocation6_spill] sm:$0xff] %v7929_v37  ;;  %v216_v39 = vshra.s32 %v7925_v35, 4  ;;  %v215_v40 = vshra.s32 %v7929_v37, 4  ;;  %v214_v41 = vshra.s32 %v7932_v38, 4  ;;  %v209_v56 = vshra.s32 %v7922_v34, 4  ;;  %p7807_p0 = scmp.ne.s32.totalorder %s6106_s6, %s7806_s7  ;;  %p7811_p1 = scmp.lt.s32.totalorder %s6106_s6, %s6106_s6 }
   0xb   :  { %6815 = vmatpush3.msra.mxu0 %v170_v7  ;;  %6828 = vmatpush3.msra.mxu1 %v112_v31  ;;  %v213_v45 = vshra.s32 %v7942_v42, 4  ;;  %v212_v48 = vshra.s32 %v7958_v47, 4  ;;  %v211_v50 = vshra.s32 %v7955_v46, 4  ;;  %v210_v54 = vshra.s32 %v7969_v51, 4  ;;  %p7812_p2 = scmp.lt.s32.totalorder %s7810_s8, %s7806_s7 }
   0xc   :  { %6816 = vmatprep.subr.mxu0 %v169_v8  ;;  %6829 = vmatprep.subr.mxu1 %v111_v32  ;;  %vm314_vm4 = vcmp.eq.s32.totalorder %v216_v39, %v306_v36  ;;  %vm313_vm5 = vcmp.eq.s32.totalorder %v215_v40, %v306_v36  ;;  %vm312_vm6 = vcmp.eq.s32.totalorder %v214_v41, %v306_v36 }
   0xd   :  { %6817 = vmatpush3.msra.mxu0 %v169_v8  ;;  %6830 = vmatpush3.msra.mxu1 %v111_v32  ;;  %v7945_v43 = vsel %vm314_vm4, 1.0, %v9904_v14  ;;  %v7949_v44 = vsel %vm313_vm5, 1.0, %v9904_v14  ;;  %v7963_v49 = vsel %vm312_vm6, 1.0, %v9904_v14  ;;  %vm311_vm7 = vcmp.eq.s32.totalorder %v213_v45, %v306_v36  ;;  %p7813_p3 = por %p7812_p2, %p7811_p1 }
   0xe   :  { %6818 = vmatprep.subr.mxu0 %v168_v9  ;;  %6831 = vmatprep.subr.mxu1 %v110_v33  ;;  %9940 = vst [vmem:[#allocation7_spill] sm:$0xff] %v7945_v43  ;;  %9941 = vst [vmem:[#allocation8_spill] sm:$0xff] %v7949_v44  ;;  %vm310_vm8 = vcmp.eq.s32.totalorder %v212_v48, %v306_v36  ;;  %v7979_v53 = vsel %vm311_vm7, 1.0, %v9904_v14  ;;  %vm309_vm9 = vcmp.eq.s32.totalorder %v211_v50, %v306_v36 }
   0xf   :  { %6819 = vmatpush3.msra.mxu0 %v168_v9  ;;  %6832 = vmatpush3.msra.mxu1 %v110_v33  ;;  %9942 = vst [vmem:[#allocation9_spill] sm:$0xff] %v7963_v49  ;;  %v7974_v52 = vsel %vm310_vm8, 1.0, %v9904_v14  ;;  %9944 = vst [vmem:[#allocation11_spill] sm:$0xff] %v7979_v53  ;;  %v7986_v55 = vsel %vm309_vm9, 1.0, %v9904_v14  ;;  %vm308_vm10 = vcmp.eq.s32.totalorder %v210_v54, %v306_v36  ;;  %p7814_p4 = pnand %p7813_p3, %p7807_p0 }
  0x10   :  { %6820 = vmatprep.subr.mxu0 %v167_v10  ;;  %9943 = vst [vmem:[#allocation10_spill] sm:$0xff] %v7974_v52  ;;  %9945 = vst [vmem:[#allocation12_spill] sm:$0xff] %v7986_v55  ;;  %v7993_v57 = vsel %vm308_vm10, 1.0, %v9904_v14  ;;  %vm307_vm11 = vcmp.eq.s32.totalorder %v209_v56, %v306_v36 }
  0x11   :  { %6821 = vmatpush3.msra.mxu0 %v167_v10  ;;  %9946 = vst [vmem:[#allocation13_spill] sm:$0xff] %v7993_v57  ;;  %v7999_v58 = vsel %vm307_vm11, 1.0, %v9904_v14 }
  0x12   :  { %9947 = vst [vmem:[#allocation14_spill] sm:$0xff] %v7999_v58 }
  0x7d   :  { %v333_v13 = vpop.permute.xlu0 %332 }
  0x7e   :  { %vm337_vm1 = vcmp.eq.s32.totalorder %v7882_v12, %v333_v13  ;;  %v6125_v13 = vld [vmem:[%s9891_s1 + $0x2d8] ss:$0 sm:$0xff] }
  0x7f   :  { %v6121_v15 = vsel %vm337_vm1, 1.0, %v9904_v14 }
  0x80   :  { %6822 = vmatprep.mubr.msk.f32.mxu0 %vm343_vm0, %v6121_v15 }
  0x81   :  { %v336_v16 = vpop.permute.xlu0 %335 }
  0x82   :  { %vm338_vm2 = vcmp.eq.s32.totalorder %v7882_v12, %v336_v16 }
  0x83   :  { %v6122_v17 = vsel %vm338_vm2, 1.0, %v9904_v14 }
  0x84   :  { %6823 = vmatmul.mubr.msk.f32.vlgmr.msra.gmra.mxu0 %vm343_vm0, %v6122_v17 }
 0x144   :  { %v6824_v19 = vpop.f32.mrf.mxu0 }
 0x145   :  { %v7896_v21 = vadd.f32 %v6824_v19, %v162_v18  ;;  %v6126_v18 = vld [vmem:[%s9891_s1 + $0x2d0] ss:$0 sm:$0xff] }
 0x146   :  { %v416_v22 = vpop.f32.mrf.mxu0 }
 0x147   :  { %v7898_v23 = vadd.f32 %v416_v22, %v161_v20  ;;  %v429_v24 = vsel %vm425_vm3, %v7896_v21, 0.0  ;;  %v436_v28 = vmul.f32 %v7896_v21, %v7896_v21 }
 0x148   :  { %430 = vadd.xlane.f32.xlu1 %v429_v24 }
 0x149   :  { %v435_v25 = vmul.f32 %v7898_v23, %v7898_v23  ;;  %v426_v27 = vsel %vm425_vm3, %v7898_v23, 0.0  ;;  %v440_v29 = vsel %vm425_vm3, %v436_v28, 0.0  ;;  %v6127_v28 = vld [vmem:[%s9891_s1 + $0x2e8] ss:$0 sm:$0xff] }
 0x14b   :  { %v437_v26 = vsel %vm425_vm3, %v435_v25, 0.0 }
 0x14c   :  { %438 = vadd.xlane.f32.xlu0 %v437_v26  ;;  %427 = vadd.xlane.f32.xlu1 %v426_v27 }
 0x150   :  { %441 = vadd.xlane.f32.xlu1 %v440_v29 }
 0x161   :  { %576 = vrot.lane.b32.xlu1 %v7945_v43, %s7830_s13 }
 0x162   :  { %568 = vrot.lane.b32.xlu0 %v7974_v52, %s7830_s13 }
 0x165   :  { %574 = vrot.lane.b32.xlu1 %v7949_v44, %s7830_s13 }
 0x169   :  { %572 = vrot.lane.b32.xlu1 %v7963_v49, %s7830_s13 }
 0x16d   :  { %570 = vrot.lane.b32.xlu1 %v7979_v53, %s7830_s13 }
 0x171   :  { %566 = vrot.lane.b32.xlu1 %v7986_v55, %s7830_s13 }
 0x175   :  { %564 = vrot.lane.b32.xlu1 %v7993_v57, %s7830_s13 }
 0x179   :  { %562 = vrot.lane.b32.xlu1 %v7999_v58, %s7830_s13 }
 0x1d1   :  { %v431_v59 = vpop.xlane.xlu1 %430 }
 0x1d2   :  { %v434_v62 = vmul.f32 0.03125, %v431_v59 }
 0x1d4   :  { %v446_v4 = vmul.f32 %v434_v62, %v434_v62  ;;  %v454_v15 = vsub.f32 %v7896_v21, %v434_v62 }
 0x1d5   :  { %v439_v60 = vpop.xlane.xlu0 %438  ;;  %v428_v61 = vpop.xlane.xlu1 %427 }
 0x1d6   :  { %v433_v63 = vmul.f32 0.03125, %v428_v61  ;;  %v443_v0 = vmul.f32 0.03125, %v439_v60 }
 0x1d8   :  { %v445_v2 = vmul.f32 %v433_v63, %v433_v63  ;;  %v453_v10 = vsub.f32 %v7898_v23, %v433_v63 }
 0x1d9   :  { %v442_v3 = vpop.xlane.xlu1 %441  ;;  %v8039_v60 = vpop.permute.xlu0 %568 }
 0x1da   :  { %v447_v5 = vsub.f32 %v443_v0, %v445_v2  ;;  %v444_v6 = vmul.f32 0.03125, %v442_v3 }
 0x1dc   :  { %v449_v7 = vadd.f32 1e-06, %v447_v5  ;;  %v448_v8 = vsub.f32 %v444_v6, %v446_v4 }
 0x1dd   :  { %v8018_v21 = vpop.permute.xlu1 %576 }
 0x1de   :  { %7532 = vrsqrt.f32 %v449_v7  ;;  %v450_v9 = vadd.f32 1e-06, %v448_v8 }
 0x1e0   :  { %7534 = vrsqrt.f32 %v450_v9 }
 0x1e1   :  { %v8020_v23 = vpop.permute.xlu1 %574 }
 0x1e5   :  { %v8022_v26 = vpop.permute.xlu1 %572 }
 0x1e9   :  { %v8024_v27 = vpop.permute.xlu1 %570 }
 0x1eb   :  { %v7533_v11 = vpop.eup %7532 }
 0x1ec   :  { %v455_v16 = vmul.f32 %v7533_v11, %v453_v10 }
 0x1ed   :  { %v7535_v17 = vpop.eup %7534  ;;  %v8037_v59 = vpop.permute.xlu1 %566 }
 0x1ee   :  { %v456_v19 = vmul.f32 %v7535_v17, %v454_v15  ;;  %v461_v20 = vmul.f32 %v6125_v13, %v455_v16  ;;  %v187_v16 = vld [vmem:[%s9890_s0 + $0x40] sm:$0x1]  ;;  %v9898_v17 = vand.u32 15, %v7969_v51 }
 0x1ef   :  { %vm188_vm12 = vcmp.gt.s32.totalorder %v187_v16, 0 }
 0x1f0   :  { %v462_v22 = vmul.f32 %v6125_v13, %v456_v19  ;;  %v8010_v24 = vadd.f32 %v6126_v18, %v461_v20  ;;  %v9897_v19 = vand.u32 15, %v7922_v34  ;;  %v251_v20 = vsel %vm188_vm12, 1, %v7828_v1 }
 0x1f1   :  { %v8051_v63 = vpop.permute.xlu1 %564  ;;  %v9896_v1 = vand.u32 15, %v7955_v46 }
 0x1f2   :  { %v8012_v25 = vadd.f32 %v6126_v18, %v462_v22  ;;  %6833 = vmatprep.mubr.msk.f32.mxu1 %vm425_vm3, %v8010_v24  ;;  %v9899_v18 = vand.u32 15, %v7882_v12  ;;  %v254_v22 = vsub.s32 0, %v7922_v34 }
 0x1f4   :  { %6834 = vmatmul.mubr.msk.f32.vlgmr.msra.gmra.mxu1 %vm425_vm3, %v8012_v25 }
 0x1f5   :  { %v8061_v4 = vpop.permute.xlu1 %562 }
 0x2b4   :  { %v6835_v29 = vpop.f32.mrf.mxu1 }
 0x2b5   :  { %v8029_v30 = vadd.f32 %v6835_v29, %v6127_v28  ;;  %v9895_v29 = vand.u32 15, %v7958_v47 }
 0x2b6   :  { %v545_v31 = vpop.f32.mrf.mxu1 }
 0x2b7   :  { %v8031_v32 = vadd.f32 %v6127_v28, %v545_v31  ;;  %v593_v33 = vmul.f32 %v8018_v21, %v8029_v30  ;;  %v591_v36 = vmul.f32 %v8022_v26, %v8029_v30  ;;  %v589_v61 = vmul.f32 %v8039_v60, %v8029_v30 }
 0x2b8   :  { %v587_v0 = vmul.f32 %v8051_v63, %v8029_v30  ;;  %v8122_v28 = vshra.s32 %v7882_v12, 4  ;;  %v227_v31 = vshra.s32 %v9898_v17, 3 }
 0x2b9   :  { %648 = vrot.lane.b32.xlu1 %v593_v33, %s7831_s20  ;;  %644 = vrot.lane.b32.xlu0 %v591_v36, %s7831_s20  ;;  %v592_v62 = vmul.f32 %v8020_v23, %v8031_v32  ;;  %v590_v2 = vmul.f32 %v8024_v27, %v8031_v32  ;;  %v588_v3 = vmul.f32 %v8037_v59, %v8031_v32  ;;  %v8129_v33 = vshra.s32 %v9899_v18, 3 }
 0x2ba   :  { %6852 = vmatprep.mubr.msk.f32.mxu1 %vm425_vm3, %v8031_v32  ;;  %v586_v5 = vmul.f32 %v8061_v4, %v8031_v32  ;;  %v226_v36 = vshra.s32 %v9897_v19, 3  ;;  %vm219_vm13 = vcmp.eq.s32.totalorder %v210_v54, %v8122_v28  ;;  %vm218_vm15 = vcmp.eq.s32.totalorder %v209_v56, %v8122_v28 }
 0x2bb   :  { %vm236_vm14 = vcmp.eq.s32.totalorder %v227_v31, %v8129_v33  ;;  %vm221_vm5 = vcmp.eq.s32.totalorder %v212_v48, %v8122_v28  ;;  %v228_v54 = vshra.s32 %v9896_v1, 3  ;;  %v9893_v48 = vand.u32 15, %v7925_v35 }
 0x2bc   :  { %vm235_vm1 = vcmp.eq.s32.totalorder %v226_v36, %v8129_v33  ;;  %vm8147_vm4 = vmand %vm219_vm13, %vm236_vm14  ;;  %vm220_vm10 = vcmp.eq.s32.totalorder %v211_v50, %v8122_v28  ;;  %vm8191_vm14 = vcmp.eq.s32.totalorder %v214_v41, %v8122_v28  ;;  %v9900_v19 = vand.u32 15, %v7929_v37 }
 0x2bd   :  { %640 = vrot.lane.b32.xlu0 %v589_v61, %s7831_s20  ;;  %646 = vrot.lane.b32.xlu1 %v592_v62, %s7831_s20  ;;  %v8133_v61 = vrot.slane %v251_v20, %v254_v22  ;;  %v229_v62 = vshra.s32 %v9895_v29, 3  ;;  %vm8158_vm7 = vmand %vm218_vm15, %vm235_vm1  ;;  %vm237_vm12 = vcmp.eq.s32.totalorder %v228_v54, %v8129_v33  ;;  %v233_v41 = vshra.s32 %v9893_v48, 3 }
 0x2be   :  { %vm8198_vm15 = vmand %vm220_vm10, %vm237_vm12 }
 0x2bf   :  { %vm256_vm2 = vcmp.eq.s32.totalorder %v8133_v61, 1  ;;  %vm238_vm6 = vcmp.eq.s32.totalorder %v229_v62, %v8129_v33  ;;  %vm242_vm10 = vcmp.eq.s32.totalorder %v233_v41, %v8129_v33 }
 0x2c0   :  { %vm258_vm8 = vmand %vm8147_vm4, %vm256_vm2 }
 0x2c1   :  { %636 = vrot.lane.b32.xlu0 %v587_v0, %s7831_s20  ;;  %642 = vrot.lane.b32.xlu1 %v590_v2, %s7831_s20  ;;  %v9894_v2 = vand.u32 15, %v7932_v38  ;;  %vm8166_vm9 = vmand %vm221_vm5, %vm238_vm6  ;;  %vm225_vm6 = vcmp.eq.s32.totalorder %v216_v39, %v8122_v28 }
 0x2c2   :  { %vm257_vm11 = vmand %vm8158_vm7, %vm256_vm2 }
 0x2c3   :  { %vm260_vm13 = vmand %vm8166_vm9, %vm256_vm2 }
 0x2c4   :  { %vm259_vm5 = vmand %vm8198_vm15, %vm256_vm2 }
 0x2c5   :  { %606 = vrot.lane.b32.xlu0 %v7949_v44, %s7832_s21  ;;  %638 = vrot.lane.b32.xlu1 %v588_v3, %s7831_s20  ;;  %vm8242_vm12 = vmand %vm225_vm6, %vm242_vm10  ;;  %vm224_vm6 = vcmp.eq.s32.totalorder %v215_v40, %v8122_v28 }
 0x2c9   :  { %600 = vrot.lane.b32.xlu0 %v7974_v52, %s7832_s21  ;;  %634 = vrot.lane.b32.xlu1 %v586_v5, %s7831_s20  ;;  %v231_v5 = vshra.s32 %v9894_v2, 3 }
 0x2cb   :  { %vm240_vm1 = vcmp.eq.s32.totalorder %v231_v5, %v8129_v33 }
 0x2cd   :  { %596 = vrot.lane.b32.xlu0 %v7993_v57, %s7832_s21  ;;  %608 = vrot.lane.b32.xlu1 %v7945_v43, %s7832_s21 }
 0x2d1   :  { %604 = vrot.lane.b32.xlu1 %v7963_v49, %s7832_s21 }
 0x2d5   :  { %602 = vrot.lane.b32.xlu1 %v7979_v53, %s7832_s21 }
 0x2d9   :  { %598 = vrot.lane.b32.xlu1 %v7986_v55, %s7832_s21 }
 0x2dd   :  { %594 = vrot.lane.b32.xlu1 %v7999_v58, %s7832_s21 }
 0x32b   :  { %v649_v6 = vpop.permute.xlu1 %648  ;;  %v645_v8 = vpop.permute.xlu0 %644 }
 0x32c   :  { %6836 = vmatprep.subr.msk.mxu1 %vm425_vm3, %v649_v6 }
 0x32d   :  { %6837 = vmatpush3.xpose.msk.msra.mxu1 %vm425_vm3, %v649_v6 }
 0x32f   :  { %v647_v7 = vpop.permute.xlu1 %646  ;;  %v641_v10 = vpop.permute.xlu0 %640 }
 0x330   :  { %6838 = vmatprep.subr.msk.mxu1 %vm425_vm3, %v647_v7 }
 0x331   :  { %6839 = vmatpush3.xpose.msk.msra.mxu1 %vm425_vm3, %v647_v7  ;;  %v9902_v7 = vmov -10000.0  }
 0x332   :  { %6840 = vmatprep.subr.msk.mxu1 %vm425_vm3, %v645_v8  ;;  %v8209_v22 = vsel %vm260_vm13, 0.0, %v9902_v7  ;;  %v8236_v39 = vsel %vm259_vm5, 0.0, %v9902_v7  ;;  %vm264_vm13 = vmand %vm8242_vm12, %vm256_vm2 }
 0x333   :  { %v643_v9 = vpop.permute.xlu1 %642  ;;  %v637_v13 = vpop.permute.xlu0 %636  ;;  %9959 = vst [vmem:[#allocation16_spill] sm:$0xff] %v8209_v22  ;;  %9962 = vst [vmem:[#allocation17_spill] sm:$0xff] %v8236_v39 }
 0x335   :  { %6841 = vmatpush3.xpose.msk.msra.mxu1 %vm425_vm3, %v645_v8  ;;  %v8182_v8 = vsel %vm258_vm8, 0.0, %v9902_v7  ;;  %vm8225_vm8 = vmand %vm8191_vm14, %vm240_vm1  ;;  %vm222_vm14 = vcmp.eq.s32.totalorder %v213_v45, %v8122_v28 }
 0x336   :  { %6842 = vmatprep.subr.msk.mxu1 %vm425_vm3, %v643_v9 }
 0x337   :  { %v639_v11 = vpop.permute.xlu1 %638  ;;  %v8282_v18 = vpop.permute.xlu0 %606 }
 0x339   :  { %6843 = vmatpush3.xpose.msk.msra.mxu1 %vm425_vm3, %v643_v9 }
 0x33a   :  { %6844 = vmatprep.subr.msk.mxu1 %vm425_vm3, %v641_v10 }
 0x33b   :  { %v635_v15 = vpop.permute.xlu1 %634 }
 0x33d   :  { %6845 = vmatpush3.xpose.msk.msra.mxu1 %vm425_vm3, %v641_v10 }
 0x33e   :  { %6846 = vmatprep.subr.msk.mxu1 %vm425_vm3, %v639_v11 }
 0x341   :  { %6847 = vmatpush3.xpose.msk.msra.mxu1 %vm425_vm3, %v639_v11  ;;  %v8196_v11 = vsel %vm257_vm11, 0.0, %v9902_v7  ;;  %vm262_vm11 = vmand %vm8225_vm8, %vm256_vm2 }
 0x342   :  { %6848 = vmatprep.subr.msk.mxu1 %vm425_vm3, %v637_v13  ;;  %9956 = vst [vmem:[#allocation15_spill] sm:$0xff] %v8196_v11 }
 0x345   :  { %6849 = vmatpush3.xpose.msk.msra.mxu1 %vm425_vm3, %v637_v13  ;;  %v9983_v13 = vand.u32 15, %v7925_v35 }
 0x346   :  { %6850 = vmatprep.subr.msk.mxu1 %vm425_vm3, %v635_v15 }
 0x349   :  { %6851 = vmatpush3.xpose.msk.msra.mxu1 %vm425_vm3, %v635_v15 }
 0x34c   :  { %6853 = vmatmul.mubr.msk.f32.vlgmr.msra.gmra.mxu1 %vm425_vm3, %v8029_v30 }
 0x34d   :  { %6855 = vmatprep.mubr.msk.f32.mxu1 %vm425_vm3, %v8031_v32 }
 0x350   :  { %6856 = vmatmul.mubr.msk.f32.gmra.mxu1 %vm425_vm3, %v8029_v30 }
 0x351   :  { %6858 = vmatprep.mubr.msk.f32.mxu1 %vm425_vm3, %v8031_v32 }
 0x354   :  { %6859 = vmatmul.mubr.msk.f32.gmra.mxu1 %vm425_vm3, %v8029_v30 }
 0x355   :  { %6861 = vmatprep.mubr.msk.f32.mxu1 %vm425_vm3, %v8031_v32 }
 0x358   :  { %6862 = vmatmul.mubr.msk.f32.gmra.mxu1 %vm425_vm3, %v8029_v30 }
 0x40c   :  { %v6854_v6 = vpop.f32.mrf.mxu1 }
 0x40d   :  { %v778_v9 = vmul.f32 0.35355338, %v6854_v6 }
 0x40e   :  { %v738_v10 = vpop.f32.mrf.mxu1 }
 0x40f   :  { %v777_v15 = vmul.f32 0.35355338, %v738_v10  ;;  %v8203_v16 = vadd.f32 %v778_v9, %v8182_v8 }
 0x410   :  { %v6857_v20 = vpop.f32.mrf.mxu1 }
 0x411   :  { %v780_v31 = vmul.f32 0.35355338, %v6857_v20  ;;  %v796_v36 = vsel %vm343_vm0, %v8203_v16, -inf  ;;  %v8214_v62 = vadd.f32 %v777_v15, %v8196_v11 }
 0x412   :  { %797 = vmax.xlane.f32.xlu1 %v796_v36  ;;  %v748_v54 = vpop.f32.mrf.mxu1 }
 0x413   :  { %v779_v6 = vmul.f32 0.35355338, %v748_v54  ;;  %v793_v9 = vsel %vm343_vm0, %v8214_v62, -inf  ;;  %v8232_v10 = vadd.f32 %v780_v31, %v8209_v22 }
 0x414   :  { %794 = vmax.xlane.f32.xlu0 %v793_v9  ;;  %v6860_v15 = vpop.f32.mrf.mxu1  ;;  %v8252_v9 = vsel %vm262_vm11, 0.0, %v9902_v7 }
 0x415   :  { %v782_v36 = vmul.f32 0.35355338, %v6860_v15  ;;  %v802_v31 = vsel %vm343_vm0, %v8232_v10, -inf  ;;  %v8249_v41 = vadd.f32 %v779_v6, %v8236_v39  ;;  %9965 = vst [vmem:[#allocation18_spill] sm:$0xff] %v8252_v9  ;;  %v8264_v6 = vsel %vm264_vm13, 0.0, %v9902_v7 }
 0x416   :  { %v758_v50 = vpop.f32.mrf.mxu1  ;;  %9966 = vst [vmem:[#allocation19_spill] sm:$0xff] %v8264_v6 }
 0x417   :  { %v799_v15 = vsel %vm343_vm0, %v8249_v41, -inf  ;;  %v8261_v2 = vadd.f32 %v782_v36, %v8252_v9 }
 0x418   :  { %803 = vmax.xlane.f32.xlu0 %v802_v31  ;;  %v6863_v54 = vpop.f32.mrf.mxu1  ;;  %v8266_v31 = vpop.permute.xlu1 %608 }
 0x419   :  { %v784_v48 = vmul.f32 0.35355338, %v6863_v54  ;;  %v808_v29 = vsel %vm343_vm0, %v8261_v2, -inf  ;;  %v625_v54 = vmul.f32 %v8266_v31, %v8029_v30 }
 0x41a   :  { %v768_v40 = vpop.f32.mrf.mxu1 }
 0x41b   :  { %v8271_v1 = vadd.f32 %v784_v48, %v8264_v6  ;;  %v624_v48 = vmul.f32 %v8282_v18, %v8031_v32 }
 0x41c   :  { %800 = vmax.xlane.f32.xlu0 %v799_v15  ;;  %v9901_v15 = vand.u32 15, %v7942_v42 }
 0x41d   :  { %v814_v36 = vsel %vm343_vm0, %v8271_v1, -inf }
 0x41e   :  { %v230_v17 = vshra.s32 %v9901_v15, 3  ;;  %v8334_v15 = vpop.permute.xlu1 %604 }
 0x420   :  { %809 = vmax.xlane.f32.xlu0 %v808_v29  ;;  %vm239_vm1 = vcmp.eq.s32.totalorder %v230_v17, %v8129_v33  ;;  %v232_v29 = vshra.s32 %v9900_v19, 3  ;;  %v9969_v17 = vmov 0  ;;  %v781_v19 = vmul.f32 0.35355338, %v758_v50 }
 0x421   :  { %vm8294_vm5 = vmand %vm222_vm14, %vm239_vm1 }
 0x422   :  { %vm241_vm10 = vcmp.eq.s32.totalorder %v232_v29, %v8129_v33  ;;  %vm261_vm11 = vmand %vm8294_vm5, %vm256_vm2  ;;  %v783_v33 = vmul.f32 0.35355338, %v768_v40  ;;  %v8336_v40 = vpop.permute.xlu1 %602 }
 0x423   :  { %903 = vrot.lane.b32.xlu1 %v625_v54, %s7832_s21  ;;  %v8292_v54 = vpop.permute.xlu0 %600  ;;  %vm8309_vm13 = vmand %vm224_vm6, %vm241_vm10  ;;  %v8315_v28 = vsel %vm261_vm11, 0.0, %v9902_v7 }
 0x424   :  { %815 = vmax.xlane.f32.xlu0 %v814_v36  ;;  %v621_v45 = vmul.f32 %v8292_v54, %v8029_v30  ;;  %v9970_v17 = vsel %vm8309_vm13, 4294967295, %v9969_v17  ;;  %9972 = vst [vmem:[#allocation21_spill] sm:$0xff] %v8315_v28  ;;  %vm263_vm14 = vmand %vm8309_vm13, %vm256_vm2  ;;  %v8322_v29 = vadd.f32 %v781_v19, %v8315_v28  ;;  %v623_v19 = vmul.f32 %v8334_v15, %v8029_v30 }
 0x425   :  { %9971 = vst [vmem:[#allocation20_spill] sm:$0xff] %v9970_v17 }
 0x426   :  { %v805_v50 = vsel %vm343_vm0, %v8322_v29, -inf  ;;  %v8343_v14 = vpop.permute.xlu1 %598 }
 0x43a   :  { %901 = vrot.lane.b32.xlu0 %v624_v48, %s7832_s21  ;;  %v8325_v48 = vsel %vm263_vm14, 0.0, %v9902_v7  ;;  %v622_v7 = vmul.f32 %v8336_v40, %v8031_v32 }
 0x43b   :  { %9973 = vst [vmem:[#allocation22_spill] sm:$0xff] %v8325_v48 }
 0x43e   :  { %895 = vrot.lane.b32.xlu0 %v621_v45, %s7832_s21  ;;  %v8330_v45 = vadd.f32 %v783_v33, %v8325_v48  ;;  %v620_v33 = vmul.f32 %v8343_v14, %v8031_v32 }
 0x440   :  { %v811_v61 = vsel %vm343_vm0, %v8330_v45, -inf }
 0x447   :  { %806 = vmax.xlane.f32.xlu1 %v805_v50  ;;  %v8349_v50 = vpop.permute.xlu1 %594 }
 0x44b   :  { %812 = vmax.xlane.f32.xlu1 %v811_v61  ;;  %v8351_v61 = vpop.permute.xlu0 %596 }
 0x45c   :  { %899 = vrot.lane.b32.xlu1 %v623_v19, %s7832_s21 }
 0x460   :  { %897 = vrot.lane.b32.xlu1 %v622_v7, %s7832_s21 }
 0x464   :  { %893 = vrot.lane.b32.xlu1 %v620_v33, %s7832_s21 }
 0x49b   :  { %v798_v58 = vpop.xlane.xlu1 %797 }
 0x49c   :  { %v818_v57 = vsub.f32 %v8203_v16, %v798_v58 }
 0x49d   :  { %v795_v19 = vpop.xlane.xlu0 %794 }
 0x49e   :  { %v827_v55 = vmul.f32 1.442695, %v818_v57  ;;  %v817_v52 = vsub.f32 %v8214_v62, %v795_v19 }
 0x49f   :  { %v904_v53 = vpop.permute.xlu1 %903 }
 0x4a0   :  { %7536 = vpow2.f32 %v827_v55  ;;  %v825_v49 = vmul.f32 1.442695, %v817_v52  ;;  %6864 = vmatprep.subr.mxu0 %v904_v53 }
 0x4a1   :  { %v804_v7 = vpop.xlane.xlu0 %803  ;;  %6865 = vmatpush3.msra.mxu0 %v904_v53 }
 0x4a2   :  { %7538 = vpow2.f32 %v825_v49  ;;  %v820_v33 = vsub.f32 %v8232_v10, %v804_v7 }
 0x4a4   :  { %v831_v44 = vmul.f32 1.442695, %v820_v33 }
 0x4a5   :  { %v801_v43 = vpop.xlane.xlu0 %800 }
 0x4a6   :  { %7540 = vpow2.f32 %v831_v44  ;;  %v819_v17 = vsub.f32 %v8249_v41, %v801_v43 }
 0x4a8   :  { %v829_v37 = vmul.f32 1.442695, %v819_v17 }
 0x4a9   :  { %v810_v58 = vpop.xlane.xlu0 %809 }
 0x4aa   :  { %7542 = vpow2.f32 %v829_v37  ;;  %v822_v57 = vsub.f32 %v8261_v2, %v810_v58 }
 0x4ac   :  { %v835_v16 = vmul.f32 1.442695, %v822_v57 }
 0x4ad   :  { %v8358_v62 = vpop.eup %7536  ;;  %v816_v52 = vpop.xlane.xlu0 %815 }
 0x4ae   :  { %7544 = vpow2.f32 %v835_v16  ;;  %v824_v53 = vsub.f32 %v8271_v1, %v816_v52  ;;  %v844_v49 = vsel %vm343_vm0, %v8358_v62, 0.0 }
 0x4af   :  { %v7539_v55 = vpop.eup %7538  ;;  %845 = vadd.xlane.f32.xlu1 %v844_v49  ;;  %v619_v49 = vmul.f32 %v8351_v61, %v8029_v30 }
 0x4b0   :  { %v839_v44 = vmul.f32 1.442695, %v824_v53  ;;  %v841_v43 = vsel %vm343_vm0, %v7539_v55, 0.0 }
 0x4b1   :  { %842 = vadd.xlane.f32.xlu0 %v841_v43  ;;  %v902_v10 = vpop.permute.xlu0 %901 }
 0x4b2   :  { %7546 = vpow2.f32 %v839_v44  ;;  %6866 = vmatprep.subr.mxu0 %v902_v10 }
 0x4b3   :  { %v8364_v37 = vpop.eup %7540  ;;  %6867 = vmatpush3.msra.mxu0 %v902_v10 }
 0x4b4   :  { %v850_v2 = vsel %vm343_vm0, %v8364_v37, 0.0 }
 0x4b5   :  { %851 = vadd.xlane.f32.xlu0 %v850_v2  ;;  %v896_v2 = vpop.permute.xlu0 %895 }
 0x4b7   :  { %v8368_v1 = vpop.eup %7542 }
 0x4b8   :  { %v847_v41 = vsel %vm343_vm0, %v8368_v1, 0.0 }
 0x4b9   :  { %848 = vadd.xlane.f32.xlu0 %v847_v41 }
 0x4bb   :  { %v8372_v17 = vpop.eup %7544 }
 0x4bc   :  { %v856_v19 = vsel %vm343_vm0, %v8372_v17, 0.0 }
 0x4bd   :  { %857 = vadd.xlane.f32.xlu0 %v856_v19 }
 0x4bf   :  { %v8376_v7 = vpop.eup %7546 }
 0x4c0   :  { %v862_v33 = vsel %vm343_vm0, %v8376_v7, 0.0 }
 0x4c1   :  { %863 = vadd.xlane.f32.xlu0 %v862_v33  ;;  %v618_v33 = vmul.f32 %v8349_v50, %v8031_v32 }
 0x4d0   :  { %v807_v58 = vpop.xlane.xlu1 %806 }
 0x4d1   :  { %v821_v57 = vsub.f32 %v8322_v29, %v807_v58 }
 0x4d3   :  { %v833_v16 = vmul.f32 1.442695, %v821_v57 }
 0x4d4   :  { %v813_v52 = vpop.xlane.xlu1 %812 }
 0x4d5   :  { %7548 = vpow2.f32 %v833_v16  ;;  %v823_v53 = vsub.f32 %v8330_v45, %v813_v52 }
 0x4d7   :  { %v837_v44 = vmul.f32 1.442695, %v823_v53  ;;  %891 = vrot.lane.b32.xlu0 %v619_v49, %s7832_s21 }
 0x4d8   :  { %v900_v43 = vpop.permute.xlu1 %899 }
 0x4d9   :  { %7550 = vpow2.f32 %v837_v44  ;;  %6868 = vmatprep.subr.mxu0 %v900_v43 }
 0x4da   :  { %6869 = vmatpush3.msra.mxu0 %v900_v43 }
 0x4dc   :  { %v898_v10 = vpop.permute.xlu1 %897 }
 0x4dd   :  { %6870 = vmatprep.subr.mxu0 %v898_v10 }
 0x4de   :  { %6871 = vmatpush3.msra.mxu0 %v898_v10 }
 0x4df   :  { %6872 = vmatprep.subr.mxu0 %v896_v2 }
 0x4e0   :  { %6873 = vmatpush3.msra.mxu0 %v896_v2  ;;  %v894_v29 = vpop.permute.xlu1 %893 }
 0x4e1   :  { %6874 = vmatprep.subr.mxu0 %v894_v29 }
 0x4e2   :  { %v7549_v41 = vpop.eup %7548  ;;  %6875 = vmatpush3.msra.mxu0 %v894_v29 }
 0x4e3   :  { %v853_v45 = vsel %vm343_vm0, %v7549_v41, 0.0 }
 0x4e4   :  { %854 = vadd.xlane.f32.xlu1 %v853_v45 }
 0x4e6   :  { %v7551_v30 = vpop.eup %7550 }
 0x4e7   :  { %v859_v19 = vsel %vm343_vm0, %v7551_v30, 0.0 }
 0x4e8   :  { %860 = vadd.xlane.f32.xlu1 %v859_v19 }
 0x4f9   :  { %889 = vrot.lane.b32.xlu1 %v618_v33, %s7832_s21 }
 0x538   :  { %v846_v10 = vpop.xlane.xlu1 %845 }
 0x53a   :  { %v843_v58 = vpop.xlane.xlu0 %842 }
 0x53b   :  { %7552 = vrcp.f32 %v843_v58 }
 0x53c   :  { %7554 = vrcp.f32 %v846_v10 }
 0x53e   :  { %v852_v57 = vpop.xlane.xlu0 %851 }
 0x542   :  { %v849_v16 = vpop.xlane.xlu0 %848 }
 0x543   :  { %7556 = vrcp.f32 %v849_v16  ;;  %v108_v16 = vld [vmem:[%s9891_s1 + $0x300] sm:$0xff] }
 0x544   :  { %7558 = vrcp.f32 %v852_v57 }
 0x546   :  { %v858_v52 = vpop.xlane.xlu0 %857 }
 0x547   :  { %7560 = vrcp.f32 %v858_v52  ;;  %v107_v52 = vld [vmem:[%s9891_s1 + $0x2f8] sm:$0xff] }
 0x548   :  { %v7553_v53 = vpop.eup %7552 }
 0x549   :  { %v873_v49 = vmul.f32 %v7553_v53, %v7539_v55  ;;  %v7555_v29 = vpop.eup %7554  ;;  %v109_v55 = vld [vmem:[%s9891_s1 + $0x308] sm:$0xff] }
 0x54a   :  { %v864_v44 = vpop.xlane.xlu0 %863  ;;  %v874_v33 = vmul.f32 %v7555_v29, %v8358_v62 }
 0x54b   :  { %6880 = vmatprep.mubr.msk.f32.mxu0 %vm343_vm0, %v873_v49 }
 0x54e   :  { %v892_v43 = vpop.permute.xlu0 %891 }
 0x54f   :  { %6876 = vmatprep.subr.mxu0 %v892_v43 }
 0x550   :  { %6877 = vmatpush3.msra.mxu0 %v892_v43  ;;  %v7557_v45 = vpop.eup %7556 }
 0x551   :  { %v7559_v58 = vpop.eup %7558  ;;  %v875_v57 = vmul.f32 %v7557_v45, %v8368_v1  ;;  %v106_v1 = vld [vmem:[%s9891_s1 + $0x2f0] sm:$0xff] }
 0x552   :  { %v876_v62 = vmul.f32 %v7559_v58, %v8364_v37 }
 0x554   :  { %v7561_v53 = vpop.eup %7560 }
 0x555   :  { %v878_v10 = vmul.f32 %v7561_v53, %v8372_v17 }
 0x56d   :  { %v855_v32 = vpop.xlane.xlu1 %854 }
 0x56e   :  { %7562 = vrcp.f32 %v855_v32 }
 0x56f   :  { %7564 = vrcp.f32 %v864_v44 }
 0x571   :  { %v861_v2 = vpop.xlane.xlu1 %860 }
 0x572   :  { %7566 = vrcp.f32 %v861_v2 }
 0x575   :  { %v890_v19 = vpop.permute.xlu1 %889 }
 0x576   :  { %6878 = vmatprep.subr.mxu0 %v890_v19 }
 0x577   :  { %6879 = vmatpush3.msra.mxu0 %v890_v19 }
 0x578   :  { %6881 = vmatmul.mubr.msk.f32.vlgmr.msra.gmra.mxu0 %vm343_vm0, %v874_v33  ;;  %6892 = vmatprep.subr.mxu0 %v109_v55 }
 0x579   :  { %6883 = vmatprep.mubr.msk.f32.mxu0 %vm343_vm0, %v875_v57  ;;  %6893 = vmatpush3.msra.mxu0 %v109_v55 }
 0x57a   :  { %6894 = vmatprep.subr.mxu0 %v108_v16 }
 0x57b   :  { %v7563_v49 = vpop.eup %7562  ;;  %6895 = vmatpush3.msra.mxu0 %v108_v16 }
 0x57c   :  { %6884 = vmatmul.mubr.msk.f32.gmra.mxu0 %vm343_vm0, %v876_v62  ;;  %v877_v44 = vmul.f32 %v7563_v49, %v7549_v41  ;;  %6896 = vmatprep.subr.mxu0 %v107_v52  ;;  %v7565_v43 = vpop.eup %7564 }
 0x57d   :  { %6897 = vmatpush3.msra.mxu0 %v107_v52  ;;  %v880_v2 = vmul.f32 %v7565_v43, %v8376_v7 }
 0x57e   :  { %6886 = vmatprep.mubr.msk.f32.mxu0 %vm343_vm0, %v877_v44  ;;  %6898 = vmatprep.subr.mxu0 %v106_v1  ;;  %v6162_v44 = vld [vmem:[%s9891_s1 + $0x2e0] ss:$0 sm:$0xff] }
 0x57f   :  { %v7567_v32 = vpop.eup %7566  ;;  %6899 = vmatpush3.msra.mxu0 %v106_v1 }
 0x580   :  { %6887 = vmatmul.mubr.msk.f32.gmra.mxu0 %vm343_vm0, %v878_v10  ;;  %v879_v37 = vmul.f32 %v7567_v32, %v7551_v30 }
 0x582   :  { %6889 = vmatprep.mubr.msk.f32.mxu0 %vm343_vm0, %v879_v37 }
 0x584   :  { %6890 = vmatmul.mubr.msk.f32.gmra.mxu0 %vm343_vm0, %v880_v2 }
 0x638   :  { %v6882_v41 = vpop.f32.mrf.mxu0 }
 0x63a   :  { %v1003_v29 = vpop.f32.mrf.mxu0 }
 0x63b   :  { %6900 = vmatprep.mubr.msk.f32.mxu0 %vm425_vm3, %v1003_v29 }
 0x63c   :  { %v6885_v45 = vpop.f32.mrf.mxu0  ;;  %6901 = vmatmul.mubr.msk.f32.vlgmr.msra.gmra.mxu0 %vm425_vm3, %v6882_v41 }
 0x63e   :  { %v1013_v17 = vpop.f32.mrf.mxu0 }
 0x63f   :  { %6903 = vmatprep.mubr.msk.f32.mxu0 %vm425_vm3, %v1013_v17 }
 0x640   :  { %v6888_v19 = vpop.f32.mrf.mxu0  ;;  %6904 = vmatmul.mubr.msk.f32.gmra.mxu0 %vm425_vm3, %v6885_v45 }
 0x642   :  { %v1023_v30 = vpop.f32.mrf.mxu0 }
 0x643   :  { %6906 = vmatprep.mubr.msk.f32.mxu0 %vm425_vm3, %v1023_v30 }
 0x644   :  { %v6891_v55 = vpop.f32.mrf.mxu0  ;;  %6907 = vmatmul.mubr.msk.f32.gmra.mxu0 %vm425_vm3, %v6888_v19 }
 0x646   :  { %v1033_v7 = vpop.f32.mrf.mxu0 }
 0x647   :  { %6909 = vmatprep.mubr.msk.f32.mxu0 %vm425_vm3, %v1033_v7 }
 0x648   :  { %6910 = vmatmul.mubr.msk.f32.gmra.mxu0 %vm425_vm3, %v6891_v55 }
 0x6fc   :  { %v6902_v33 = vpop.f32.mrf.mxu0 }
 0x6fe   :  { %v1132_v58 = vpop.f32.mrf.mxu0 }
 0x700   :  { %v6905_v57 = vpop.f32.mrf.mxu0 }
 0x701   :  { %v1172_v53 = vadd.f32 %v6905_v57, %v6902_v33  ;;  %v117_v57 = vld [vmem:[%s9891_s1 + $0x348] sm:$0xff] }
 0x702   :  { %v1142_v16 = vpop.f32.mrf.mxu0 }
 0x703   :  { %v1171_v49 = vadd.f32 %v1142_v16, %v1132_v58  ;;  %v116_v16 = vld [vmem:[%s9891_s1 + $0x340] sm:$0xff] }
 0x704   :  { %v6908_v52 = vpop.f32.mrf.mxu0 }
 0x705   :  { %v1174_v1 = vadd.f32 %v6908_v52, %v1172_v53 }
 0x706   :  { %v1152_v62 = vpop.f32.mrf.mxu0 }
 0x707   :  { %v1173_v10 = vadd.f32 %v1171_v49, %v1152_v62 }
 0x708   :  { %v6911_v43 = vpop.f32.mrf.mxu0 }
 0x709   :  { %v1176_v32 = vadd.f32 %v6911_v43, %v1174_v1 }
 0x70a   :  { %v1162_v37 = vpop.f32.mrf.mxu0 }
 0x70b   :  { %v1182_v2 = vadd.f32 %v6162_v44, %v1176_v32  ;;  %v1175_v41 = vadd.f32 %v1173_v10, %v1162_v37 }
 0x70d   :  { %v1184_v29 = vadd.f32 %v1182_v2, %v8012_v25  ;;  %v1181_v45 = vadd.f32 %v6162_v44, %v1175_v41  ;;  %v119_v25 = vld [vmem:[%s9891_s1 + $0x358] sm:$0xff] }
 0x70e   :  { %6912 = vmatprep.subr.mxu1 %v119_v25 }
 0x70f   :  { %v1183_v17 = vadd.f32 %v1181_v45, %v8010_v24  ;;  %v1188_v19 = vsel %vm425_vm3, %v1184_v29, 0.0  ;;  %v1194_v33 = vmul.f32 %v1184_v29, %v1184_v29  ;;  %v118_v24 = vld [vmem:[%s9891_s1 + $0x350] sm:$0xff]  ;;  %6913 = vmatpush3.msra.mxu1 %v119_v25 }
 0x710   :  { %1189 = vadd.xlane.f32.xlu1 %v1188_v19  ;;  %6914 = vmatprep.subr.mxu1 %v118_v24 }
 0x711   :  { %v1185_v30 = vsel %vm425_vm3, %v1183_v17, 0.0  ;;  %v1193_v55 = vmul.f32 %v1183_v17, %v1183_v17  ;;  %v1198_v58 = vsel %vm425_vm3, %v1194_v33, 0.0  ;;  %6915 = vmatpush3.msra.mxu1 %v118_v24 }
 0x712   :  { %1186 = vadd.xlane.f32.xlu0 %v1185_v30  ;;  %6916 = vmatprep.subr.mxu1 %v117_v57 }
 0x713   :  { %v1195_v7 = vsel %vm425_vm3, %v1193_v55, 0.0  ;;  %6917 = vmatpush3.msra.mxu1 %v117_v57 }
 0x714   :  { %6918 = vmatprep.subr.mxu1 %v116_v16 }
 0x715   :  { %6919 = vmatpush3.msra.mxu1 %v116_v16 }
 0x716   :  { %1196 = vadd.xlane.f32.xlu0 %v1195_v7  ;;  %v6163_v7 = vld [vmem:[%s9891_s1 + $0x3a8] ss:$0 sm:$0xff] }
 0x71a   :  { %1199 = vadd.xlane.f32.xlu0 %v1198_v58  ;;  %v6164_v58 = vld [vmem:[%s9891_s1 + $0x3a0] ss:$0 sm:$0xff] }
 0x799   :  { %v1190_v62 = vpop.xlane.xlu1 %1189 }
 0x79a   :  { %v1192_v1 = vmul.f32 0.03125, %v1190_v62 }
 0x79b   :  { %v1187_v52 = vpop.xlane.xlu0 %1186 }
 0x79c   :  { %v1191_v53 = vmul.f32 0.03125, %v1187_v52  ;;  %v1204_v37 = vmul.f32 %v1192_v1, %v1192_v1  ;;  %v1212_v25 = vsub.f32 %v1184_v29, %v1192_v1  ;;  %v126_v29 = vld [vmem:[%s9891_s1 + $0x390] sm:$0xff]  ;;  %v124_v1 = vld [vmem:[%s9891_s1 + $0x380] sm:$0xff] }
 0x79e   :  { %v1203_v44 = vmul.f32 %v1191_v53, %v1191_v53  ;;  %v1211_v30 = vsub.f32 %v1183_v17, %v1191_v53  ;;  %v127_v17 = vld [vmem:[%s9891_s1 + $0x398] sm:$0xff]  ;;  %v125_v53 = vld [vmem:[%s9891_s1 + $0x388] sm:$0xff] }
 0x79f   :  { %v1197_v49 = vpop.xlane.xlu0 %1196  ;;  %6923 = vmatprep.subr.mxu0 %v127_v17 }
 0x7a0   :  { %v1201_v43 = vmul.f32 0.03125, %v1197_v49  ;;  %6924 = vmatpush3.msra.mxu0 %v127_v17 }
 0x7a1   :  { %6925 = vmatprep.subr.mxu0 %v126_v29 }
 0x7a2   :  { %v1205_v10 = vsub.f32 %v1201_v43, %v1203_v44  ;;  %6926 = vmatpush3.msra.mxu0 %v126_v29  ;;  %v123_v44 = vld [vmem:[%s9891_s1 + $0x378] sm:$0xff]  ;;  %v122_v43 = vld [vmem:[%s9891_s1 + $0x370] sm:$0xff] }
 0x7a3   :  { %v1200_v32 = vpop.xlane.xlu0 %1199  ;;  %6927 = vmatprep.subr.mxu0 %v125_v53 }
 0x7a4   :  { %v1207_v2 = vadd.f32 1e-06, %v1205_v10  ;;  %v1202_v41 = vmul.f32 0.03125, %v1200_v32  ;;  %6928 = vmatpush3.msra.mxu0 %v125_v53  ;;  %v121_v10 = vld [vmem:[%s9891_s1 + $0x368] sm:$0xff]  ;;  %v120_v32 = vld [vmem:[%s9891_s1 + $0x360] sm:$0xff] }
 0x7a5   :  { %6929 = vmatprep.subr.mxu0 %v124_v1 }
 0x7a6   :  { %7568 = vrsqrt.f32 %v1207_v2  ;;  %v1206_v45 = vsub.f32 %v1202_v41, %v1204_v37  ;;  %6930 = vmatpush3.msra.mxu0 %v124_v1  ;;  %v6165_v37 = vld [vmem:[%s9891_s1 + $0x330] ss:$0 sm:$0xff] }
 0x7a7   :  { %6931 = vmatprep.subr.mxu0 %v123_v44 }
 0x7a8   :  { %v1208_v19 = vadd.f32 1e-06, %v1206_v45  ;;  %6932 = vmatpush3.msra.mxu0 %v123_v44 }
 0x7a9   :  { %6933 = vmatprep.subr.mxu0 %v122_v43 }
 0x7aa   :  { %7570 = vrsqrt.f32 %v1208_v19  ;;  %6934 = vmatpush3.msra.mxu0 %v122_v43 }
 0x7ab   :  { %6935 = vmatprep.subr.mxu0 %v121_v10 }
 0x7ac   :  { %6936 = vmatpush3.msra.mxu0 %v121_v10 }
 0x7ad   :  { %6937 = vmatprep.subr.mxu0 %v120_v32 }
 0x7ae   :  { %6938 = vmatpush3.msra.mxu0 %v120_v32 }
 0x7b3   :  { %v7569_v55 = vpop.eup %7568 }
 0x7b4   :  { %v1213_v33 = vmul.f32 %v7569_v55, %v1211_v30 }
 0x7b6   :  { %v1219_v24 = vmul.f32 %v6163_v7, %v1213_v33 }
 0x7b7   :  { %v7571_v57 = vpop.eup %7570 }
 0x7b8   :  { %v1214_v16 = vmul.f32 %v7571_v57, %v1212_v25  ;;  %v1225_v52 = vadd.f32 %v6164_v58, %v1219_v24 }
 0x7ba   :  { %v1220_v62 = vmul.f32 %v6163_v7, %v1214_v16  ;;  %6920 = vmatprep.mubr.msk.f32.mxu1 %vm425_vm3, %v1225_v52 }
 0x7bc   :  { %v1226_v49 = vadd.f32 %v6164_v58, %v1220_v62 }
 0x7be   :  { %6921 = vmatmul.mubr.msk.f32.vlgmr.msra.gmra.mxu1 %vm425_vm3, %v1226_v49 }
 0x87e   :  { %v6922_v2 = vpop.f32.mrf.mxu1 }
 0x87f   :  { %v1309_v41 = vadd.f32 %v6922_v2, %v6165_v37 }
 0x880   :  { %v1303_v45 = vpop.f32.mrf.mxu1 }
 0x881   :  { %v1313_v19 = vmul.f32 %v1309_v41, %v1309_v41  ;;  %v1304_v30 = vadd.f32 %v6165_v37, %v1303_v45  ;;  %v6168_v37 = vld [vmem:[%s9891_s1 + $0x338] ss:$0 sm:$0xff] }
 0x883   :  { %v1315_v55 = vmul.f32 %v1313_v19, %v1309_v41  ;;  %v1312_v7 = vmul.f32 %v1304_v30, %v1304_v30 }
 0x885   :  { %v1317_v33 = vmul.f32 0.044715, %v1315_v55  ;;  %v1314_v58 = vmul.f32 %v1312_v7, %v1304_v30 }
 0x887   :  { %v1319_v25 = vadd.f32 %v1317_v33, %v1309_v41  ;;  %v1316_v24 = vmul.f32 0.044715, %v1314_v58 }
 0x889   :  { %v1321_v57 = vmul.f32 0.7978846, %v1319_v25  ;;  %v1318_v16 = vadd.f32 %v1316_v24, %v1304_v30 }
 0x88b   :  { %7572 = vtanh.f32 %v1321_v57  ;;  %v1320_v62 = vmul.f32 0.7978846, %v1318_v16  ;;  %v139_v16 = vld [vmem:[%s9891_s1 + $0x3f8] sm:$0xff] }
 0x88d   :  { %7574 = vtanh.f32 %v1320_v62  ;;  %v138_v62 = vld [vmem:[%s9891_s1 + $0x3f0] sm:$0xff] }
 0x898   :  { %v7573_v17 = vpop.eup %7572 }
 0x899   :  { %v1325_v29 = vadd.f32 1.0, %v7573_v17 }
 0x89a   :  { %v7575_v53 = vpop.eup %7574 }
 0x89b   :  { %v1324_v1 = vadd.f32 1.0, %v7575_v53  ;;  %v1327_v44 = vmul.f32 0.5, %v1325_v29 }
 0x89d   :  { %v1326_v43 = vmul.f32 0.5, %v1324_v1  ;;  %v1329_v32 = vmul.f32 %v1327_v44, %v1309_v41 }
 0x89f   :  { %v1328_v10 = vmul.f32 %v1326_v43, %v1304_v30 }
 0x8a1   :  { %6939 = vmatprep.mubr.msk.f32.mxu0 %vm343_vm0, %v1328_v10 }
 0x8a2   :  { %6940 = vmatmul.mubr.msk.f32.vlgmr.msra.gmra.mxu0 %vm343_vm0, %v1329_v32 }
 0x962   :  { %v6941_v2 = vpop.f32.mrf.mxu0 }
 0x963   :  { %v1412_v45 = vadd.f32 %v6941_v2, %v6168_v37 }
 0x964   :  { %v1406_v19 = vpop.f32.mrf.mxu0 }
 0x965   :  { %v1416_v55 = vadd.f32 %v1412_v45, %v1226_v49  ;;  %v1407_v7 = vadd.f32 %v6168_v37, %v1406_v19  ;;  %v141_v49 = vld [vmem:[%s9891_s1 + $0x408] sm:$0xff] }
 0x966   :  { %6942 = vmatprep.subr.mxu1 %v141_v49 }
 0x967   :  { %v1415_v33 = vadd.f32 %v1407_v7, %v1225_v52  ;;  %v1420_v58 = vsel %vm425_vm3, %v1416_v55, 0.0  ;;  %v1426_v25 = vmul.f32 %v1416_v55, %v1416_v55  ;;  %v140_v52 = vld [vmem:[%s9891_s1 + $0x400] sm:$0xff]  ;;  %6943 = vmatpush3.msra.mxu1 %v141_v49 }
 0x968   :  { %1421 = vadd.xlane.f32.xlu0 %v1420_v58  ;;  %6944 = vmatprep.subr.mxu1 %v140_v52 }
 0x969   :  { %v1417_v41 = vsel %vm425_vm3, %v1415_v33, 0.0  ;;  %v1425_v30 = vmul.f32 %v1415_v33, %v1415_v33  ;;  %v1430_v24 = vsel %vm425_vm3, %v1426_v25, 0.0  ;;  %6945 = vmatpush3.msra.mxu1 %v140_v52 }
 0x96a   :  { %1418 = vadd.xlane.f32.xlu1 %v1417_v41  ;;  %6946 = vmatprep.subr.mxu1 %v139_v16 }
 0x96b   :  { %v1427_v57 = vsel %vm425_vm3, %v1425_v30, 0.0  ;;  %6947 = vmatpush3.msra.mxu1 %v139_v16 }
 0x96c   :  { %1431 = vadd.xlane.f32.xlu0 %v1430_v24  ;;  %6948 = vmatprep.subr.mxu1 %v138_v62  ;;  %v6171_v24 = vld [vmem:[%s9891_s1 + $0x3b8] ss:$0 sm:$0xff] }
 0x96d   :  { %6949 = vmatpush3.msra.mxu1 %v138_v62  ;;  %v6172_v62 = vld [vmem:[%s9891_s1 + $0x3b0] ss:$0 sm:$0xff] }
 0x96e   :  { %1428 = vadd.xlane.f32.xlu1 %v1427_v57 }
 0x9f1   :  { %v1422_v17 = vpop.xlane.xlu0 %1421 }
 0x9f2   :  { %v1424_v29 = vmul.f32 0.03125, %v1422_v17 }
 0x9f3   :  { %v1419_v53 = vpop.xlane.xlu1 %1418 }
 0x9f4   :  { %v1423_v1 = vmul.f32 0.03125, %v1419_v53  ;;  %v1436_v43 = vmul.f32 %v1424_v29, %v1424_v29  ;;  %v1444_v25 = vsub.f32 %v1416_v55, %v1424_v29  ;;  %v6173_v55 = vld [vmem:[%s9891_s1 + $0x3c8] ss:$0 sm:$0xff] }
 0x9f5   :  { %v1432_v44 = vpop.xlane.xlu0 %1431 }
 0x9f6   :  { %v1434_v10 = vmul.f32 0.03125, %v1432_v44  ;;  %v1435_v37 = vmul.f32 %v1423_v1, %v1423_v1  ;;  %v1443_v30 = vsub.f32 %v1415_v33, %v1423_v1 }
 0x9f7   :  { %v1429_v32 = vpop.xlane.xlu1 %1428 }
 0x9f8   :  { %v1438_v2 = vsub.f32 %v1434_v10, %v1436_v43  ;;  %v1433_v45 = vmul.f32 0.03125, %v1429_v32 }
 0x9fa   :  { %v1440_v19 = vadd.f32 1e-06, %v1438_v2  ;;  %v1437_v7 = vsub.f32 %v1433_v45, %v1435_v37 }
 0x9fc   :  { %7576 = vrsqrt.f32 %v1440_v19  ;;  %v1439_v58 = vadd.f32 1e-06, %v1437_v7 }
 0x9fe   :  { %7578 = vrsqrt.f32 %v1439_v58 }
 0xa09   :  { %v7577_v41 = vpop.eup %7576 }
 0xa0a   :  { %v1446_v57 = vmul.f32 %v7577_v41, %v1444_v25 }
 0xa0b   :  { %v7579_v49 = vpop.eup %7578 }
 0xa0c   :  { %v1445_v52 = vmul.f32 %v7579_v49, %v1443_v30  ;;  %v1452_v16 = vmul.f32 %v6171_v24, %v1446_v57 }
 0xa0e   :  { %v1451_v17 = vmul.f32 %v6171_v24, %v1445_v52  ;;  %v8508_v44 = vadd.f32 %v6172_v62, %v1452_v16 }
 0xa10   :  { %v8506_v53 = vadd.f32 %v6172_v62, %v1451_v17 }
 0xa12   :  { %6950 = vmatprep.mubr.msk.f32.mxu1 %vm425_vm3, %v8506_v53 }
 0xa13   :  { %6951 = vmatmul.mubr.msk.f32.vlgmr.msra.gmra.mxu1 %vm425_vm3, %v8508_v44 }
 0xad3   :  { %v6952_v33 = vpop.f32.mrf.mxu1 }
 0xad4   :  { %v8517_v29 = vadd.f32 %v6952_v33, %v6173_v55 }
 0xad5   :  { %v1535_v1 = vpop.f32.mrf.mxu1 }
 0xad6   :  { %v8519_v43 = vadd.f32 %v6173_v55, %v1535_v1  ;;  %v1551_v10 = vmul.f32 %v8517_v29, %v8018_v21  ;;  %v1549_v37 = vmul.f32 %v8517_v29, %v8022_v26  ;;  %v1547_v2 = vmul.f32 %v8517_v29, %v8039_v60 }
 0xad7   :  { %v1545_v19 = vmul.f32 %v8517_v29, %v8051_v63 }
 0xad8   :  { %1582 = vrot.lane.b32.xlu1 %v1551_v10, %s7831_s20  ;;  %6969 = vmatprep.mubr.msk.f32.mxu0 %vm425_vm3, %v8519_v43  ;;  %v1550_v32 = vmul.f32 %v8519_v43, %v8020_v23  ;;  %v1548_v45 = vmul.f32 %v8519_v43, %v8024_v27  ;;  %v1546_v7 = vmul.f32 %v8519_v43, %v8037_v59 }
 0xad9   :  { %v1544_v58 = vmul.f32 %v8519_v43, %v8061_v4 }
 0xada   :  { %1580 = vrot.lane.b32.xlu0 %v1550_v32, %s7831_s20 }
 0xadc   :  { %1578 = vrot.lane.b32.xlu1 %v1549_v37, %s7831_s20 }
 0xade   :  { %1574 = vrot.lane.b32.xlu0 %v1547_v2, %s7831_s20 }
 0xae0   :  { %1576 = vrot.lane.b32.xlu1 %v1548_v45, %s7831_s20 }
 0xae2   :  { %1570 = vrot.lane.b32.xlu0 %v1545_v19, %s7831_s20 }
 0xae4   :  { %1572 = vrot.lane.b32.xlu1 %v1546_v7, %s7831_s20 }
 0xae8   :  { %1568 = vrot.lane.b32.xlu1 %v1544_v58, %s7831_s20 }
 0xb4a   :  { %v1583_v25 = vpop.permute.xlu1 %1582 }
 0xb4b   :  { %6953 = vmatprep.subr.msk.mxu0 %vm425_vm3, %v1583_v25 }
 0xb4c   :  { %6954 = vmatpush3.xpose.msk.msra.mxu0 %vm425_vm3, %v1583_v25  ;;  %v1581_v41 = vpop.permute.xlu0 %1580 }
 0xb4d   :  { %6955 = vmatprep.subr.msk.mxu0 %vm425_vm3, %v1581_v41 }
 0xb4e   :  { %v1579_v30 = vpop.permute.xlu1 %1578 }
 0xb50   :  { %6956 = vmatpush3.xpose.msk.msra.mxu0 %vm425_vm3, %v1581_v41  ;;  %v1575_v57 = vpop.permute.xlu0 %1574 }
 0xb51   :  { %6957 = vmatprep.subr.msk.mxu0 %vm425_vm3, %v1579_v30 }
 0xb52   :  { %v1577_v24 = vpop.permute.xlu1 %1576 }
 0xb54   :  { %6958 = vmatpush3.xpose.msk.msra.mxu0 %vm425_vm3, %v1579_v30  ;;  %v1571_v52 = vpop.permute.xlu0 %1570 }
 0xb55   :  { %6959 = vmatprep.subr.msk.mxu0 %vm425_vm3, %v1577_v24 }
 0xb56   :  { %v1573_v49 = vpop.permute.xlu1 %1572 }
 0xb58   :  { %6960 = vmatpush3.xpose.msk.msra.mxu0 %vm425_vm3, %v1577_v24 }
 0xb59   :  { %6961 = vmatprep.subr.msk.mxu0 %vm425_vm3, %v1575_v57 }
 0xb5a   :  { %v1569_v16 = vpop.permute.xlu1 %1568 }
 0xb5c   :  { %6962 = vmatpush3.xpose.msk.msra.mxu0 %vm425_vm3, %v1575_v57 }
 0xb5d   :  { %6963 = vmatprep.subr.msk.mxu0 %vm425_vm3, %v1573_v49 }
 0xb60   :  { %6964 = vmatpush3.xpose.msk.msra.mxu0 %vm425_vm3, %v1573_v49 }
 0xb61   :  { %6965 = vmatprep.subr.msk.mxu0 %vm425_vm3, %v1571_v52 }
 0xb64   :  { %6966 = vmatpush3.xpose.msk.msra.mxu0 %vm425_vm3, %v1571_v52 }
 0xb65   :  { %6967 = vmatprep.subr.msk.mxu0 %vm425_vm3, %v1569_v16 }
 0xb68   :  { %6968 = vmatpush3.xpose.msk.msra.mxu0 %vm425_vm3, %v1569_v16 }
 0xb6b   :  { %6970 = vmatmul.mubr.msk.f32.vlgmr.msra.gmra.mxu0 %vm425_vm3, %v8517_v29 }
 0xb6c   :  { %6972 = vmatprep.mubr.msk.f32.mxu0 %vm425_vm3, %v8519_v43 }
 0xb6f   :  { %6973 = vmatmul.mubr.msk.f32.gmra.mxu0 %vm425_vm3, %v8517_v29 }
 0xb70   :  { %6975 = vmatprep.mubr.msk.f32.mxu0 %vm425_vm3, %v8519_v43 }
 0xb73   :  { %6976 = vmatmul.mubr.msk.f32.gmra.mxu0 %vm425_vm3, %v8517_v29 }
 0xb74   :  { %6978 = vmatprep.mubr.msk.f32.mxu0 %vm425_vm3, %v8519_v43 }
 0xb77   :  { %6979 = vmatmul.mubr.msk.f32.gmra.mxu0 %vm425_vm3, %v8517_v29 }
 0xc2b   :  { %v6971_v62 = vpop.f32.mrf.mxu0 }
 0xc2c   :  { %v1712_v17 = vmul.f32 0.35355338, %v6971_v62 }
 0xc2d   :  { %v1672_v55 = vpop.f32.mrf.mxu0 }
 0xc2e   :  { %v1711_v33 = vmul.f32 0.35355338, %v1672_v55  ;;  %v1720_v1 = vadd.f32 %v1712_v17, %v8182_v8 }
 0xc2f   :  { %v6974_v10 = vpop.f32.mrf.mxu0 }
 0xc30   :  { %v1730_v32 = vsel %vm343_vm0, %v1720_v1, -inf  ;;  %v1719_v37 = vadd.f32 %v1711_v33, %v8196_v11  ;;  %v1714_v45 = vmul.f32 0.35355338, %v6974_v10 }
 0xc31   :  { %1731 = vmax.xlane.f32.xlu1 %v1730_v32  ;;  %v1682_v2 = vpop.f32.mrf.mxu0 }
 0xc32   :  { %v1713_v19 = vmul.f32 0.35355338, %v1682_v2  ;;  %v1727_v7 = vsel %vm343_vm0, %v1719_v37, -inf  ;;  %v1722_v49 = vadd.f32 %v1714_v45, %v8209_v22  ;;  %v1559_v45 = vmul.f32 %v8517_v29, %v8266_v31 }
 0xc33   :  { %1728 = vmax.xlane.f32.xlu0 %v1727_v7  ;;  %v6977_v58 = vpop.f32.mrf.mxu0  ;;  %v1558_v7 = vmul.f32 %v8519_v43, %v8282_v18 }
 0xc34   :  { %v1721_v25 = vadd.f32 %v1713_v19, %v8236_v39  ;;  %v1716_v30 = vmul.f32 0.35355338, %v6977_v58  ;;  %v1736_v17 = vsel %vm343_vm0, %v1722_v49, -inf  ;;  %v1557_v19 = vmul.f32 %v8517_v29, %v8334_v15 }
 0xc35   :  { %v1692_v41 = vpop.f32.mrf.mxu0  ;;  %v1555_v58 = vmul.f32 %v8517_v29, %v8292_v54 }
 0xc36   :  { %v1715_v24 = vmul.f32 0.35355338, %v1692_v41  ;;  %v1733_v57 = vsel %vm343_vm0, %v1721_v25, -inf  ;;  %v1724_v33 = vadd.f32 %v1716_v30, %v8252_v9 }
 0xc37   :  { %1734 = vmax.xlane.f32.xlu0 %v1733_v57  ;;  %v6980_v52 = vpop.f32.mrf.mxu0 }
 0xc38   :  { %v1723_v16 = vadd.f32 %v1715_v24, %v8315_v28  ;;  %v1718_v62 = vmul.f32 0.35355338, %v6980_v52  ;;  %v1742_v10 = vsel %vm343_vm0, %v1724_v33, -inf  ;;  %v1556_v52 = vmul.f32 %v8519_v43, %v8336_v40 }
 0xc39   :  { %v1702_v41 = vpop.f32.mrf.mxu0 }
 0xc3a   :  { %v1739_v55 = vsel %vm343_vm0, %v1723_v16, -inf  ;;  %v1726_v32 = vadd.f32 %v1718_v62, %v8264_v6  ;;  %v1717_v30 = vmul.f32 0.35355338, %v1702_v41  ;;  %v1554_v62 = vmul.f32 %v8519_v43, %v8343_v14 }
 0xc3b   :  { %1737 = vmax.xlane.f32.xlu0 %v1736_v17  ;;  %1740 = vmax.xlane.f32.xlu1 %v1739_v55 }
 0xc3c   :  { %v1748_v2 = vsel %vm343_vm0, %v1726_v32, -inf  ;;  %v8604_v24 = vadd.f32 %v1717_v30, %v8325_v48 }
 0xc3e   :  { %v1745_v57 = vsel %vm343_vm0, %v8604_v24, -inf }
 0xc3f   :  { %1743 = vmax.xlane.f32.xlu0 %v1742_v10 }
 0xc43   :  { %1749 = vmax.xlane.f32.xlu0 %v1748_v2 }
 0xc4c   :  { %1837 = vrot.lane.b32.xlu1 %v1559_v45, %s7832_s21 }
 0xc50   :  { %1833 = vrot.lane.b32.xlu1 %v1557_v19, %s7832_s21 }
 0xc59   :  { %1835 = vrot.lane.b32.xlu0 %v1558_v7, %s7832_s21 }
 0xc5d   :  { %1829 = vrot.lane.b32.xlu0 %v1555_v58, %s7832_s21 }
 0xc74   :  { %1746 = vmax.xlane.f32.xlu1 %v1745_v57 }
 0xc85   :  { %1831 = vrot.lane.b32.xlu1 %v1556_v52, %s7832_s21 }
 0xc89   :  { %1827 = vrot.lane.b32.xlu1 %v1554_v62, %s7832_s21 }
 0xcba   :  { %v1732_v17 = vpop.xlane.xlu1 %1731 }
 0xcbb   :  { %v1752_v55 = vsub.f32 %v1720_v1, %v1732_v17 }
 0xcbc   :  { %v1729_v10 = vpop.xlane.xlu0 %1728 }
 0xcbd   :  { %v1761_v2 = vmul.f32 1.442695, %v1752_v55  ;;  %v1751_v45 = vsub.f32 %v1719_v37, %v1729_v10 }
 0xcbf   :  { %7580 = vpow2.f32 %v1761_v2  ;;  %v1759_v19 = vmul.f32 1.442695, %v1751_v45 }
 0xcc0   :  { %v1735_v7 = vpop.xlane.xlu0 %1734 }
 0xcc1   :  { %7582 = vpow2.f32 %v1759_v19  ;;  %v1753_v58 = vsub.f32 %v1721_v25, %v1735_v7 }
 0xcc3   :  { %v1763_v41 = vmul.f32 1.442695, %v1753_v58 }
 0xcc4   :  { %v1738_v30 = vpop.xlane.xlu0 %1737  ;;  %v1741_v57 = vpop.xlane.xlu1 %1740 }
 0xcc5   :  { %7584 = vpow2.f32 %v1763_v41  ;;  %v1754_v52 = vsub.f32 %v1722_v49, %v1738_v30  ;;  %v1755_v48 = vsub.f32 %v1723_v16, %v1741_v57  ;;  %v1553_v57 = vmul.f32 %v8517_v29, %v8351_v61 }
 0xcc6   :  { %v1552_v29 = vmul.f32 %v8519_v43, %v8349_v50 }
 0xcc7   :  { %v1765_v6 = vmul.f32 1.442695, %v1754_v52  ;;  %v1767_v28 = vmul.f32 1.442695, %v1755_v48 }
 0xcc8   :  { %v1744_v9 = vpop.xlane.xlu0 %1743  ;;  %v1838_v62 = vpop.permute.xlu1 %1837 }
 0xcc9   :  { %7586 = vpow2.f32 %v1765_v6  ;;  %v1756_v1 = vsub.f32 %v1724_v33, %v1744_v9  ;;  %6981 = vmatprep.subr.mxu1 %v1838_v62 }
 0xcca   :  { %7588 = vpow2.f32 %v1767_v28  ;;  %6982 = vmatpush3.msra.mxu1 %v1838_v62 }
 0xccb   :  { %v1769_v37 = vmul.f32 1.442695, %v1756_v1 }
 0xccc   :  { %v8614_v17 = vpop.eup %7580  ;;  %v1750_v55 = vpop.xlane.xlu0 %1749 }
 0xccd   :  { %7590 = vpow2.f32 %v1769_v37  ;;  %v1758_v25 = vsub.f32 %v1726_v32, %v1750_v55  ;;  %v1778_v10 = vsel %vm343_vm0, %v8614_v17, 0.0  ;;  %v1834_v6 = vpop.permute.xlu1 %1833 }
 0xcce   :  { %v7583_v49 = vpop.eup %7582  ;;  %1779 = vadd.xlane.f32.xlu0 %v1778_v10 }
 0xccf   :  { %v1773_v16 = vmul.f32 1.442695, %v1758_v25  ;;  %v1775_v48 = vsel %vm343_vm0, %v7583_v49, 0.0 }
 0xcd0   :  { %v1836_v2 = vpop.permute.xlu0 %1835  ;;  %1776 = vadd.xlane.f32.xlu1 %v1775_v48 }
 0xcd1   :  { %7592 = vpow2.f32 %v1773_v16  ;;  %6983 = vmatprep.subr.mxu1 %v1836_v2 }
 0xcd2   :  { %v8619_v9 = vpop.eup %7584  ;;  %6984 = vmatpush3.msra.mxu1 %v1836_v2 }
 0xcd3   :  { %6985 = vmatprep.subr.mxu1 %v1834_v6  ;;  %v1781_v28 = vsel %vm343_vm0, %v8619_v9, 0.0 }
 0xcd4   :  { %6986 = vmatpush3.msra.mxu1 %v1834_v6  ;;  %1782 = vadd.xlane.f32.xlu1 %v1781_v28  ;;  %v1830_v55 = vpop.permute.xlu0 %1829 }
 0xcd6   :  { %v8623_v33 = vpop.eup %7586 }
 0xcd7   :  { %v8625_v32 = vpop.eup %7588  ;;  %v1784_v45 = vsel %vm343_vm0, %v8623_v33, 0.0 }
 0xcd8   :  { %1785 = vadd.xlane.f32.xlu0 %v1784_v45  ;;  %v1787_v19 = vsel %vm343_vm0, %v8625_v32, 0.0 }
 0xcd9   :  { %1788 = vadd.xlane.f32.xlu1 %v1787_v19 }
 0xcda   :  { %v8631_v7 = vpop.eup %7590 }
 0xcdb   :  { %v1790_v58 = vsel %vm343_vm0, %v8631_v7, 0.0 }
 0xcdc   :  { %1791 = vadd.xlane.f32.xlu0 %v1790_v58 }
 0xcde   :  { %v8635_v41 = vpop.eup %7592 }
 0xcdf   :  { %v1796_v30 = vsel %vm343_vm0, %v8635_v41, 0.0 }
 0xce0   :  { %1797 = vadd.xlane.f32.xlu0 %v1796_v30 }
 0xcf6   :  { %1825 = vrot.lane.b32.xlu0 %v1553_v57, %s7832_s21 }
 0xcfd   :  { %v1747_v52 = vpop.xlane.xlu1 %1746 }
 0xcfe   :  { %v1757_v62 = vsub.f32 %v8604_v24, %v1747_v52 }
 0xd00   :  { %v1771_v1 = vmul.f32 1.442695, %v1757_v62 }
 0xd01   :  { %v1832_v37 = vpop.permute.xlu1 %1831 }
 0xd02   :  { %7594 = vpow2.f32 %v1771_v1  ;;  %6987 = vmatprep.subr.mxu1 %v1832_v37 }
 0xd03   :  { %6988 = vmatpush3.msra.mxu1 %v1832_v37 }
 0xd04   :  { %6989 = vmatprep.subr.mxu1 %v1830_v55 }
 0xd05   :  { %6990 = vmatpush3.msra.mxu1 %v1830_v55  ;;  %v1828_v25 = vpop.permute.xlu1 %1827 }
 0xd06   :  { %6991 = vmatprep.subr.mxu1 %v1828_v25 }
 0xd07   :  { %6992 = vmatpush3.msra.mxu1 %v1828_v25 }
 0xd0f   :  { %v7595_v10 = vpop.eup %7594 }
 0xd10   :  { %v1793_v16 = vsel %vm343_vm0, %v7595_v10, 0.0 }
 0xd11   :  { %1794 = vadd.xlane.f32.xlu1 %v1793_v16  ;;  %v136_v16 = vld [vmem:[%s9891_s1 + $0x3e0] sm:$0xff] }
 0xd22   :  { %1823 = vrot.lane.b32.xlu1 %v1552_v29, %s7832_s21 }
 0xd57   :  { %v1780_v48 = vpop.xlane.xlu0 %1779 }
 0xd59   :  { %v1777_v24 = vpop.xlane.xlu1 %1776 }
 0xd5a   :  { %7596 = vrcp.f32 %v1777_v24  ;;  %v135_v24 = vld [vmem:[%s9891_s1 + $0x3d8] sm:$0xff] }
 0xd5b   :  { %7598 = vrcp.f32 %v1780_v48 }
 0xd5d   :  { %v1783_v30 = vpop.xlane.xlu1 %1782 }
 0xd5e   :  { %7600 = vrcp.f32 %v1783_v30 }
 0xd61   :  { %v1786_v2 = vpop.xlane.xlu0 %1785 }
 0xd62   :  { %v1789_v57 = vpop.xlane.xlu1 %1788  ;;  %7602 = vrcp.f32 %v1786_v2  ;;  %v134_v2 = vld [vmem:[%s9891_s1 + $0x3d0] sm:$0xff] }
 0xd63   :  { %7604 = vrcp.f32 %v1789_v57 }
 0xd65   :  { %v1792_v6 = vpop.xlane.xlu0 %1791 }
 0xd66   :  { %7606 = vrcp.f32 %v1792_v6 }
 0xd67   :  { %v7597_v28 = vpop.eup %7596 }
 0xd68   :  { %v1807_v45 = vmul.f32 %v7597_v28, %v7583_v49  ;;  %v7599_v52 = vpop.eup %7598  ;;  %v137_v49 = vld [vmem:[%s9891_s1 + $0x3e8] sm:$0xff] }
 0xd69   :  { %v1798_v19 = vpop.xlane.xlu0 %1797  ;;  %v1808_v37 = vmul.f32 %v7599_v52, %v8614_v17 }
 0xd6a   :  { %6997 = vmatprep.mubr.msk.f32.mxu1 %vm343_vm0, %v1807_v45  ;;  %7608 = vrcp.f32 %v1798_v19 }
 0xd6b   :  { %v7601_v62 = vpop.eup %7600 }
 0xd6c   :  { %v1809_v25 = vmul.f32 %v7601_v62, %v8619_v9 }
 0xd6d   :  { %v1826_v58 = vpop.permute.xlu0 %1825 }
 0xd6e   :  { %6993 = vmatprep.subr.mxu1 %v1826_v58 }
 0xd6f   :  { %6994 = vmatpush3.msra.mxu1 %v1826_v58  ;;  %v7603_v55 = vpop.eup %7602 }
 0xd70   :  { %v7605_v29 = vpop.eup %7604  ;;  %v1810_v17 = vmul.f32 %v7603_v55, %v8623_v33 }
 0xd71   :  { %v1811_v9 = vmul.f32 %v7605_v29, %v8625_v32 }
 0xd73   :  { %v7607_v48 = vpop.eup %7606 }
 0xd74   :  { %v1812_v28 = vmul.f32 %v7607_v48, %v8631_v7 }
 0xd77   :  { %v7609_v6 = vpop.eup %7608 }
 0xd78   :  { %v1814_v45 = vmul.f32 %v7609_v6, %v8635_v41 }
 0xd9a   :  { %v1795_v43 = vpop.xlane.xlu1 %1794 }
 0xd9b   :  { %7610 = vrcp.f32 %v1795_v43 }
 0xd9e   :  { %v1824_v1 = vpop.permute.xlu1 %1823 }
 0xd9f   :  { %6995 = vmatprep.subr.mxu1 %v1824_v1 }
 0xda0   :  { %6996 = vmatpush3.msra.mxu1 %v1824_v1 }
 0xda1   :  { %6998 = vmatmul.mubr.msk.f32.vlgmr.msra.gmra.mxu1 %vm343_vm0, %v1808_v37  ;;  %7009 = vmatprep.subr.mxu1 %v137_v49 }
 0xda2   :  { %7000 = vmatprep.mubr.msk.f32.mxu1 %vm343_vm0, %v1809_v25  ;;  %7010 = vmatpush3.msra.mxu1 %v137_v49 }
 0xda3   :  { %7011 = vmatprep.subr.mxu1 %v136_v16 }
 0xda4   :  { %7012 = vmatpush3.msra.mxu1 %v136_v16 }
 0xda5   :  { %7001 = vmatmul.mubr.msk.f32.gmra.mxu1 %vm343_vm0, %v1810_v17  ;;  %7013 = vmatprep.subr.mxu1 %v135_v24 }
 0xda6   :  { %7003 = vmatprep.mubr.msk.f32.mxu1 %vm343_vm0, %v1811_v9  ;;  %7014 = vmatpush3.msra.mxu1 %v135_v24  ;;  %v6208_v24 = vld [vmem:[%s9891_s1 + $0x3c0] ss:$0 sm:$0xff] }
 0xda7   :  { %7015 = vmatprep.subr.mxu1 %v134_v2 }
 0xda8   :  { %v7611_v33 = vpop.eup %7610  ;;  %7016 = vmatpush3.msra.mxu1 %v134_v2 }
 0xda9   :  { %7004 = vmatmul.mubr.msk.f32.gmra.mxu1 %vm343_vm0, %v1812_v28  ;;  %v1813_v32 = vmul.f32 %v7611_v33, %v7595_v10 }
 0xdab   :  { %7006 = vmatprep.mubr.msk.f32.mxu1 %vm343_vm0, %v1813_v32 }
 0xdad   :  { %7007 = vmatmul.mubr.msk.f32.gmra.mxu1 %vm343_vm0, %v1814_v45 }
 0xe61   :  { %v6999_v19 = vpop.f32.mrf.mxu1 }
 0xe63   :  { %v1937_v58 = vpop.f32.mrf.mxu1 }
 0xe64   :  { %7017 = vmatprep.mubr.msk.f32.mxu1 %vm425_vm3, %v1937_v58 }
 0xe65   :  { %v7002_v30 = vpop.f32.mrf.mxu1  ;;  %7018 = vmatmul.mubr.msk.f32.vlgmr.msra.gmra.mxu1 %vm425_vm3, %v6999_v19 }
 0xe67   :  { %v1947_v7 = vpop.f32.mrf.mxu1 }
 0xe68   :  { %7020 = vmatprep.mubr.msk.f32.mxu1 %vm425_vm3, %v1947_v7 }
 0xe69   :  { %v7005_v57 = vpop.f32.mrf.mxu1  ;;  %7021 = vmatmul.mubr.msk.f32.gmra.mxu1 %vm425_vm3, %v7002_v30 }
 0xe6b   :  { %v1957_v10 = vpop.f32.mrf.mxu1 }
 0xe6c   :  { %7023 = vmatprep.mubr.msk.f32.mxu1 %vm425_vm3, %v1957_v10 }
 0xe6d   :  { %v7008_v43 = vpop.f32.mrf.mxu1  ;;  %7024 = vmatmul.mubr.msk.f32.gmra.mxu1 %vm425_vm3, %v7005_v57 }
 0xe6f   :  { %v1967_v41 = vpop.f32.mrf.mxu1 }
 0xe70   :  { %7026 = vmatprep.mubr.msk.f32.mxu1 %vm425_vm3, %v1967_v41  ;;  %v146_v41 = vld [vmem:[%s9891_s1 + $0x430] sm:$0xff] }
 0xe71   :  { %7027 = vmatmul.mubr.msk.f32.gmra.mxu1 %vm425_vm3, %v7008_v43  ;;  %v147_v43 = vld [vmem:[%s9891_s1 + $0x438] sm:$0xff] }
 0xe72   :  { %7029 = vmatprep.subr.mxu0 %v147_v43 }
 0xe73   :  { %7030 = vmatpush3.msra.mxu0 %v147_v43 }
 0xe74   :  { %7031 = vmatprep.subr.mxu0 %v146_v41 }
 0xe75   :  { %7032 = vmatpush3.msra.mxu0 %v146_v41 }
 0xf25   :  { %v7019_v52 = vpop.f32.mrf.mxu1 }
 0xf27   :  { %v2066_v62 = vpop.f32.mrf.mxu1 }
 0xf29   :  { %v7022_v1 = vpop.f32.mrf.mxu1 }
 0xf2a   :  { %v2106_v55 = vadd.f32 %v7022_v1, %v7019_v52  ;;  %v145_v52 = vld [vmem:[%s9891_s1 + $0x428] sm:$0xff]  ;;  %v7798_v1 = vld [vmem:[%s9891_s1 + $0x510] sm:$0xff] }
 0xf2b   :  { %v2076_v49 = vpop.f32.mrf.mxu1  ;;  %7033 = vmatprep.subr.mxu0 %v145_v52 }
 0xf2c   :  { %v2105_v16 = vadd.f32 %v2076_v49, %v2066_v62  ;;  %v144_v62 = vld [vmem:[%s9891_s1 + $0x420] sm:$0xff]  ;;  %7034 = vmatpush3.msra.mxu0 %v145_v52 }
 0xf2d   :  { %v7025_v37 = vpop.f32.mrf.mxu1  ;;  %7035 = vmatprep.subr.mxu0 %v144_v62 }
 0xf2e   :  { %v2108_v29 = vadd.f32 %v7025_v37, %v2106_v55  ;;  %7036 = vmatpush3.msra.mxu0 %v144_v62 }
 0xf2f   :  { %v2086_v25 = vpop.f32.mrf.mxu1  ;;  %7059 = vmatprep.subr.mxu0 %v7798_v1 }
 0xf30   :  { %v2107_v48 = vadd.f32 %v2105_v16, %v2086_v25 }
 0xf31   :  { %v7028_v17 = vpop.f32.mrf.mxu1 }
 0xf32   :  { %v2110_v9 = vadd.f32 %v7028_v17, %v2108_v29 }
 0xf33   :  { %v2096_v2 = vpop.f32.mrf.mxu1 }
 0xf34   :  { %v2116_v6 = vadd.f32 %v6208_v24, %v2110_v9  ;;  %v2109_v28 = vadd.f32 %v2107_v48, %v2096_v2 }
 0xf36   :  { %v2118_v33 = vadd.f32 %v2116_v6, %v8508_v44  ;;  %v2115_v32 = vadd.f32 %v6208_v24, %v2109_v28  ;;  %v181_v44 = vld [vmem:[%s9890_s0 + $0x10] sm:$0xff] }
 0xf38   :  { %v2117_v45 = vadd.f32 %v2115_v32, %v8506_v53  ;;  %v2122_v19 = vsel %vm425_vm3, %v2118_v33, 0.0  ;;  %v2128_v57 = vmul.f32 %v2118_v33, %v2118_v33  ;;  %v182_v53 = vld [vmem:[%s9890_s0 + $0x18] sm:$0xff] }
 0xf39   :  { %2123 = vadd.xlane.f32.xlu1 %v2122_v19 }
 0xf3a   :  { %v2119_v58 = vsel %vm425_vm3, %v2117_v45, 0.0  ;;  %v2127_v30 = vmul.f32 %v2117_v45, %v2117_v45  ;;  %v2132_v10 = vsel %vm425_vm3, %v2128_v57, 0.0  ;;  %v6210_v57 = vld [vmem:[%s9891_s1 + $0x480] ss:$0 sm:$0xff] }
 0xf3b   :  { %2120 = vadd.xlane.f32.xlu0 %v2119_v58 }
 0xf3c   :  { %v2129_v7 = vsel %vm425_vm3, %v2127_v30, 0.0  ;;  %v6209_v30 = vld [vmem:[%s9891_s1 + $0x488] ss:$0 sm:$0xff] }
 0xf3f   :  { %2130 = vadd.xlane.f32.xlu0 %v2129_v7 }
 0xf43   :  { %2133 = vadd.xlane.f32.xlu0 %v2132_v10 }
 0xf4a   :  { %2394 = vperm.xlu1 %7531, %v181_v44  }
 0xf59   :  { %2397 = vperm.xlu0 %7530, %v182_v53  }
 0xfc2   :  { %v2124_v55 = vpop.xlane.xlu1 %2123 }
 0xfc3   :  { %v2126_v16 = vmul.f32 0.03125, %v2124_v55  ;;  %v7800_v55 = vld [vmem:[%s9891_s1 + $0x500] sm:$0xff] }
 0xfc4   :  { %v2121_v49 = vpop.xlane.xlu0 %2120 }
 0xfc5   :  { %v2125_v37 = vmul.f32 0.03125, %v2121_v49  ;;  %v2138_v9 = vmul.f32 %v2126_v16, %v2126_v16  ;;  %v2146_v10 = vsub.f32 %v2118_v33, %v2126_v16  ;;  %v9974_v49 = vmov 0.0   ;;  %v7799_v33 = vld [vmem:[%s9891_s1 + $0x508] sm:$0xff] }
 0xfc6   :  { %v2395_v53 = vpop.permute.xlu1 %2394 }
 0xfc7   :  { %v2137_v29 = vmul.f32 %v2125_v37, %v2125_v37  ;;  %v2145_v19 = vsub.f32 %v2117_v45, %v2125_v37  ;;  %vm2399_vm2 = vcmp.eq.s32.totalorder %v7882_v12, %v2395_v53 }
 0xfc8   :  { %v2131_v25 = vpop.xlane.xlu0 %2130  ;;  %v6219_v37 = vsel %vm2399_vm2, 1.0, %v9974_v49 }
 0xfc9   :  { %v2135_v24 = vmul.f32 0.03125, %v2131_v25  ;;  %v7801_v25 = vld [vmem:[%s9891_s1 + $0x4f8] sm:$0xff] }
 0xfcb   :  { %v2139_v17 = vsub.f32 %v2135_v24, %v2137_v29  ;;  %v7803_v29 = vld [vmem:[%s9891_s1 + $0x4e8] sm:$0xff]  ;;  %v7804_v24 = vld [vmem:[%s9891_s1 + $0x4e0] sm:$0xff] }
 0xfcc   :  { %v2134_v48 = vpop.xlane.xlu0 %2133 }
 0xfcd   :  { %v2141_v2 = vadd.f32 1e-06, %v2139_v17  ;;  %v2136_v6 = vmul.f32 0.03125, %v2134_v48  ;;  %v7805_v17 = vld [vmem:[%s9891_s1 + $0x4d8] sm:$0xff] }
 0xfcf   :  { %7612 = vrsqrt.f32 %v2141_v2  ;;  %v2140_v28 = vsub.f32 %v2136_v6, %v2138_v9  ;;  %v155_v9 = vld [vmem:[%s9891_s1 + $0x478] sm:$0xff]  ;;  %v154_v2 = vld [vmem:[%s9891_s1 + $0x470] sm:$0xff]  ;;  %v153_v6 = vld [vmem:[%s9891_s1 + $0x468] sm:$0xff] }
 0xfd0   :  { %7040 = vmatprep.subr.mxu1 %v155_v9 }
 0xfd1   :  { %v2142_v32 = vadd.f32 1e-06, %v2140_v28  ;;  %7041 = vmatpush3.msra.mxu1 %v155_v9  ;;  %v152_v28 = vld [vmem:[%s9891_s1 + $0x460] sm:$0xff] }
 0xfd2   :  { %7042 = vmatprep.subr.mxu1 %v154_v2 }
 0xfd3   :  { %7614 = vrsqrt.f32 %v2142_v32  ;;  %7043 = vmatpush3.msra.mxu1 %v154_v2  ;;  %v151_v32 = vld [vmem:[%s9891_s1 + $0x458] sm:$0xff] }
 0xfd4   :  { %v2398_v16 = vpop.permute.xlu0 %2397  ;;  %7044 = vmatprep.subr.mxu1 %v153_v6 }
 0xfd5   :  { %vm2400_vm1 = vcmp.eq.s32.totalorder %v7882_v12, %v2398_v16  ;;  %7045 = vmatpush3.msra.mxu1 %v153_v6 }
 0xfd6   :  { %v6220_v48 = vsel %vm2400_vm1, 1.0, %v9974_v49  ;;  %7046 = vmatprep.subr.mxu1 %v152_v28 }
 0xfd7   :  { %7047 = vmatpush3.msra.mxu1 %v152_v28 }
 0xfd8   :  { %7048 = vmatprep.subr.mxu1 %v151_v32 }
 0xfd9   :  { %7049 = vmatpush3.msra.mxu1 %v151_v32 }
 0xfdc   :  { %v7613_v58 = vpop.eup %7612 }
 0xfdd   :  { %v2147_v7 = vmul.f32 %v7613_v58, %v2145_v19  ;;  %v150_v19 = vld [vmem:[%s9891_s1 + $0x450] sm:$0xff]  ;;  %v149_v58 = vld [vmem:[%s9891_s1 + $0x448] sm:$0xff] }
 0xfde   :  { %7050 = vmatprep.subr.mxu1 %v150_v19 }
 0xfdf   :  { %v2153_v44 = vmul.f32 %v6209_v30, %v2147_v7  ;;  %7051 = vmatpush3.msra.mxu1 %v150_v19  ;;  %v6211_v7 = vld [vmem:[%s9891_s1 + $0x410] ss:$0 sm:$0xff] }
 0xfe0   :  { %v7615_v43 = vpop.eup %7614  ;;  %7052 = vmatprep.subr.mxu1 %v149_v58 }
 0xfe1   :  { %v2148_v41 = vmul.f32 %v7615_v43, %v2146_v10  ;;  %v8717_v52 = vadd.f32 %v6210_v57, %v2153_v44  ;;  %7053 = vmatpush3.msra.mxu1 %v149_v58 }
 0xfe3   :  { %v2154_v45 = vmul.f32 %v6209_v30, %v2148_v41  ;;  %7037 = vmatprep.mubr.msk.f32.mxu0 %vm425_vm3, %v8717_v52  ;;  %v148_v30 = vld [vmem:[%s9891_s1 + $0x440] sm:$0xff] }
 0xfe4   :  { %7054 = vmatprep.subr.mxu1 %v148_v30 }
 0xfe5   :  { %v8722_v62 = vadd.f32 %v6210_v57, %v2154_v45  ;;  %7055 = vmatpush3.msra.mxu1 %v148_v30 }
 0xfe7   :  { %7038 = vmatmul.mubr.msk.f32.vlgmr.msra.gmra.mxu0 %vm425_vm3, %v8722_v62 }
 0xfe8   :  { %7060 = vmatpush3.msra.mxu0 %v7798_v1  ;;  %7075 = vmatprep.mubr.msk.f32.mxu0 %vm343_vm0, %v6219_v37  ;;  %v7802_v1 = vld [vmem:[%s9891_s1 + $0x4f0] sm:$0xff] }
 0xfe9   :  { %7061 = vmatprep.subr.mxu0 %v7799_v33 }
 0xfea   :  { %7062 = vmatpush3.msra.mxu0 %v7799_v33 }
 0xfeb   :  { %7063 = vmatprep.subr.mxu0 %v7800_v55 }
 0xfec   :  { %7064 = vmatpush3.msra.mxu0 %v7800_v55 }
 0xfed   :  { %7065 = vmatprep.subr.mxu0 %v7801_v25 }
 0xfee   :  { %7066 = vmatpush3.msra.mxu0 %v7801_v25 }
 0xfef   :  { %7067 = vmatprep.subr.mxu0 %v7802_v1 }
 0xff0   :  { %7068 = vmatpush3.msra.mxu0 %v7802_v1 }
 0xff1   :  { %7069 = vmatprep.subr.mxu0 %v7803_v29 }
 0xff2   :  { %7070 = vmatpush3.msra.mxu0 %v7803_v29 }
 0xff3   :  { %7071 = vmatprep.subr.mxu0 %v7804_v24 }
 0xff4   :  { %7072 = vmatpush3.msra.mxu0 %v7804_v24  ;;  %v164_v24 = vld [vmem:[%s9891_s1 + $0x4c0] sm:$0xff] }
 0xff5   :  { %7073 = vmatprep.subr.mxu0 %v7805_v17 }
 0xff6   :  { %7074 = vmatpush3.msra.mxu0 %v7805_v17 }
 0xff7   :  { %7076 = vmatmul.mubr.msk.f32.vlgmr.msra.gmra.mxu0 %vm343_vm0, %v6220_v48  ;;  %v163_v48 = vld [vmem:[%s9891_s1 + $0x4b8] sm:$0xff] }
0x10a7   :  { %v7039_v57 = vpop.f32.mrf.mxu0 }
0x10a8   :  { %v2243_v10 = vadd.f32 %v7039_v57, %v6211_v7 }
0x10a9   :  { %v2237_v44 = vpop.f32.mrf.mxu0 }
0x10aa   :  { %v2247_v53 = vmul.f32 %v2243_v10, %v2243_v10  ;;  %v2238_v43 = vadd.f32 %v6211_v7, %v2237_v44 }
0x10ac   :  { %v2249_v41 = vmul.f32 %v2247_v53, %v2243_v10  ;;  %v2246_v45 = vmul.f32 %v2238_v43, %v2238_v43 }
0x10ae   :  { %v2251_v37 = vmul.f32 0.044715, %v2249_v41  ;;  %v2248_v33 = vmul.f32 %v2246_v45, %v2238_v43 }
0x10b0   :  { %v2253_v55 = vadd.f32 %v2251_v37, %v2243_v10  ;;  %v2250_v25 = vmul.f32 0.044715, %v2248_v33 }
0x10b2   :  { %v2255_v1 = vmul.f32 0.7978846, %v2253_v55  ;;  %v2252_v16 = vadd.f32 %v2250_v25, %v2238_v43  ;;  %v56_v25 = vld [vmem:[%s9891_s1 + $0x160] sm:$0xff] }
0x10b3   :  { %7078 = vmatprep.subr.mxu1 %v56_v25 }
0x10b4   :  { %7616 = vtanh.f32 %v2255_v1  ;;  %v2254_v29 = vmul.f32 0.7978846, %v2252_v16  ;;  %v55_v1 = vld [vmem:[%s9891_s1 + $0x158] sm:$0xff]  ;;  %v54_v16 = vld [vmem:[%s9891_s1 + $0x150] sm:$0xff] }
0x10b6   :  { %7618 = vtanh.f32 %v2254_v29 }
0x10b7   :  { %v7077_v17 = vpop.f32.mrf.mxu0 }
0x10b8   :  { %v2483_v9 = vadd.f32 %v7077_v17, %v164_v24 }
0x10b9   :  { %v2477_v2 = vpop.f32.mrf.mxu0 }
0x10ba   :  { %v2478_v6 = vadd.f32 %v2477_v2, %v163_v48  ;;  %v2489_v28 = vsel %vm425_vm3, %v2483_v9, 0.0  ;;  %v2495_v32 = vmul.f32 %v2483_v9, %v2483_v9 }
0x10bb   :  { %2490 = vadd.xlane.f32.xlu0 %v2489_v28 }
0x10bc   :  { %v2486_v19 = vsel %vm425_vm3, %v2478_v6, 0.0  ;;  %v2494_v58 = vmul.f32 %v2478_v6, %v2478_v6  ;;  %v2499_v30 = vsel %vm425_vm3, %v2495_v32, 0.0 }
0x10bd   :  { %2487 = vadd.xlane.f32.xlu1 %v2486_v19 }
0x10be   :  { %v2496_v7 = vsel %vm425_vm3, %v2494_v58, 0.0 }
0x10bf   :  { %2500 = vadd.xlane.f32.xlu0 %v2499_v30 }
0x10c1   :  { %v7617_v57 = vpop.eup %7616  ;;  %2497 = vadd.xlane.f32.xlu1 %v2496_v7 }
0x10c2   :  { %v2259_v44 = vadd.f32 1.0, %v7617_v57 }
0x10c3   :  { %v7619_v53 = vpop.eup %7618 }
0x10c4   :  { %v2258_v41 = vadd.f32 1.0, %v7619_v53  ;;  %v2261_v45 = vmul.f32 0.5, %v2259_v44 }
0x10c6   :  { %v2260_v37 = vmul.f32 0.5, %v2258_v41  ;;  %v2263_v55 = vmul.f32 %v2261_v45, %v2243_v10  ;;  %v53_v10 = vld [vmem:[%s9891_s1 + $0x148] sm:$0xff] }
0x10c8   :  { %v2262_v33 = vmul.f32 %v2260_v37, %v2238_v43  ;;  %v6223_v37 = vld [vmem:[%s9891_s1 + $0x4d0] ss:$0 sm:$0xff] }
0x10ca   :  { %7056 = vmatprep.mubr.msk.f32.mxu1 %vm343_vm0, %v2262_v33 }
0x10cb   :  { %7057 = vmatmul.mubr.msk.f32.vlgmr.msra.gmra.mxu1 %vm343_vm0, %v2263_v55 }
0x10cc   :  { %7079 = vmatpush3.msra.mxu1 %v56_v25 }
0x10cd   :  { %7080 = vmatprep.subr.mxu1 %v55_v1 }
0x10ce   :  { %7081 = vmatpush3.msra.mxu1 %v55_v1 }
0x10cf   :  { %7082 = vmatprep.subr.mxu1 %v54_v16 }
0x10d0   :  { %7083 = vmatpush3.msra.mxu1 %v54_v16  ;;  %v6224_v16 = vld [vmem:[%s9891_s1 + $0x4c8] ss:$0 sm:$0xff] }
0x10d1   :  { %7084 = vmatprep.subr.mxu1 %v53_v10 }
0x10d2   :  { %7085 = vmatpush3.msra.mxu1 %v53_v10 }
0x1144   :  { %v2491_v43 = vpop.xlane.xlu0 %2490 }
0x1145   :  { %v2493_v29 = vmul.f32 0.03125, %v2491_v43 }
0x1146   :  { %v2488_v24 = vpop.xlane.xlu1 %2487 }
0x1147   :  { %v2492_v17 = vmul.f32 0.03125, %v2488_v24  ;;  %v2505_v2 = vmul.f32 %v2493_v29, %v2493_v29  ;;  %v2513_v53 = vsub.f32 %v2483_v9, %v2493_v29  ;;  %v6225_v29 = vld [vmem:[%s9891_s1 + $0x120] ss:$0 sm:$0xff] }
0x1148   :  { %v2501_v48 = vpop.xlane.xlu0 %2500 }
0x1149   :  { %v2503_v28 = vmul.f32 0.03125, %v2501_v48  ;;  %v2504_v19 = vmul.f32 %v2492_v17, %v2492_v17  ;;  %v2512_v45 = vsub.f32 %v2478_v6, %v2492_v17 }
0x114a   :  { %v2498_v32 = vpop.xlane.xlu1 %2497 }
0x114b   :  { %v2507_v58 = vsub.f32 %v2503_v28, %v2505_v2  ;;  %v2502_v30 = vmul.f32 0.03125, %v2498_v32 }
0x114d   :  { %v2509_v7 = vadd.f32 1e-06, %v2507_v58  ;;  %v2506_v57 = vsub.f32 %v2502_v30, %v2504_v19 }
0x114f   :  { %7620 = vrsqrt.f32 %v2509_v7  ;;  %v2508_v44 = vadd.f32 1e-06, %v2506_v57 }
0x1151   :  { %7622 = vrsqrt.f32 %v2508_v44 }
0x115c   :  { %v7621_v41 = vpop.eup %7620 }
0x115d   :  { %v2515_v33 = vmul.f32 %v7621_v41, %v2513_v53 }
0x115e   :  { %v7623_v55 = vpop.eup %7622 }
0x115f   :  { %v2514_v25 = vmul.f32 %v7623_v55, %v2512_v45  ;;  %v2521_v1 = vmul.f32 %v6223_v37, %v2515_v33 }
0x1161   :  { %v2520_v10 = vmul.f32 %v6223_v37, %v2514_v25  ;;  %v8811_v24 = vadd.f32 %v6224_v16, %v2521_v1 }
0x1163   :  { %v8809_v43 = vadd.f32 %v6224_v16, %v2520_v10  ;;  %v9975_v10 = vand.u32 15, %v7882_v12 }
0x1165   :  { %7086 = vmatprep.mubr.msk.f32.mxu1 %vm425_vm3, %v8809_v43 }
0x1166   :  { %7087 = vmatmul.mubr.msk.f32.vlgmr.msra.gmra.mxu1 %vm425_vm3, %v8811_v24 }
0x118b   :  { %v8817_v9 = vpop.f32.mrf.mxu1 }
0x118d   :  { %v8819_v6 = vpop.f32.mrf.mxu1 }
0x1226   :  { %v7088_v17 = vpop.f32.mrf.mxu1 }
0x1227   :  { %v8824_v48 = vadd.f32 %v7088_v17, %v6225_v29  ;;  %v9976_v17 = vand.u32 15, %v7969_v51  ;;  %v9980_v51 = vmov -10000.0  }
0x1228   :  { %v2604_v2 = vpop.f32.mrf.mxu1 }
0x1229   :  { %v8826_v28 = vadd.f32 %v6225_v29, %v2604_v2  ;;  %v2620_v32 = vmul.f32 %v8824_v48, %v8018_v21  ;;  %v2618_v58 = vmul.f32 %v8824_v48, %v8022_v26  ;;  %v2616_v30 = vmul.f32 %v8824_v48, %v8039_v60 }
0x122a   :  { %v2614_v57 = vmul.f32 %v8824_v48, %v8051_v63  ;;  %v8886_v29 = vand.u32 7, %v9975_v10  ;;  %v275_v2 = vand.u32 7, %v9976_v17 }
0x122b   :  { %2651 = vrot.lane.b32.xlu1 %v2620_v32, %s7831_s20  ;;  %7105 = vmatprep.mubr.msk.f32.mxu1 %vm425_vm3, %v8826_v28  ;;  %v2619_v19 = vmul.f32 %v8826_v28, %v8020_v23  ;;  %v2617_v7 = vmul.f32 %v8826_v28, %v8024_v27  ;;  %v2615_v44 = vmul.f32 %v8826_v28, %v8037_v59  ;;  %v9977_v32 = vand.u32 15, %v7922_v34 }
0x122c   :  { %v2613_v53 = vmul.f32 %v8826_v28, %v8061_v4  ;;  %vm283_vm6 = vcmp.le.s32.totalorder %v8886_v29, %v275_v2 }
0x122d   :  { %2649 = vrot.lane.b32.xlu0 %v2619_v19, %s7831_s20  ;;  %v274_v19 = vand.u32 7, %v9977_v32  ;;  %vm291_vm11 = vmand %vm8147_vm4, %vm283_vm6 }
0x122f   :  { %2647 = vrot.lane.b32.xlu1 %v2618_v58, %s7831_s20  ;;  %vm282_vm10 = vcmp.le.s32.totalorder %v8886_v29, %v274_v19  ;;  %v9978_v58 = vand.u32 15, %v7955_v46 }
0x1230   :  { %vm290_vm14 = vmand %vm8158_vm7, %vm282_vm10 }
0x1231   :  { %2643 = vrot.lane.b32.xlu0 %v2616_v30, %s7831_s20  ;;  %v276_v30 = vand.u32 7, %v9978_v58 }
0x1233   :  { %2645 = vrot.lane.b32.xlu1 %v2617_v7, %s7831_s20  ;;  %v9979_v7 = vand.u32 15, %v7958_v47  ;;  %vm284_vm2 = vcmp.le.s32.totalorder %v8886_v29, %v276_v30  ;;  %v9982_v47 = vand.u32 15, %v7932_v38 }
0x1234   :  { %vm292_vm7 = vmand %vm8198_vm15, %vm284_vm2  ;;  %vm6067_vm2 = vcmask 7168  }
0x1235   :  { %2639 = vrot.lane.b32.xlu0 %v2614_v57, %s7831_s20  ;;  %v277_v57 = vand.u32 7, %v9979_v7  ;;  %v279_v56 = vand.u32 7, %v9982_v47 }
0x1237   :  { %2641 = vrot.lane.b32.xlu1 %v2615_v44, %s7831_s20  ;;  %v8903_v44 = vsel %vm291_vm11, 0.0, %v9980_v51  ;;  %vm285_vm4 = vcmp.le.s32.totalorder %v8886_v29, %v277_v57  ;;  %vm287_vm10 = vcmp.le.s32.totalorder %v8886_v29, %v279_v56 }
0x1238   :  { %vm293_vm6 = vmand %vm8166_vm9, %vm285_vm4 }
0x1239   :  { %v8938_v3 = vsel %vm293_vm6, 0.0, %v9980_v51  ;;  %vm295_vm15 = vmand %vm8225_vm8, %vm287_vm10 }
0x123b   :  { %2637 = vrot.lane.b32.xlu1 %v2613_v53, %s7831_s20  ;;  %v9981_v53 = vand.u32 15, %v7942_v42 }
0x129d   :  { %v2652_v41 = vpop.permute.xlu1 %2651 }
0x129e   :  { %7089 = vmatprep.subr.msk.mxu1 %vm425_vm3, %v2652_v41 }
0x129f   :  { %7090 = vmatpush3.xpose.msk.msra.mxu1 %vm425_vm3, %v2652_v41  ;;  %v2650_v45 = vpop.permute.xlu0 %2649  ;;  %v278_v41 = vand.u32 7, %v9981_v53 }
0x12a0   :  { %7091 = vmatprep.subr.msk.mxu1 %vm425_vm3, %v2650_v45 }
0x12a1   :  { %v2648_v37 = vpop.permute.xlu1 %2647  ;;  %vm286_vm1 = vcmp.le.s32.totalorder %v8886_v29, %v278_v41 }
0x12a2   :  { %vm294_vm9 = vmand %vm8294_vm5, %vm286_vm1 }
0x12a3   :  { %7092 = vmatpush3.xpose.msk.msra.mxu1 %vm425_vm3, %v2650_v45  ;;  %v2644_v55 = vpop.permute.xlu0 %2643  ;;  %v8909_v45 = vsel %vm290_vm14, 0.0, %v9980_v51  ;;  %v8944_v35 = vsel %vm294_vm9, 0.0, %v9980_v51 }
0x12a4   :  { %7093 = vmatprep.subr.msk.mxu1 %vm425_vm3, %v2648_v37 }
0x12a5   :  { %v2646_v33 = vpop.permute.xlu1 %2645 }
0x12a7   :  { %7094 = vmatpush3.xpose.msk.msra.mxu1 %vm425_vm3, %v2648_v37  ;;  %v2640_v1 = vpop.permute.xlu0 %2639 }
0x12a8   :  { %7095 = vmatprep.subr.msk.mxu1 %vm425_vm3, %v2646_v33 }
0x12a9   :  { %v2642_v25 = vpop.permute.xlu1 %2641 }
0x12ab   :  { %7096 = vmatpush3.xpose.msk.msra.mxu1 %vm425_vm3, %v2646_v33 }
0x12ac   :  { %7097 = vmatprep.subr.msk.mxu1 %vm425_vm3, %v2644_v55 }
0x12ad   :  { %v2638_v16 = vpop.permute.xlu1 %2637 }
0x12af   :  { %7098 = vmatpush3.xpose.msk.msra.mxu1 %vm425_vm3, %v2644_v55 }
0x12b0   :  { %7099 = vmatprep.subr.msk.mxu1 %vm425_vm3, %v2642_v25 }
0x12b3   :  { %7100 = vmatpush3.xpose.msk.msra.mxu1 %vm425_vm3, %v2642_v25  ;;  %v8928_v25 = vsel %vm292_vm7, 0.0, %v9980_v51 }
0x12b4   :  { %7101 = vmatprep.subr.msk.mxu1 %vm425_vm3, %v2640_v1 }
0x12b7   :  { %7102 = vmatpush3.xpose.msk.msra.mxu1 %vm425_vm3, %v2640_v1 }
0x12b8   :  { %7103 = vmatprep.subr.msk.mxu1 %vm425_vm3, %v2638_v16 }
0x12bb   :  { %7104 = vmatpush3.xpose.msk.msra.mxu1 %vm425_vm3, %v2638_v16  ;;  %v281_v16 = vand.u32 7, %v9983_v13  ;;  %v2627_v13 = vmul.f32 %v8826_v28, %v8282_v18 }
0x12bd   :  { %vm289_vm11 = vcmp.le.s32.totalorder %v8886_v29, %v281_v16  ;;  %v2624_v16 = vmul.f32 %v8824_v48, %v8292_v54 }
0x12be   :  { %7106 = vmatmul.mubr.msk.f32.vlgmr.msra.gmra.mxu1 %vm425_vm3, %v8824_v48  ;;  %vm297_vm8 = vmand %vm8242_vm12, %vm289_vm11 }
0x12bf   :  { %7108 = vmatprep.mubr.msk.f32.mxu1 %vm425_vm3, %v8826_v28  ;;  %v8959_v56 = vsel %vm297_vm8, 0.0, %v9980_v51 }
0x12c2   :  { %7109 = vmatmul.mubr.msk.f32.gmra.mxu1 %vm425_vm3, %v8824_v48 }
0x12c3   :  { %7111 = vmatprep.mubr.msk.f32.mxu1 %vm425_vm3, %v8826_v28 }
0x12c6   :  { %7112 = vmatmul.mubr.msk.f32.gmra.mxu1 %vm425_vm3, %v8824_v48 }
0x12c7   :  { %7114 = vmatprep.mubr.msk.f32.mxu1 %vm425_vm3, %v8826_v28 }
0x12ca   :  { %7115 = vmatmul.mubr.msk.f32.gmra.mxu1 %vm425_vm3, %v8824_v48 }
0x137e   :  { %v7107_v34 = vpop.f32.mrf.mxu1 }
0x137f   :  { %v2781_v46 = vmul.f32 0.35355338, %v7107_v34  ;;  %v8950_v34 = vsel %vm295_vm15, 0.0, %v9980_v51 }
0x1380   :  { %v2741_v0 = vpop.f32.mrf.mxu1 }
0x1381   :  { %v8915_v37 = vadd.f32 %v2781_v46, %v8903_v44  ;;  %v2780_v33 = vmul.f32 0.35355338, %v2741_v0 }
0x1382   :  { %v7110_v55 = vpop.f32.mrf.mxu1 }
0x1383   :  { %v8921_v42 = vadd.f32 %v2780_v33, %v8909_v45  ;;  %v2799_v38 = vsel %vm343_vm0, %v8915_v37, -inf  ;;  %v2783_v10 = vmul.f32 0.35355338, %v7110_v55 }
0x1384   :  { %2800 = vmax.xlane.f32.xlu1 %v2799_v38  ;;  %v2751_v1 = vpop.f32.mrf.mxu1  ;;  %v2628_v38 = vmul.f32 %v8824_v48, %v8266_v31 }
0x1385   :  { %v2782_v17 = vmul.f32 0.35355338, %v2751_v1  ;;  %v2796_v2 = vsel %vm343_vm0, %v8921_v42, -inf  ;;  %v2791_v30 = vadd.f32 %v2783_v10, %v8938_v3  ;;  %v2626_v1 = vmul.f32 %v8824_v48, %v8334_v15  ;;  %v9984_v10 = vld [vmem:[#allocation6_spill] sm:$0xff] }
0x1386   :  { %2797 = vmax.xlane.f32.xlu0 %v2796_v2  ;;  %v7113_v32 = vpop.f32.mrf.mxu1 }
0x1387   :  { %v2790_v19 = vadd.f32 %v2782_v17, %v8928_v25  ;;  %v2785_v36 = vmul.f32 0.35355338, %v7113_v32  ;;  %v2805_v0 = vsel %vm343_vm0, %v2791_v30, -inf  ;;  %v9985_v17 = vand.u32 15, %v9984_v10 }
0x1388   :  { %v2761_v58 = vpop.f32.mrf.mxu1 }
0x1389   :  { %v2784_v7 = vmul.f32 0.35355338, %v2761_v58  ;;  %v2802_v57 = vsel %vm343_vm0, %v2790_v19, -inf  ;;  %v2793_v41 = vadd.f32 %v2785_v36, %v8950_v34  ;;  %v280_v2 = vand.u32 7, %v9985_v17 }
0x138a   :  { %2803 = vmax.xlane.f32.xlu0 %v2802_v57  ;;  %v7116_v53 = vpop.f32.mrf.mxu1 }
0x138b   :  { %v2792_v5 = vadd.f32 %v2784_v7, %v8944_v35  ;;  %v2787_v46 = vmul.f32 0.35355338, %v7116_v53  ;;  %v2811_v55 = vsel %vm343_vm0, %v2793_v41, -inf  ;;  %vm288_vm12 = vcmp.le.s32.totalorder %v8886_v29, %v280_v2 }
0x138c   :  { %v2771_v32 = vpop.f32.mrf.mxu1  ;;  %vm296_vm5 = vmand %vm8309_vm13, %vm288_vm12  ;;  %v2623_v29 = vmul.f32 %v8826_v28, %v8343_v14 }
0x138d   :  { %v2808_v47 = vsel %vm343_vm0, %v2792_v5, -inf  ;;  %v2795_v33 = vadd.f32 %v2787_v46, %v8959_v56  ;;  %v2786_v36 = vmul.f32 0.35355338, %v2771_v32  ;;  %v8982_v7 = vsel %vm296_vm5, 0.0, %v9980_v51 }
0x138e   :  { %2806 = vmax.xlane.f32.xlu0 %v2805_v0  ;;  %2809 = vmax.xlane.f32.xlu1 %v2808_v47  ;;  %v2625_v46 = vmul.f32 %v8826_v28, %v8336_v40 }
0x138f   :  { %v2817_v20 = vsel %vm343_vm0, %v2795_v33, -inf  ;;  %v8985_v57 = vadd.f32 %v2786_v36, %v8982_v7 }
0x1391   :  { %v2814_v53 = vsel %vm343_vm0, %v8985_v57, -inf }
0x1392   :  { %2812 = vmax.xlane.f32.xlu0 %v2811_v55 }
0x1396   :  { %2818 = vmax.xlane.f32.xlu0 %v2817_v20 }
0x139f   :  { %2906 = vrot.lane.b32.xlu1 %v2628_v38, %s7832_s21 }
0x13a3   :  { %2902 = vrot.lane.b32.xlu1 %v2626_v1, %s7832_s21 }
0x13ac   :  { %2904 = vrot.lane.b32.xlu0 %v2627_v13, %s7832_s21 }
0x13b0   :  { %2898 = vrot.lane.b32.xlu0 %v2624_v16, %s7832_s21 }
0x13c7   :  { %2815 = vmax.xlane.f32.xlu1 %v2814_v53 }
0x13d8   :  { %2900 = vrot.lane.b32.xlu1 %v2625_v46, %s7832_s21 }
0x13dc   :  { %2896 = vrot.lane.b32.xlu1 %v2623_v29, %s7832_s21 }
0x140d   :  { %v2801_v0 = vpop.xlane.xlu1 %2800 }
0x140e   :  { %v2821_v51 = vsub.f32 %v8915_v37, %v2801_v0 }
0x140f   :  { %v2798_v47 = vpop.xlane.xlu0 %2797 }
0x1410   :  { %v2830_v55 = vmul.f32 1.442695, %v2821_v51  ;;  %v2820_v20 = vsub.f32 %v8921_v42, %v2798_v47 }
0x1412   :  { %7624 = vpow2.f32 %v2830_v55  ;;  %v2828_v38 = vmul.f32 1.442695, %v2820_v20 }
0x1413   :  { %v2804_v1 = vpop.xlane.xlu0 %2803 }
0x1414   :  { %7626 = vpow2.f32 %v2828_v38  ;;  %v2822_v13 = vsub.f32 %v2790_v19, %v2804_v1 }
0x1416   :  { %v2832_v16 = vmul.f32 1.442695, %v2822_v13 }
0x1417   :  { %v2807_v10 = vpop.xlane.xlu0 %2806  ;;  %v2810_v17 = vpop.xlane.xlu1 %2809 }
0x1418   :  { %7628 = vpow2.f32 %v2832_v16  ;;  %v2823_v2 = vsub.f32 %v2791_v30, %v2807_v10  ;;  %v2824_v32 = vsub.f32 %v2792_v5, %v2810_v17 }
0x141a   :  { %v2834_v58 = vmul.f32 1.442695, %v2823_v2  ;;  %v2836_v36 = vmul.f32 1.442695, %v2824_v32 }
0x141b   :  { %v2813_v53 = vpop.xlane.xlu0 %2812  ;;  %v2907_v46 = vpop.permute.xlu1 %2906 }
0x141c   :  { %7630 = vpow2.f32 %v2834_v58  ;;  %v2825_v37 = vsub.f32 %v2793_v41, %v2813_v53  ;;  %7117 = vmatprep.subr.mxu0 %v2907_v46  ;;  %v2622_v58 = vmul.f32 %v8824_v48, %v8351_v61  ;;  %v6214_v48 = vld [vmem:[%s9891_s1 + $0x418] ss:$0 sm:$0xff] }
0x141d   :  { %7632 = vpow2.f32 %v2836_v36  ;;  %7118 = vmatpush3.msra.mxu0 %v2907_v46 }
0x141e   :  { %v2838_v42 = vmul.f32 1.442695, %v2825_v37 }
0x141f   :  { %v8997_v29 = vpop.eup %7624  ;;  %v2819_v0 = vpop.xlane.xlu0 %2818 }
0x1420   :  { %7634 = vpow2.f32 %v2838_v42  ;;  %v2827_v19 = vsub.f32 %v2795_v33, %v2819_v0  ;;  %v2847_v51 = vsel %vm343_vm0, %v8997_v29, 0.0  ;;  %v2903_v20 = vpop.permute.xlu1 %2902 }
0x1421   :  { %v9001_v30 = vpop.eup %7626  ;;  %2848 = vadd.xlane.f32.xlu0 %v2847_v51 }
0x1422   :  { %v2842_v5 = vmul.f32 1.442695, %v2827_v19  ;;  %v2844_v47 = vsel %vm343_vm0, %v9001_v30, 0.0  ;;  %v2341_v19 = vadd.f32 %v6214_v48, %v8819_v6 }
0x1423   :  { %v2905_v41 = vpop.permute.xlu0 %2904  ;;  %2845 = vadd.xlane.f32.xlu1 %v2844_v47 }
0x1424   :  { %7636 = vpow2.f32 %v2842_v5  ;;  %7119 = vmatprep.subr.mxu0 %v2905_v41  ;;  %v9037_v5 = vadd.f32 %v2341_v19, %v8717_v52 }
0x1425   :  { %v9005_v55 = vpop.eup %7628  ;;  %7120 = vmatpush3.msra.mxu0 %v2905_v41 }
0x1426   :  { %7121 = vmatprep.subr.mxu0 %v2903_v20  ;;  %v2850_v33 = vsel %vm343_vm0, %v9005_v55, 0.0  ;;  %v2359_v6 = vmul.f32 %v9037_v5, %v9037_v5 }
0x1427   :  { %7122 = vmatpush3.msra.mxu0 %v2903_v20  ;;  %2851 = vadd.xlane.f32.xlu1 %v2850_v33  ;;  %v2899_v42 = vpop.permute.xlu0 %2898  ;;  %v2351_v20 = vsel %vm425_vm3, %v9037_v5, 0.0 }
0x1428   :  { %v2361_v33 = vsel %vm425_vm3, %v2359_v6, 0.0 }
0x1429   :  { %v9009_v38 = vpop.eup %7630 }
0x142a   :  { %v9011_v1 = vpop.eup %7632  ;;  %v2853_v13 = vsel %vm343_vm0, %v9009_v38, 0.0 }
0x142b   :  { %2854 = vadd.xlane.f32.xlu0 %v2853_v13  ;;  %v2856_v16 = vsel %vm343_vm0, %v9011_v1, 0.0 }
0x142c   :  { %2857 = vadd.xlane.f32.xlu1 %v2856_v16 }
0x142d   :  { %v9017_v10 = vpop.eup %7634 }
0x142e   :  { %v2859_v17 = vsel %vm343_vm0, %v9017_v10, 0.0 }
0x142f   :  { %2860 = vadd.xlane.f32.xlu0 %v2859_v17 }
0x1431   :  { %v9021_v2 = vpop.eup %7636 }
0x1432   :  { %v2865_v32 = vsel %vm343_vm0, %v9021_v2, 0.0 }
0x1433   :  { %2866 = vadd.xlane.f32.xlu0 %v2865_v32 }
0x1449   :  { %2894 = vrot.lane.b32.xlu0 %v2622_v58, %s7832_s21 }
0x1450   :  { %v2816_v36 = vpop.xlane.xlu1 %2815 }
0x1451   :  { %v2826_v53 = vsub.f32 %v8985_v57, %v2816_v36  ;;  %v2346_v57 = vadd.f32 %v8817_v9, %v6214_v48 }
0x1453   :  { %v2840_v46 = vmul.f32 1.442695, %v2826_v53  ;;  %v9042_v41 = vadd.f32 %v2346_v57, %v8722_v62  ;;  %v2621_v62 = vmul.f32 %v8826_v28, %v8349_v50 }
0x1454   :  { %v2901_v37 = vpop.permute.xlu1 %2900 }
0x1455   :  { %7638 = vpow2.f32 %v2840_v46  ;;  %7123 = vmatprep.subr.mxu0 %v2901_v37  ;;  %v2360_v52 = vmul.f32 %v9042_v41, %v9042_v41  ;;  %v2354_v13 = vsel %vm425_vm3, %v9042_v41, 0.0 }
0x1456   :  { %7124 = vmatpush3.msra.mxu0 %v2901_v37 }
0x1457   :  { %7125 = vmatprep.subr.mxu0 %v2899_v42  ;;  %v2364_v9 = vsel %vm425_vm3, %v2360_v52, 0.0 }
0x1458   :  { %7126 = vmatpush3.msra.mxu0 %v2899_v42  ;;  %v2897_v0 = vpop.permute.xlu1 %2896 }
0x1459   :  { %7127 = vmatprep.subr.mxu0 %v2897_v0 }
0x145a   :  { %7128 = vmatpush3.msra.mxu0 %v2897_v0 }
0x1462   :  { %v9033_v51 = vpop.eup %7638 }
0x1463   :  { %v2862_v47 = vsel %vm343_vm0, %v9033_v51, 0.0 }
0x1464   :  { %2863 = vadd.xlane.f32.xlu1 %v2862_v47 }
0x1468   :  { %2352 = vadd.xlane.f32.xlu0 %v2351_v20 }
0x146c   :  { %2362 = vadd.xlane.f32.xlu0 %v2361_v33  ;;  %v51_v33 = vld [vmem:[%s9891_s1 + $0x138] sm:$0xff] }
0x1470   :  { %2365 = vadd.xlane.f32.xlu0 %v2364_v9  ;;  %v50_v9 = vld [vmem:[%s9891_s1 + $0x130] sm:$0xff] }
0x1475   :  { %2892 = vrot.lane.b32.xlu1 %v2621_v62, %s7832_s21 }
0x1499   :  { %2355 = vadd.xlane.f32.xlu1 %v2354_v13  ;;  %v49_v13 = vld [vmem:[%s9891_s1 + $0x128] sm:$0xff] }
0x14aa   :  { %v2849_v17 = vpop.xlane.xlu0 %2848 }
0x14ac   :  { %v2846_v16 = vpop.xlane.xlu1 %2845 }
0x14ad   :  { %7640 = vrcp.f32 %v2846_v16 }
0x14ae   :  { %7642 = vrcp.f32 %v2849_v17 }
0x14b0   :  { %v2852_v28 = vpop.xlane.xlu1 %2851 }
0x14b1   :  { %7644 = vrcp.f32 %v2852_v28 }
0x14b4   :  { %v2855_v32 = vpop.xlane.xlu0 %2854 }
0x14b5   :  { %v2858_v42 = vpop.xlane.xlu1 %2857  ;;  %7646 = vrcp.f32 %v2855_v32 }
0x14b6   :  { %7648 = vrcp.f32 %v2858_v42 }
0x14b8   :  { %v2861_v58 = vpop.xlane.xlu0 %2860 }
0x14b9   :  { %7650 = vrcp.f32 %v2861_v58  ;;  %v18_v58 = vld [vmem:[%s9891_s1 + $0x30] sm:$0xff] }
0x14ba   :  { %v7641_v36 = vpop.eup %7640 }
0x14bb   :  { %v2876_v53 = vmul.f32 %v7641_v36, %v9001_v30  ;;  %v7643_v48 = vpop.eup %7642  ;;  %v52_v30 = vld [vmem:[%s9891_s1 + $0x140] sm:$0xff] }
0x14bc   :  { %v2867_v46 = vpop.xlane.xlu0 %2866  ;;  %v2877_v47 = vmul.f32 %v7643_v48, %v8997_v29 }
0x14bd   :  { %7133 = vmatprep.mubr.msk.f32.mxu0 %vm343_vm0, %v2876_v53  ;;  %7652 = vrcp.f32 %v2867_v46 }
0x14be   :  { %v7645_v19 = vpop.eup %7644 }
0x14bf   :  { %v2878_v6 = vmul.f32 %v7645_v19, %v9005_v55 }
0x14c0   :  { %v2895_v37 = vpop.permute.xlu0 %2894 }
0x14c1   :  { %7129 = vmatprep.subr.mxu0 %v2895_v37 }
0x14c2   :  { %7130 = vmatpush3.msra.mxu0 %v2895_v37  ;;  %v7647_v20 = vpop.eup %7646 }
0x14c3   :  { %v7649_v52 = vpop.eup %7648  ;;  %v2879_v29 = vmul.f32 %v7647_v20, %v9009_v38 }
0x14c4   :  { %v2880_v55 = vmul.f32 %v7649_v52, %v9011_v1 }
0x14c6   :  { %v7651_v62 = vpop.eup %7650 }
0x14c7   :  { %v2881_v17 = vmul.f32 %v7651_v62, %v9017_v10 }
0x14ca   :  { %v7653_v16 = vpop.eup %7652 }
0x14cb   :  { %v2883_v32 = vmul.f32 %v7653_v16, %v9021_v2  ;;  %v15_v16 = vld [vmem:[%s9891_s1 + $0x18] sm:$0xff] }
0x14ed   :  { %v2864_v0 = vpop.xlane.xlu1 %2863 }
0x14ee   :  { %7654 = vrcp.f32 %v2864_v0 }
0x14f1   :  { %v2893_v57 = vpop.permute.xlu1 %2892  ;;  %v2353_v36 = vpop.xlane.xlu0 %2352 }
0x14f2   :  { %7131 = vmatprep.subr.mxu0 %v2893_v57  ;;  %v2357_v46 = vmul.f32 0.03125, %v2353_v36 }
0x14f3   :  { %7132 = vmatpush3.msra.mxu0 %v2893_v57 }
0x14f4   :  { %7134 = vmatmul.mubr.msk.f32.vlgmr.msra.gmra.mxu0 %vm343_vm0, %v2877_v47  ;;  %7145 = vmatprep.subr.mxu0 %v52_v30  ;;  %v2369_v42 = vmul.f32 %v2357_v46, %v2357_v46 }
0x14f5   :  { %7136 = vmatprep.mubr.msk.f32.mxu0 %vm343_vm0, %v2878_v6  ;;  %7146 = vmatpush3.msra.mxu0 %v52_v30  ;;  %v2363_v10 = vpop.xlane.xlu0 %2362  ;;  %v17_v6 = vld [vmem:[%s9891_s1 + $0x28] sm:$0xff] }
0x14f6   :  { %7147 = vmatprep.subr.mxu0 %v51_v33  ;;  %v2367_v28 = vmul.f32 0.03125, %v2363_v10  ;;  %v6218_v10 = vld [vmem:[%s9891_s1 + $0x490] ss:$0 sm:$0xff] }
0x14f7   :  { %7148 = vmatpush3.msra.mxu0 %v51_v33 }
0x14f8   :  { %7137 = vmatmul.mubr.msk.f32.gmra.mxu0 %vm343_vm0, %v2879_v29  ;;  %7149 = vmatprep.subr.mxu0 %v50_v9  ;;  %v2371_v48 = vsub.f32 %v2367_v28, %v2369_v42  ;;  %v16_v29 = vld [vmem:[%s9891_s1 + $0x20] sm:$0xff]  ;;  %v26_v28 = vld [vmem:[%s9891_s1 + $0x70] sm:$0xff]  ;;  %v25_v42 = vld [vmem:[%s9891_s1 + $0x68] sm:$0xff] }
0x14f9   :  { %7139 = vmatprep.mubr.msk.f32.mxu0 %vm343_vm0, %v2880_v55  ;;  %7150 = vmatpush3.msra.mxu0 %v50_v9  ;;  %v2366_v0 = vpop.xlane.xlu0 %2365  ;;  %v2377_v9 = vsub.f32 %v9037_v5, %v2357_v46  ;;  %v6217_v5 = vld [vmem:[%s9891_s1 + $0x498] ss:$0 sm:$0xff] }
0x14fa   :  { %7151 = vmatprep.subr.mxu0 %v49_v13  ;;  %v2368_v19 = vmul.f32 0.03125, %v2366_v0  ;;  %v2373_v2 = vadd.f32 1e-06, %v2371_v48  ;;  %7165 = vmatprep.subr.mxu1 %v26_v28  ;;  %v24_v0 = vld [vmem:[%s9891_s1 + $0x60] sm:$0xff] }
0x14fb   :  { %v7655_v38 = vpop.eup %7654  ;;  %7152 = vmatpush3.msra.mxu0 %v49_v13  ;;  %7166 = vmatpush3.msra.mxu1 %v26_v28 }
0x14fc   :  { %7140 = vmatmul.mubr.msk.f32.gmra.mxu0 %vm343_vm0, %v2881_v17  ;;  %v2882_v1 = vmul.f32 %v7655_v38, %v9033_v51  ;;  %7176 = vmatprep.subr.mxu0 %v18_v58  ;;  %7656 = vrsqrt.f32 %v2373_v2 }
0x14fd   :  { %7167 = vmatprep.subr.mxu1 %v25_v42 }
0x14fe   :  { %7142 = vmatprep.mubr.msk.f32.mxu0 %vm343_vm0, %v2882_v1  ;;  %7168 = vmatpush3.msra.mxu1 %v25_v42 }
0x14ff   :  { %7169 = vmatprep.subr.mxu1 %v24_v0 }
0x1500   :  { %7143 = vmatmul.mubr.msk.f32.gmra.mxu0 %vm343_vm0, %v2883_v32  ;;  %7170 = vmatpush3.msra.mxu1 %v24_v0 }
0x1509   :  { %v7657_v33 = vpop.eup %7656 }
0x150a   :  { %v2379_v13 = vmul.f32 %v7657_v33, %v2377_v9 }
0x1522   :  { %v2356_v53 = vpop.xlane.xlu1 %2355 }
0x1523   :  { %v2358_v37 = vmul.f32 0.03125, %v2356_v53 }
0x1525   :  { %v2370_v51 = vmul.f32 %v2358_v37, %v2358_v37  ;;  %v2378_v17 = vsub.f32 %v9042_v41, %v2358_v37 }
0x1527   :  { %v2372_v57 = vsub.f32 %v2368_v19, %v2370_v51  ;;  %v23_v51 = vld [vmem:[%s9891_s1 + $0x58] sm:$0xff] }
0x1528   :  { %7171 = vmatprep.subr.mxu1 %v23_v51 }
0x1529   :  { %v2374_v30 = vadd.f32 1e-06, %v2372_v57  ;;  %7172 = vmatpush3.msra.mxu1 %v23_v51 }
0x152b   :  { %7658 = vrsqrt.f32 %v2374_v30 }
0x1538   :  { %v7659_v55 = vpop.eup %7658 }
0x1539   :  { %v2380_v1 = vmul.f32 %v7659_v55, %v2378_v17 }
0x153b   :  { %v2386_v41 = vmul.f32 %v6217_v5, %v2380_v1 }
0x153d   :  { %v9117_v37 = vadd.f32 %v6218_v10, %v2386_v41 }
0x15b4   :  { %v7135_v47 = vpop.f32.mrf.mxu0 }
0x15b6   :  { %v3006_v20 = vpop.f32.mrf.mxu0 }
0x15b7   :  { %7153 = vmatprep.mubr.msk.f32.mxu0 %vm425_vm3, %v3006_v20 }
0x15b8   :  { %v7138_v52 = vpop.f32.mrf.mxu0  ;;  %7154 = vmatmul.mubr.msk.f32.vlgmr.msra.gmra.mxu0 %vm425_vm3, %v7135_v47 }
0x15b9   :  { %7177 = vmatpush3.msra.mxu0 %v18_v58  ;;  %v2385_v58 = vmul.f32 %v6217_v5, %v2379_v13  ;;  %v6266_v13 = vld [vmem:[%s9891_s1] ss:$0 sm:$0xff] }
0x15ba   :  { %v3016_v62 = vpop.f32.mrf.mxu0  ;;  %7178 = vmatprep.subr.mxu0 %v17_v6 }
0x15bb   :  { %7156 = vmatprep.mubr.msk.f32.mxu0 %vm425_vm3, %v3016_v62  ;;  %7179 = vmatpush3.msra.mxu0 %v17_v6  ;;  %v9112_v46 = vadd.f32 %v6218_v10, %v2385_v58  ;;  %v9987_v10 = vld [vmem:[#allocation7_spill] sm:$0xff] }
0x15bc   :  { %v7141_v38 = vpop.f32.mrf.mxu0  ;;  %7157 = vmatmul.mubr.msk.f32.gmra.mxu0 %vm425_vm3, %v7138_v52  ;;  %7180 = vmatprep.subr.mxu0 %v16_v29  ;;  %v6260_v52 = vld [vmem:[%s9891_s1 + $0x118] ss:$0 sm:$0xff] }
0x15bd   :  { %7181 = vmatpush3.msra.mxu0 %v16_v29 }
0x15be   :  { %v3026_v32 = vpop.f32.mrf.mxu0  ;;  %7182 = vmatprep.subr.mxu0 %v15_v16 }
0x15bf   :  { %7159 = vmatprep.mubr.msk.f32.mxu0 %vm425_vm3, %v3026_v32  ;;  %7183 = vmatpush3.msra.mxu0 %v15_v16 }
0x15c0   :  { %v7144_v36 = vpop.f32.mrf.mxu0  ;;  %7160 = vmatmul.mubr.msk.f32.gmra.mxu0 %vm425_vm3, %v7141_v38 }
0x15c2   :  { %v3036_v53 = vpop.f32.mrf.mxu0 }
0x15c3   :  { %7162 = vmatprep.mubr.msk.f32.mxu0 %vm425_vm3, %v3036_v53 }
0x15c4   :  { %7163 = vmatmul.mubr.msk.f32.gmra.mxu0 %vm425_vm3, %v7144_v36 }
0x15c5   :  { %7184 = vmatprep.mubr.msk.f32.mxu0 %vm425_vm3, %v9112_v46 }
0x15c8   :  { %7185 = vmatmul.mubr.msk.f32.vlgmr.msra.gmra.mxu0 %vm425_vm3, %v9117_v37 }
0x1678   :  { %v7155_v48 = vpop.f32.mrf.mxu0 }
0x167a   :  { %v3135_v19 = vpop.f32.mrf.mxu0 }
0x167c   :  { %v7158_v57 = vpop.f32.mrf.mxu0 }
0x167d   :  { %v3175_v47 = vadd.f32 %v7158_v57, %v7155_v48 }
0x167e   :  { %v3145_v2 = vpop.f32.mrf.mxu0 }
0x167f   :  { %v3174_v6 = vadd.f32 %v3145_v2, %v3135_v19 }
0x1680   :  { %v7161_v30 = vpop.f32.mrf.mxu0 }
0x1681   :  { %v3177_v33 = vadd.f32 %v7161_v30, %v3175_v47 }
0x1682   :  { %v3155_v20 = vpop.f32.mrf.mxu0 }
0x1683   :  { %v3176_v29 = vadd.f32 %v3174_v6, %v3155_v20 }
0x1684   :  { %v7164_v9 = vpop.f32.mrf.mxu0 }
0x1685   :  { %v3179_v62 = vadd.f32 %v7164_v9, %v3177_v33 }
0x1686   :  { %v3165_v55 = vpop.f32.mrf.mxu0 }
0x1687   :  { %v3185_v16 = vadd.f32 %v6260_v52, %v3179_v62  ;;  %v3178_v5 = vadd.f32 %v3176_v29, %v3165_v55 }
0x1688   :  { %v7186_v17 = vpop.f32.mrf.mxu0 }
0x1689   :  { %v3187_v38 = vadd.f32 %v3185_v16, %v8811_v24  ;;  %v3184_v1 = vadd.f32 %v6260_v52, %v3178_v5  ;;  %v9140_v32 = vadd.f32 %v7186_v17, %v6266_v13  ;;  %v6261_v5 = vld [vmem:[%s9891_s1 + $0xf0] ss:$0 sm:$0xff] }
0x168b   :  { %v3186_v58 = vadd.f32 %v3184_v1, %v8809_v43  ;;  %v3191_v36 = vsel %vm425_vm3, %v3187_v38, 0.0  ;;  %v3407_v41 = vmul.f32 %v9987_v10, %v9140_v32  ;;  %v3197_v53 = vmul.f32 %v3187_v38, %v3187_v38 }
0x168c   :  { %3192 = vadd.xlane.f32.xlu0 %v3191_v36  ;;  %v3391_v36 = vpop.f32.mrf.mxu0 }
0x168d   :  { %7187 = vmatprep.subr.msk.mxu1 %vm425_vm3, %v3407_v41  ;;  %v3188_v28 = vsel %vm425_vm3, %v3186_v58, 0.0  ;;  %v3196_v42 = vmul.f32 %v3186_v58, %v3186_v58  ;;  %v3201_v24 = vsel %vm425_vm3, %v3197_v53, 0.0 }
0x168e   :  { %3189 = vadd.xlane.f32.xlu1 %v3188_v28 }
0x168f   :  { %v3198_v0 = vsel %vm425_vm3, %v3196_v42, 0.0  ;;  %v6262_v42 = vld [vmem:[%s9891_s1 + $0xe8] ss:$0 sm:$0xff] }
0x1690   :  { %3202 = vadd.xlane.f32.xlu0 %v3201_v24 }
0x1692   :  { %3199 = vadd.xlane.f32.xlu1 %v3198_v0  ;;  %v9156_v0 = vadd.f32 %v6266_v13, %v3391_v36  ;;  %v9989_v13 = vld [vmem:[#allocation9_spill] sm:$0xff] }
0x1715   :  { %v3193_v43 = vpop.xlane.xlu0 %3192 }
0x1716   :  { %v3195_v51 = vmul.f32 0.03125, %v3193_v43 }
0x1717   :  { %v3190_v48 = vpop.xlane.xlu1 %3189 }
0x1718   :  { %v3194_v19 = vmul.f32 0.03125, %v3190_v48  ;;  %v3207_v2 = vmul.f32 %v3195_v51, %v3195_v51  ;;  %v3215_v62 = vsub.f32 %v3187_v38, %v3195_v51  ;;  %v3405_v48 = vmul.f32 %v9989_v13, %v9140_v32 }
0x1719   :  { %v3203_v57 = vpop.xlane.xlu0 %3202 }
0x171a   :  { %v3205_v30 = vmul.f32 0.03125, %v3203_v57  ;;  %v3206_v20 = vmul.f32 %v3194_v19, %v3194_v19  ;;  %v3214_v16 = vsub.f32 %v3186_v58, %v3194_v19  ;;  %v9988_v58 = vld [vmem:[#allocation8_spill] sm:$0xff]  ;;  %v9990_v19 = vld [vmem:[#allocation11_spill] sm:$0xff] }
0x171b   :  { %v3200_v47 = vpop.xlane.xlu1 %3199  ;;  %v3406_v51 = vmul.f32 %v9988_v58, %v9156_v0  ;;  %v3404_v57 = vmul.f32 %v9990_v19, %v9156_v0 }
0x171c   :  { %v3209_v6 = vsub.f32 %v3205_v30, %v3207_v2  ;;  %v3204_v33 = vmul.f32 0.03125, %v3200_v47  ;;  %v9991_v2 = vld [vmem:[#allocation10_spill] sm:$0xff] }
0x171d   :  { %v3403_v30 = vmul.f32 %v9991_v2, %v9140_v32 }
0x171e   :  { %v3211_v52 = vadd.f32 1e-06, %v3209_v6  ;;  %v3208_v9 = vsub.f32 %v3204_v33, %v3206_v20  ;;  %v9993_v20 = vld [vmem:[#allocation13_spill] sm:$0xff]  ;;  %v9994_v33 = vld [vmem:[#allocation14_spill] sm:$0xff] }
0x171f   :  { %v3401_v6 = vmul.f32 %v9993_v20, %v9140_v32 }
0x1720   :  { %7660 = vrsqrt.f32 %v3211_v52  ;;  %v3210_v29 = vadd.f32 1e-06, %v3208_v9  ;;  %v3400_v52 = vmul.f32 %v9994_v33, %v9156_v0 }
0x1722   :  { %7662 = vrsqrt.f32 %v3210_v29  ;;  %v6263_v29 = vld [vmem:[%s9891_s1 + $0x10] ss:$0 sm:$0xff] }
0x172d   :  { %v7661_v55 = vpop.eup %7660 }
0x172e   :  { %v3217_v17 = vmul.f32 %v7661_v55, %v3215_v62 }
0x172f   :  { %v7663_v1 = vpop.eup %7662 }
0x1730   :  { %v3216_v53 = vmul.f32 %v7663_v1, %v3214_v16  ;;  %v3223_v28 = vmul.f32 %v6261_v5, %v3217_v17 }
0x1732   :  { %v3222_v24 = vmul.f32 %v6261_v5, %v3216_v53  ;;  %v9160_v38 = vadd.f32 %v6262_v42, %v3223_v28 }
0x1734   :  { %v9158_v43 = vadd.f32 %v6262_v42, %v3222_v24 }
0x1736   :  { %7173 = vmatprep.mubr.msk.f32.mxu1 %vm425_vm3, %v9158_v43 }
0x1737   :  { %7174 = vmatmul.mubr.msk.f32.vlgmr.msra.gmra.mxu1 %vm425_vm3, %v9160_v38 }
0x1738   :  { %7188 = vmatpush3.xpose.msk.msra.mxu1 %vm425_vm3, %v3407_v41  ;;  %v9992_v41 = vld [vmem:[#allocation12_spill] sm:$0xff] }
0x1739   :  { %7189 = vmatprep.subr.msk.mxu1 %vm425_vm3, %v3406_v51  ;;  %v3402_v47 = vmul.f32 %v9992_v41, %v9156_v0 }
0x173c   :  { %7190 = vmatpush3.xpose.msk.msra.mxu1 %vm425_vm3, %v3406_v51 }
0x173d   :  { %7191 = vmatprep.subr.msk.mxu1 %vm425_vm3, %v3405_v48 }
0x1740   :  { %7192 = vmatpush3.xpose.msk.msra.mxu1 %vm425_vm3, %v3405_v48 }
0x1741   :  { %7193 = vmatprep.subr.msk.mxu1 %vm425_vm3, %v3404_v57 }
0x1744   :  { %7194 = vmatpush3.xpose.msk.msra.mxu1 %vm425_vm3, %v3404_v57 }
0x1745   :  { %7195 = vmatprep.subr.msk.mxu1 %vm425_vm3, %v3403_v30 }
0x1748   :  { %7196 = vmatpush3.xpose.msk.msra.mxu1 %vm425_vm3, %v3403_v30 }
0x1749   :  { %7197 = vmatprep.subr.msk.mxu1 %vm425_vm3, %v3402_v47 }
0x174c   :  { %7198 = vmatpush3.xpose.msk.msra.mxu1 %vm425_vm3, %v3402_v47 }
0x174d   :  { %7199 = vmatprep.subr.msk.mxu1 %vm425_vm3, %v3401_v6 }
0x1750   :  { %7200 = vmatpush3.xpose.msk.msra.mxu1 %vm425_vm3, %v3401_v6 }
0x1751   :  { %7201 = vmatprep.subr.msk.mxu1 %vm425_vm3, %v3400_v52 }
0x1754   :  { %7202 = vmatpush3.xpose.msk.msra.mxu1 %vm425_vm3, %v3400_v52 }
0x17f7   :  { %v7175_v9 = vpop.f32.mrf.mxu1 }
0x17f8   :  { %v3312_v16 = vadd.f32 %v7175_v9, %v6263_v29 }
0x17f9   :  { %v3306_v62 = vpop.f32.mrf.mxu1 }
0x17fa   :  { %v3307_v55 = vadd.f32 %v6263_v29, %v3306_v62 }
0x17fc   :  { %7203 = vmatprep.mubr.msk.f32.mxu1 %vm425_vm3, %v3307_v55 }
0x17fd   :  { %7204 = vmatmul.mubr.msk.f32.vlgmr.msra.gmra.mxu1 %vm425_vm3, %v3312_v16 }
0x17fe   :  { %7206 = vmatprep.mubr.msk.f32.mxu1 %vm425_vm3, %v3307_v55 }
0x1801   :  { %7207 = vmatmul.mubr.msk.f32.gmra.mxu1 %vm425_vm3, %v3312_v16 }
0x1802   :  { %7209 = vmatprep.mubr.msk.f32.mxu1 %vm425_vm3, %v3307_v55 }
0x1805   :  { %7210 = vmatmul.mubr.msk.f32.gmra.mxu1 %vm425_vm3, %v3312_v16 }
0x1806   :  { %7212 = vmatprep.mubr.msk.f32.mxu1 %vm425_vm3, %v3307_v55  ;;  %v9995_v55 = vld [vmem:[#allocation18_spill] sm:$0xff] }
0x1809   :  { %7213 = vmatmul.mubr.msk.f32.gmra.mxu1 %vm425_vm3, %v3312_v16 }
0x18bd   :  { %v7205_v5 = vpop.f32.mrf.mxu1 }
0x18be   :  { %v3552_v17 = vmul.f32 0.35355338, %v7205_v5 }
0x18bf   :  { %v3512_v1 = vpop.f32.mrf.mxu1 }
0x18c0   :  { %v3560_v36 = vadd.f32 %v3552_v17, %v8182_v8  ;;  %v3551_v53 = vmul.f32 0.35355338, %v3512_v1 }
0x18c1   :  { %v7208_v28 = vpop.f32.mrf.mxu1 }
0x18c2   :  { %v3559_v42 = vadd.f32 %v3551_v53, %v8196_v11  ;;  %v3554_v24 = vmul.f32 0.35355338, %v7208_v28  ;;  %v3570_v51 = vsel %vm343_vm0, %v3560_v36, -inf  ;;  %v9996_v53 = vld [vmem:[#allocation21_spill] sm:$0xff] }
0x18c3   :  { %3571 = vmax.xlane.f32.xlu0 %v3570_v51  ;;  %v3522_v48 = vpop.f32.mrf.mxu1 }
0x18c4   :  { %v3562_v57 = vadd.f32 %v3554_v24, %v8209_v22  ;;  %v3553_v30 = vmul.f32 0.35355338, %v3522_v48  ;;  %v3567_v47 = vsel %vm343_vm0, %v3559_v42, -inf  ;;  %v9997_v48 = vld [vmem:[#allocation19_spill] sm:$0xff] }
0x18c5   :  { %3568 = vmax.xlane.f32.xlu1 %v3567_v47  ;;  %v7211_v6 = vpop.f32.mrf.mxu1 }
0x18c6   :  { %v3561_v52 = vadd.f32 %v3553_v30, %v8236_v39  ;;  %v3556_v9 = vmul.f32 0.35355338, %v7211_v6  ;;  %v3576_v29 = vsel %vm343_vm0, %v3562_v57, -inf }
0x18c7   :  { %3577 = vmax.xlane.f32.xlu0 %v3576_v29  ;;  %v3532_v62 = vpop.f32.mrf.mxu1  ;;  %v3413_v29 = vmul.f32 %v9140_v32, %v8022_v26 }
0x18c8   :  { %v3564_v16 = vadd.f32 %v3556_v9, %v9995_v55  ;;  %v3555_v5 = vmul.f32 0.35355338, %v3532_v62  ;;  %v3573_v17 = vsel %vm343_vm0, %v3561_v52, -inf  ;;  %v3415_v9 = vmul.f32 %v9140_v32, %v8018_v21 }
0x18c9   :  { %3574 = vmax.xlane.f32.xlu1 %v3573_v17  ;;  %v7214_v1 = vpop.f32.mrf.mxu1  ;;  %v3414_v62 = vmul.f32 %v9156_v0, %v8020_v23 }
0x18ca   :  { %v3563_v28 = vadd.f32 %v3555_v5, %v9996_v53  ;;  %v3558_v24 = vmul.f32 0.35355338, %v7214_v1  ;;  %v3582_v51 = vsel %vm343_vm0, %v3564_v16, -inf  ;;  %v3411_v5 = vmul.f32 %v9140_v32, %v8039_v60 }
0x18cb   :  { %3583 = vmax.xlane.f32.xlu0 %v3582_v51  ;;  %v3542_v17 = vpop.f32.mrf.mxu1 }
0x18cc   :  { %v3566_v30 = vadd.f32 %v3558_v24, %v9997_v48  ;;  %v3579_v47 = vsel %vm343_vm0, %v3563_v28, -inf  ;;  %v3557_v1 = vmul.f32 0.35355338, %v3542_v17  ;;  %v9998_v24 = vld [vmem:[#allocation22_spill] sm:$0xff] }
0x18cd   :  { %3580 = vmax.xlane.f32.xlu1 %v3579_v47 }
0x18ce   :  { %v3588_v6 = vsel %vm343_vm0, %v3566_v30, -inf  ;;  %v9233_v51 = vadd.f32 %v3557_v1, %v9998_v24 }
0x18cf   :  { %3589 = vmax.xlane.f32.xlu0 %v3588_v6  ;;  %v3412_v6 = vmul.f32 %v9156_v0, %v8024_v27 }
0x18d0   :  { %v3585_v47 = vsel %vm343_vm0, %v9233_v51, -inf }
0x18de   :  { %3677 = vrot.lane.b32.xlu1 %v3415_v9, %s7831_s20  ;;  %v3410_v9 = vmul.f32 %v9156_v0, %v8037_v59 }
0x18e2   :  { %3673 = vrot.lane.b32.xlu1 %v3413_v29, %s7831_s20 }
0x18e5   :  { %3675 = vrot.lane.b32.xlu0 %v3414_v62, %s7831_s20 }
0x18e9   :  { %3669 = vrot.lane.b32.xlu0 %v3411_v5, %s7831_s20 }
0x1906   :  { %3586 = vmax.xlane.f32.xlu1 %v3585_v47 }
0x1917   :  { %3671 = vrot.lane.b32.xlu1 %v3412_v6, %s7831_s20 }
0x191b   :  { %3667 = vrot.lane.b32.xlu1 %v3410_v9, %s7831_s20 }
0x194c   :  { %v3572_v29 = vpop.xlane.xlu0 %3571 }
0x194d   :  { %v3592_v62 = vsub.f32 %v3560_v36, %v3572_v29 }
0x194e   :  { %v3569_v5 = vpop.xlane.xlu1 %3568 }
0x194f   :  { %v3601_v17 = vmul.f32 1.442695, %v3592_v62  ;;  %v3591_v1 = vsub.f32 %v3559_v42, %v3569_v5 }
0x1950   :  { %v3578_v49 = vpop.xlane.xlu0 %3577 }
0x1951   :  { %7664 = vpow2.f32 %v3601_v17  ;;  %v3599_v12 = vmul.f32 1.442695, %v3591_v1  ;;  %v3594_v24 = vsub.f32 %v3562_v57, %v3578_v49 }
0x1952   :  { %v3575_v47 = vpop.xlane.xlu1 %3574 }
0x1953   :  { %7666 = vpow2.f32 %v3599_v12  ;;  %v3605_v48 = vmul.f32 1.442695, %v3594_v24  ;;  %v3593_v53 = vsub.f32 %v3561_v52, %v3575_v47  ;;  %v3409_v47 = vmul.f32 %v9140_v32, %v8051_v63 }
0x1954   :  { %v3584_v55 = vpop.xlane.xlu0 %3583  ;;  %v3408_v32 = vmul.f32 %v9156_v0, %v8061_v4 }
0x1955   :  { %7668 = vpow2.f32 %v3605_v48  ;;  %v3603_v6 = vmul.f32 1.442695, %v3593_v53  ;;  %v3596_v39 = vsub.f32 %v3564_v16, %v3584_v55 }
0x1956   :  { %v3581_v22 = vpop.xlane.xlu1 %3580 }
0x1957   :  { %7670 = vpow2.f32 %v3603_v6  ;;  %v3609_v9 = vmul.f32 1.442695, %v3596_v39  ;;  %v3595_v11 = vsub.f32 %v3563_v28, %v3581_v22 }
0x1958   :  { %v3590_v36 = vpop.xlane.xlu0 %3589 }
0x1959   :  { %7672 = vpow2.f32 %v3609_v9  ;;  %v3607_v29 = vmul.f32 1.442695, %v3595_v11  ;;  %v3598_v42 = vsub.f32 %v3566_v30, %v3590_v36 }
0x195a   :  { %v3678_v62 = vpop.permute.xlu1 %3677 }
0x195b   :  { %7674 = vpow2.f32 %v3607_v29  ;;  %v3613_v5 = vmul.f32 1.442695, %v3598_v42  ;;  %7215 = vmatprep.subr.mxu0 %v3678_v62 }
0x195c   :  { %7216 = vmatpush3.msra.mxu0 %v3678_v62  ;;  %v3676_v12 = vpop.permute.xlu0 %3675 }
0x195d   :  { %7676 = vpow2.f32 %v3613_v5  ;;  %7217 = vmatprep.subr.mxu0 %v3676_v12 }
0x195e   :  { %v9243_v49 = vpop.eup %7664  ;;  %v3674_v57 = vpop.permute.xlu1 %3673  ;;  %7218 = vmatpush3.msra.mxu0 %v3676_v12 }
0x195f   :  { %7219 = vmatprep.subr.mxu0 %v3674_v57  ;;  %v3618_v22 = vsel %vm343_vm0, %v9243_v49, 0.0 }
0x1960   :  { %v7667_v39 = vpop.eup %7666  ;;  %3619 = vadd.xlane.f32.xlu0 %v3618_v22  ;;  %7220 = vmatpush3.msra.mxu0 %v3674_v57  ;;  %v3670_v42 = vpop.permute.xlu0 %3669 }
0x1961   :  { %v3615_v11 = vsel %vm343_vm0, %v7667_v39, 0.0 }
0x1962   :  { %v9248_v52 = vpop.eup %7668  ;;  %3616 = vadd.xlane.f32.xlu1 %v3615_v11 }
0x1963   :  { %v3624_v55 = vsel %vm343_vm0, %v9248_v52, 0.0 }
0x1964   :  { %v9252_v16 = vpop.eup %7670  ;;  %3625 = vadd.xlane.f32.xlu0 %v3624_v55 }
0x1965   :  { %v3621_v53 = vsel %vm343_vm0, %v9252_v16, 0.0 }
0x1966   :  { %v9256_v28 = vpop.eup %7672  ;;  %3622 = vadd.xlane.f32.xlu1 %v3621_v53 }
0x1967   :  { %v3630_v48 = vsel %vm343_vm0, %v9256_v28, 0.0 }
0x1968   :  { %v9260_v30 = vpop.eup %7674  ;;  %3631 = vadd.xlane.f32.xlu0 %v3630_v48 }
0x1969   :  { %v3627_v24 = vsel %vm343_vm0, %v9260_v30, 0.0 }
0x196a   :  { %v9264_v17 = vpop.eup %7676  ;;  %3628 = vadd.xlane.f32.xlu1 %v3627_v24 }
0x196b   :  { %v3636_v1 = vsel %vm343_vm0, %v9264_v17, 0.0 }
0x196c   :  { %3637 = vadd.xlane.f32.xlu0 %v3636_v1 }
0x1982   :  { %3665 = vrot.lane.b32.xlu0 %v3409_v47, %s7831_s20 }
0x198f   :  { %v3587_v6 = vpop.xlane.xlu1 %3586 }
0x1990   :  { %v3597_v9 = vsub.f32 %v9233_v51, %v3587_v6 }
0x1992   :  { %v3611_v36 = vmul.f32 1.442695, %v3597_v9 }
0x1993   :  { %v3672_v29 = vpop.permute.xlu1 %3671 }
0x1994   :  { %7678 = vpow2.f32 %v3611_v36  ;;  %7221 = vmatprep.subr.mxu0 %v3672_v29 }
0x1995   :  { %7222 = vmatpush3.msra.mxu0 %v3672_v29 }
0x1996   :  { %7223 = vmatprep.subr.mxu0 %v3670_v42 }
0x1997   :  { %7224 = vmatpush3.msra.mxu0 %v3670_v42  ;;  %v3668_v62 = vpop.permute.xlu1 %3667 }
0x1998   :  { %7225 = vmatprep.subr.mxu0 %v3668_v62 }
0x1999   :  { %7226 = vmatpush3.msra.mxu0 %v3668_v62 }
0x19a1   :  { %v7679_v5 = vpop.eup %7678 }
0x19a2   :  { %v3633_v12 = vsel %vm343_vm0, %v7679_v5, 0.0 }
0x19a3   :  { %3634 = vadd.xlane.f32.xlu1 %v3633_v12  ;;  %v21_v12 = vld [vmem:[%s9891_s1 + $0x48] sm:$0xff] }
0x19b4   :  { %3663 = vrot.lane.b32.xlu1 %v3408_v32, %s7831_s20 }
0x19e9   :  { %v3620_v51 = vpop.xlane.xlu0 %3619 }
0x19eb   :  { %v3617_v57 = vpop.xlane.xlu1 %3616 }
0x19ec   :  { %7680 = vrcp.f32 %v3617_v57 }
0x19ed   :  { %v3626_v22 = vpop.xlane.xlu0 %3625  ;;  %7682 = vrcp.f32 %v3620_v51  ;;  %v20_v51 = vld [vmem:[%s9891_s1 + $0x40] sm:$0xff] }
0x19ef   :  { %v3623_v1 = vpop.xlane.xlu1 %3622 }
0x19f0   :  { %7684 = vrcp.f32 %v3623_v1 }
0x19f1   :  { %v3632_v11 = vpop.xlane.xlu0 %3631  ;;  %7686 = vrcp.f32 %v3626_v22  ;;  %v19_v22 = vld [vmem:[%s9891_s1 + $0x38] sm:$0xff] }
0x19f3   :  { %v3629_v47 = vpop.xlane.xlu1 %3628 }
0x19f4   :  { %7688 = vrcp.f32 %v3629_v47 }
0x19f5   :  { %v3638_v55 = vpop.xlane.xlu0 %3637  ;;  %7690 = vrcp.f32 %v3632_v11 }
0x19f6   :  { %7692 = vrcp.f32 %v3638_v55 }
0x19f9   :  { %v7681_v53 = vpop.eup %7680  ;;  %v3666_v48 = vpop.permute.xlu0 %3665 }
0x19fa   :  { %7227 = vmatprep.subr.mxu0 %v3666_v48  ;;  %v3647_v24 = vmul.f32 %v7681_v53, %v7667_v39  ;;  %v7683_v6 = vpop.eup %7682  ;;  %v22_v39 = vld [vmem:[%s9891_s1 + $0x50] sm:$0xff] }
0x19fb   :  { %7228 = vmatpush3.msra.mxu0 %v3666_v48  ;;  %v3648_v29 = vmul.f32 %v7683_v6, %v9243_v49 }
0x19fc   :  { %7231 = vmatprep.mubr.msk.f32.mxu0 %vm343_vm0, %v3647_v24 }
0x19fd   :  { %v7685_v9 = vpop.eup %7684 }
0x19fe   :  { %v7687_v42 = vpop.eup %7686  ;;  %v3649_v62 = vmul.f32 %v7685_v9, %v9252_v16 }
0x19ff   :  { %v3650_v49 = vmul.f32 %v7687_v42, %v9248_v52 }
0x1a01   :  { %v7689_v32 = vpop.eup %7688 }
0x1a02   :  { %v7691_v57 = vpop.eup %7690  ;;  %v3651_v16 = vmul.f32 %v7689_v32, %v9260_v30 }
0x1a03   :  { %v7693_v11 = vpop.eup %7692  ;;  %v3652_v55 = vmul.f32 %v7691_v57, %v9256_v28 }
0x1a04   :  { %v3654_v53 = vmul.f32 %v7693_v11, %v9264_v17 }
0x1a2c   :  { %v3635_v0 = vpop.xlane.xlu1 %3634 }
0x1a2d   :  { %7694 = vrcp.f32 %v3635_v0 }
0x1a30   :  { %v3664_v36 = vpop.permute.xlu1 %3663 }
0x1a31   :  { %7229 = vmatprep.subr.mxu0 %v3664_v36 }
0x1a32   :  { %7230 = vmatpush3.msra.mxu0 %v3664_v36 }
0x1a33   :  { %7232 = vmatmul.mubr.msk.f32.vlgmr.msra.gmra.mxu0 %vm343_vm0, %v3648_v29  ;;  %7243 = vmatprep.subr.mxu0 %v22_v39 }
0x1a34   :  { %7234 = vmatprep.mubr.msk.f32.mxu0 %vm343_vm0, %v3649_v62  ;;  %7244 = vmatpush3.msra.mxu0 %v22_v39 }
0x1a35   :  { %7245 = vmatprep.subr.mxu0 %v21_v12 }
0x1a36   :  { %7246 = vmatpush3.msra.mxu0 %v21_v12 }
0x1a37   :  { %7235 = vmatmul.mubr.msk.f32.gmra.mxu0 %vm343_vm0, %v3650_v49  ;;  %7247 = vmatprep.subr.mxu0 %v20_v51 }
0x1a38   :  { %7237 = vmatprep.mubr.msk.f32.mxu0 %vm343_vm0, %v3651_v16  ;;  %7248 = vmatpush3.msra.mxu0 %v20_v51  ;;  %v6301_v51 = vld [vmem:[%s9891_s1 + $0x8] ss:$0 sm:$0xff] }
0x1a39   :  { %7249 = vmatprep.subr.mxu0 %v19_v22 }
0x1a3a   :  { %v7695_v52 = vpop.eup %7694  ;;  %7250 = vmatpush3.msra.mxu0 %v19_v22 }
0x1a3b   :  { %7238 = vmatmul.mubr.msk.f32.gmra.mxu0 %vm343_vm0, %v3652_v55  ;;  %v3653_v30 = vmul.f32 %v7695_v52, %v7679_v5 }
0x1a3d   :  { %7240 = vmatprep.mubr.msk.f32.mxu0 %vm343_vm0, %v3653_v30 }
0x1a3f   :  { %7241 = vmatmul.mubr.msk.f32.gmra.mxu0 %vm343_vm0, %v3654_v53 }
0x1af3   :  { %v7233_v48 = vpop.f32.mrf.mxu0 }
0x1af5   :  { %v3777_v24 = vpop.f32.mrf.mxu0 }
0x1af6   :  { %7251 = vmatprep.mubr.msk.f32.mxu0 %vm425_vm3, %v3777_v24 }
0x1af7   :  { %v7236_v1 = vpop.f32.mrf.mxu0  ;;  %7252 = vmatmul.mubr.msk.f32.vlgmr.msra.gmra.mxu0 %vm425_vm3, %v7233_v48 }
0x1af9   :  { %v3787_v28 = vpop.f32.mrf.mxu0 }
0x1afa   :  { %7254 = vmatprep.mubr.msk.f32.mxu0 %vm425_vm3, %v3787_v28 }
0x1afb   :  { %v7239_v47 = vpop.f32.mrf.mxu0  ;;  %7255 = vmatmul.mubr.msk.f32.gmra.mxu0 %vm425_vm3, %v7236_v1 }
0x1afd   :  { %v3797_v5 = vpop.f32.mrf.mxu0 }
0x1afe   :  { %7257 = vmatprep.mubr.msk.f32.mxu0 %vm425_vm3, %v3797_v5 }
0x1aff   :  { %v7242_v0 = vpop.f32.mrf.mxu0  ;;  %7258 = vmatmul.mubr.msk.f32.gmra.mxu0 %vm425_vm3, %v7239_v47 }
0x1b01   :  { %v3807_v17 = vpop.f32.mrf.mxu0 }
0x1b02   :  { %7260 = vmatprep.mubr.msk.f32.mxu0 %vm425_vm3, %v3807_v17  ;;  %v29_v17 = vld [vmem:[%s9891_s1 + $0x88] sm:$0xff] }
0x1b03   :  { %7261 = vmatmul.mubr.msk.f32.gmra.mxu0 %vm425_vm3, %v7242_v0  ;;  %v30_v0 = vld [vmem:[%s9891_s1 + $0x90] sm:$0xff] }
0x1bb7   :  { %v7253_v6 = vpop.f32.mrf.mxu0 }
0x1bb9   :  { %v3906_v9 = vpop.f32.mrf.mxu0 }
0x1bbb   :  { %v7256_v36 = vpop.f32.mrf.mxu0 }
0x1bbc   :  { %v3946_v42 = vadd.f32 %v7256_v36, %v7253_v6 }
0x1bbd   :  { %v3916_v39 = vpop.f32.mrf.mxu0 }
0x1bbe   :  { %v3945_v12 = vadd.f32 %v3916_v39, %v3906_v9 }
0x1bbf   :  { %v7259_v29 = vpop.f32.mrf.mxu0 }
0x1bc0   :  { %v3948_v32 = vadd.f32 %v7259_v29, %v3946_v42 }
0x1bc1   :  { %v3926_v62 = vpop.f32.mrf.mxu0 }
0x1bc2   :  { %v3947_v57 = vadd.f32 %v3945_v12, %v3926_v62 }
0x1bc3   :  { %v7262_v49 = vpop.f32.mrf.mxu0 }
0x1bc4   :  { %v3950_v16 = vadd.f32 %v7262_v49, %v3948_v32 }
0x1bc5   :  { %v3936_v22 = vpop.f32.mrf.mxu0 }
0x1bc6   :  { %v3956_v11 = vadd.f32 %v6301_v51, %v3950_v16  ;;  %v3949_v55 = vadd.f32 %v3947_v57, %v3936_v22 }
0x1bc8   :  { %v3958_v52 = vadd.f32 %v3956_v11, %v9160_v38  ;;  %v3955_v30 = vadd.f32 %v6301_v51, %v3949_v55  ;;  %v32_v38 = vld [vmem:[%s9891_s1 + $0xa0] sm:$0xff] }
0x1bc9   :  { %7263 = vmatprep.subr.mxu1 %v32_v38 }
0x1bca   :  { %v3957_v53 = vadd.f32 %v3955_v30, %v9158_v43  ;;  %v3962_v48 = vsel %vm425_vm3, %v3958_v52, 0.0  ;;  %v3968_v47 = vmul.f32 %v3958_v52, %v3958_v52  ;;  %v31_v43 = vld [vmem:[%s9891_s1 + $0x98] sm:$0xff]  ;;  %7264 = vmatpush3.msra.mxu1 %v32_v38  ;;  %v6302_v30 = vld [vmem:[%s9891_s1 + $0x100] ss:$0 sm:$0xff] }
0x1bcb   :  { %3963 = vadd.xlane.f32.xlu1 %v3962_v48  ;;  %7265 = vmatprep.subr.mxu1 %v31_v43 }
0x1bcc   :  { %v3959_v24 = vsel %vm425_vm3, %v3957_v53, 0.0  ;;  %v3967_v1 = vmul.f32 %v3957_v53, %v3957_v53  ;;  %v3972_v5 = vsel %vm425_vm3, %v3968_v47, 0.0  ;;  %7266 = vmatpush3.msra.mxu1 %v31_v43 }
0x1bcd   :  { %3960 = vadd.xlane.f32.xlu0 %v3959_v24  ;;  %7267 = vmatprep.subr.mxu1 %v30_v0  ;;  %v6303_v24 = vld [vmem:[%s9891_s1 + $0xf8] ss:$0 sm:$0xff] }
0x1bce   :  { %v3969_v28 = vsel %vm425_vm3, %v3967_v1, 0.0  ;;  %7268 = vmatpush3.msra.mxu1 %v30_v0 }
0x1bcf   :  { %7269 = vmatprep.subr.mxu1 %v29_v17 }
0x1bd0   :  { %7270 = vmatpush3.msra.mxu1 %v29_v17  ;;  %v38_v17 = vld [vmem:[%s9891_s1 + $0xd0] sm:$0xff] }
0x1bd1   :  { %3970 = vadd.xlane.f32.xlu0 %v3969_v28 }
0x1bd5   :  { %3973 = vadd.xlane.f32.xlu0 %v3972_v5 }
0x1c54   :  { %v3964_v36 = vpop.xlane.xlu1 %3963 }
0x1c55   :  { %v3966_v29 = vmul.f32 0.03125, %v3964_v36  ;;  %v35_v36 = vld [vmem:[%s9891_s1 + $0xb8] sm:$0xff] }
0x1c56   :  { %v3961_v6 = vpop.xlane.xlu0 %3960 }
0x1c57   :  { %v3965_v9 = vmul.f32 0.03125, %v3961_v6  ;;  %v3978_v51 = vmul.f32 %v3966_v29, %v3966_v29  ;;  %v3986_v1 = vsub.f32 %v3958_v52, %v3966_v29  ;;  %v39_v52 = vld [vmem:[%s9891_s1 + $0xd8] sm:$0xff]  ;;  %v37_v6 = vld [vmem:[%s9891_s1 + $0xc8] sm:$0xff] }
0x1c58   :  { %v33_v29 = vld [vmem:[%s9891_s1 + $0xa8] sm:$0xff] }
0x1c59   :  { %v3977_v42 = vmul.f32 %v3965_v9, %v3965_v9  ;;  %v3985_v11 = vsub.f32 %v3957_v53, %v3965_v9  ;;  %v40_v53 = vld [vmem:[%s9891_s1 + $0xe0] sm:$0xff] }
0x1c5a   :  { %v3971_v39 = vpop.xlane.xlu0 %3970  ;;  %7274 = vmatprep.subr.mxu0 %v40_v53  ;;  %v36_v9 = vld [vmem:[%s9891_s1 + $0xc0] sm:$0xff] }
0x1c5b   :  { %v3975_v62 = vmul.f32 0.03125, %v3971_v39  ;;  %7275 = vmatpush3.msra.mxu0 %v40_v53  ;;  %v34_v39 = vld [vmem:[%s9891_s1 + $0xb0] sm:$0xff] }
0x1c5c   :  { %7276 = vmatprep.subr.mxu0 %v39_v52 }
0x1c5d   :  { %v3979_v12 = vsub.f32 %v3975_v62, %v3977_v42  ;;  %7277 = vmatpush3.msra.mxu0 %v39_v52  ;;  %v6304_v42 = vld [vmem:[%s9891_s1 + $0x78] ss:$0 sm:$0xff] }
0x1c5e   :  { %v3974_v32 = vpop.xlane.xlu0 %3973  ;;  %7278 = vmatprep.subr.mxu0 %v38_v17 }
0x1c5f   :  { %v3981_v49 = vadd.f32 1e-06, %v3979_v12  ;;  %v3976_v57 = vmul.f32 0.03125, %v3974_v32  ;;  %7279 = vmatpush3.msra.mxu0 %v38_v17 }
0x1c60   :  { %7280 = vmatprep.subr.mxu0 %v37_v6 }
0x1c61   :  { %7696 = vrsqrt.f32 %v3981_v49  ;;  %v3980_v16 = vsub.f32 %v3976_v57, %v3978_v51  ;;  %7281 = vmatpush3.msra.mxu0 %v37_v6 }
0x1c62   :  { %7282 = vmatprep.subr.mxu0 %v36_v9 }
0x1c63   :  { %v3982_v22 = vadd.f32 1e-06, %v3980_v16  ;;  %7283 = vmatpush3.msra.mxu0 %v36_v9  ;;  %v6307_v9 = vld [vmem:[%s9891_s1 + $0x80] ss:$0 sm:$0xff] }
0x1c64   :  { %7284 = vmatprep.subr.mxu0 %v35_v36 }
0x1c65   :  { %7698 = vrsqrt.f32 %v3982_v22  ;;  %7285 = vmatpush3.msra.mxu0 %v35_v36 }
0x1c66   :  { %7286 = vmatprep.subr.mxu0 %v34_v39 }
0x1c67   :  { %7287 = vmatpush3.msra.mxu0 %v34_v39 }
0x1c68   :  { %7288 = vmatprep.subr.mxu0 %v33_v29 }
0x1c69   :  { %7289 = vmatpush3.msra.mxu0 %v33_v29 }
0x1c6e   :  { %v7697_v55 = vpop.eup %7696 }
0x1c6f   :  { %v3987_v48 = vmul.f32 %v7697_v55, %v3985_v11 }
0x1c71   :  { %v3993_v28 = vmul.f32 %v6302_v30, %v3987_v48 }
0x1c72   :  { %v7699_v47 = vpop.eup %7698 }
0x1c73   :  { %v3988_v5 = vmul.f32 %v7699_v47, %v3986_v1  ;;  %v3999_v38 = vadd.f32 %v6303_v24, %v3993_v28 }
0x1c75   :  { %v3994_v43 = vmul.f32 %v6302_v30, %v3988_v5  ;;  %7271 = vmatprep.mubr.msk.f32.mxu1 %vm425_vm3, %v3999_v38 }
0x1c77   :  { %v4000_v0 = vadd.f32 %v6303_v24, %v3994_v43 }
0x1c79   :  { %7272 = vmatmul.mubr.msk.f32.vlgmr.msra.gmra.mxu1 %vm425_vm3, %v4000_v0 }
0x1d39   :  { %v7273_v62 = vpop.f32.mrf.mxu1 }
0x1d3a   :  { %v4083_v12 = vadd.f32 %v7273_v62, %v6304_v42 }
0x1d3b   :  { %v4077_v32 = vpop.f32.mrf.mxu1 }
0x1d3c   :  { %v4087_v51 = vmul.f32 %v4083_v12, %v4083_v12  ;;  %v4078_v49 = vadd.f32 %v6304_v42, %v4077_v32 }
0x1d3e   :  { %v4089_v57 = vmul.f32 %v4087_v51, %v4083_v12  ;;  %v4086_v16 = vmul.f32 %v4078_v49, %v4078_v49 }
0x1d40   :  { %v4091_v22 = vmul.f32 0.044715, %v4089_v57  ;;  %v4088_v11 = vmul.f32 %v4086_v16, %v4078_v49 }
0x1d42   :  { %v4093_v55 = vadd.f32 %v4091_v22, %v4083_v12  ;;  %v4090_v30 = vmul.f32 0.044715, %v4088_v11  ;;  %v99_v11 = vld [vmem:[%s9891_s1 + $0x2b8] sm:$0xff] }
0x1d44   :  { %v4095_v48 = vmul.f32 0.7978846, %v4093_v55  ;;  %v4092_v24 = vadd.f32 %v4090_v30, %v4078_v49  ;;  %v98_v55 = vld [vmem:[%s9891_s1 + $0x2b0] sm:$0xff] }
0x1d46   :  { %7700 = vtanh.f32 %v4095_v48  ;;  %v4094_v1 = vmul.f32 0.7978846, %v4092_v24 }
0x1d48   :  { %7702 = vtanh.f32 %v4094_v1 }
0x1d53   :  { %v7701_v28 = vpop.eup %7700 }
0x1d54   :  { %v4099_v47 = vadd.f32 1.0, %v7701_v28 }
0x1d55   :  { %v7703_v5 = vpop.eup %7702 }
0x1d56   :  { %v4098_v43 = vadd.f32 1.0, %v7703_v5  ;;  %v4101_v53 = vmul.f32 0.5, %v4099_v47 }
0x1d58   :  { %v4100_v52 = vmul.f32 0.5, %v4098_v43  ;;  %v4103_v6 = vmul.f32 %v4101_v53, %v4083_v12 }
0x1d5a   :  { %v4102_v17 = vmul.f32 %v4100_v52, %v4078_v49 }
0x1d5c   :  { %7290 = vmatprep.mubr.msk.f32.mxu0 %vm343_vm0, %v4102_v17 }
0x1d5d   :  { %7291 = vmatmul.mubr.msk.f32.vlgmr.msra.gmra.mxu0 %vm343_vm0, %v4103_v6 }
0x1e1d   :  { %v7292_v36 = vpop.f32.mrf.mxu0 }
0x1e1e   :  { %v4186_v39 = vadd.f32 %v7292_v36, %v6307_v9 }
0x1e1f   :  { %v4180_v29 = vpop.f32.mrf.mxu0 }
0x1e20   :  { %v4190_v42 = vadd.f32 %v4186_v39, %v4000_v0  ;;  %v4181_v62 = vadd.f32 %v6307_v9, %v4180_v29  ;;  %v101_v0 = vld [vmem:[%s9891_s1 + $0x2c8] sm:$0xff] }
0x1e21   :  { %7293 = vmatprep.subr.mxu1 %v101_v0 }
0x1e22   :  { %v4189_v32 = vadd.f32 %v4181_v62, %v3999_v38  ;;  %v4194_v51 = vsel %vm425_vm3, %v4190_v42, 0.0  ;;  %v4200_v57 = vmul.f32 %v4190_v42, %v4190_v42  ;;  %v100_v38 = vld [vmem:[%s9891_s1 + $0x2c0] sm:$0xff]  ;;  %7294 = vmatpush3.msra.mxu1 %v101_v0 }
0x1e23   :  { %4195 = vadd.xlane.f32.xlu0 %v4194_v51  ;;  %7295 = vmatprep.subr.mxu1 %v100_v38  ;;  %v6310_v51 = vld [vmem:[%s9891_s1 + $0x110] ss:$0 sm:$0xff] }
0x1e24   :  { %v4191_v12 = vsel %vm425_vm3, %v4189_v32, 0.0  ;;  %v4199_v49 = vmul.f32 %v4189_v32, %v4189_v32  ;;  %v4204_v16 = vsel %vm425_vm3, %v4200_v57, 0.0  ;;  %7296 = vmatpush3.msra.mxu1 %v100_v38 }
0x1e25   :  { %4192 = vadd.xlane.f32.xlu1 %v4191_v12  ;;  %7297 = vmatprep.subr.mxu1 %v99_v11 }
0x1e26   :  { %v4201_v22 = vsel %vm425_vm3, %v4199_v49, 0.0  ;;  %7298 = vmatpush3.msra.mxu1 %v99_v11 }
0x1e27   :  { %4205 = vadd.xlane.f32.xlu0 %v4204_v16  ;;  %7299 = vmatprep.subr.mxu1 %v98_v55 }
0x1e28   :  { %7300 = vmatpush3.msra.mxu1 %v98_v55 }
0x1e29   :  { %4202 = vadd.xlane.f32.xlu1 %v4201_v22  ;;  %v6311_v22 = vld [vmem:[%s9891_s1 + $0x108] ss:$0 sm:$0xff] }
0x1eac   :  { %v4196_v30 = vpop.xlane.xlu0 %4195 }
0x1ead   :  { %v4198_v48 = vmul.f32 0.03125, %v4196_v30 }
0x1eae   :  { %v4193_v24 = vpop.xlane.xlu1 %4192 }
0x1eaf   :  { %v4197_v1 = vmul.f32 0.03125, %v4193_v24  ;;  %v4210_v47 = vmul.f32 %v4198_v48, %v4198_v48  ;;  %v4218_v39 = vsub.f32 %v4190_v42, %v4198_v48  ;;  %v6312_v42 = vld [vmem:[%s9891_s1 + $0x288] ss:$0 sm:$0xff] }
0x1eb0   :  { %v4206_v28 = vpop.xlane.xlu0 %4205 }
0x1eb1   :  { %v4208_v5 = vmul.f32 0.03125, %v4206_v28  ;;  %v4209_v53 = vmul.f32 %v4197_v1, %v4197_v1  ;;  %v4217_v62 = vsub.f32 %v4189_v32, %v4197_v1 }
0x1eb2   :  { %v4203_v43 = vpop.xlane.xlu1 %4202 }
0x1eb3   :  { %v4212_v52 = vsub.f32 %v4208_v5, %v4210_v47  ;;  %v4207_v17 = vmul.f32 0.03125, %v4203_v43 }
0x1eb5   :  { %v4214_v6 = vadd.f32 1e-06, %v4212_v52  ;;  %v4211_v9 = vsub.f32 %v4207_v17, %v4209_v53 }
0x1eb7   :  { %7704 = vrsqrt.f32 %v4214_v6  ;;  %v4213_v36 = vadd.f32 1e-06, %v4211_v9 }
0x1eb9   :  { %7706 = vrsqrt.f32 %v4213_v36 }
0x1ec4   :  { %v7705_v29 = vpop.eup %7704 }
0x1ec5   :  { %v4220_v57 = vmul.f32 %v7705_v29, %v4218_v39 }
0x1ec6   :  { %v7707_v12 = vpop.eup %7706 }
0x1ec7   :  { %v4219_v49 = vmul.f32 %v7707_v12, %v4217_v62  ;;  %v4226_v16 = vmul.f32 %v6310_v51, %v4220_v57 }
0x1ec9   :  { %v4225_v0 = vmul.f32 %v6310_v51, %v4219_v49  ;;  %v9395_v11 = vadd.f32 %v6311_v22, %v4226_v16 }
0x1ecb   :  { %v9393_v38 = vadd.f32 %v6311_v22, %v4225_v0 }
0x1ecd   :  { %7301 = vmatprep.mubr.msk.f32.mxu1 %vm425_vm3, %v9393_v38 }
0x1ece   :  { %7302 = vmatmul.mubr.msk.f32.vlgmr.msra.gmra.mxu1 %vm425_vm3, %v9395_v11 }
0x1f8e   :  { %v7303_v32 = vpop.f32.mrf.mxu1 }
0x1f8f   :  { %v9404_v55 = vadd.f32 %v7303_v32, %v6312_v42 }
0x1f90   :  { %v4309_v30 = vpop.f32.mrf.mxu1 }
0x1f91   :  { %v9406_v48 = vadd.f32 %v6312_v42, %v4309_v30  ;;  %v4325_v24 = vmul.f32 %v9404_v55, %v8018_v21  ;;  %v4323_v28 = vmul.f32 %v9404_v55, %v8022_v26  ;;  %v4321_v47 = vmul.f32 %v9404_v55, %v8039_v60 }
0x1f92   :  { %v4319_v43 = vmul.f32 %v9404_v55, %v8051_v63 }
0x1f93   :  { %4356 = vrot.lane.b32.xlu1 %v4325_v24, %s7831_s20  ;;  %7320 = vmatprep.mubr.msk.f32.mxu0 %vm425_vm3, %v9406_v48  ;;  %v4324_v1 = vmul.f32 %v9406_v48, %v8020_v23  ;;  %v4322_v5 = vmul.f32 %v9406_v48, %v8024_v27  ;;  %v4320_v53 = vmul.f32 %v9406_v48, %v8037_v59 }
0x1f94   :  { %v4318_v52 = vmul.f32 %v9406_v48, %v8061_v4 }
0x1f95   :  { %4354 = vrot.lane.b32.xlu0 %v4324_v1, %s7831_s20 }
0x1f97   :  { %4352 = vrot.lane.b32.xlu1 %v4323_v28, %s7831_s20 }
0x1f99   :  { %4348 = vrot.lane.b32.xlu0 %v4321_v47, %s7831_s20 }
0x1f9b   :  { %4350 = vrot.lane.b32.xlu1 %v4322_v5, %s7831_s20 }
0x1f9d   :  { %4344 = vrot.lane.b32.xlu0 %v4319_v43, %s7831_s20 }
0x1f9f   :  { %4346 = vrot.lane.b32.xlu1 %v4320_v53, %s7831_s20 }
0x1fa3   :  { %4342 = vrot.lane.b32.xlu1 %v4318_v52, %s7831_s20 }
0x2005   :  { %v4357_v17 = vpop.permute.xlu1 %4356 }
0x2006   :  { %7304 = vmatprep.subr.msk.mxu0 %vm425_vm3, %v4357_v17 }
0x2007   :  { %7305 = vmatpush3.xpose.msk.msra.mxu0 %vm425_vm3, %v4357_v17  ;;  %v4355_v6 = vpop.permute.xlu0 %4354 }
0x2008   :  { %7306 = vmatprep.subr.msk.mxu0 %vm425_vm3, %v4355_v6 }
0x2009   :  { %v4353_v9 = vpop.permute.xlu1 %4352 }
0x200b   :  { %7307 = vmatpush3.xpose.msk.msra.mxu0 %vm425_vm3, %v4355_v6  ;;  %v4349_v39 = vpop.permute.xlu0 %4348 }
0x200c   :  { %7308 = vmatprep.subr.msk.mxu0 %vm425_vm3, %v4353_v9 }
0x200d   :  { %v4351_v36 = vpop.permute.xlu1 %4350 }
0x200f   :  { %7309 = vmatpush3.xpose.msk.msra.mxu0 %vm425_vm3, %v4353_v9  ;;  %v4345_v62 = vpop.permute.xlu0 %4344 }
0x2010   :  { %7310 = vmatprep.subr.msk.mxu0 %vm425_vm3, %v4351_v36 }
0x2011   :  { %v4347_v29 = vpop.permute.xlu1 %4346 }
0x2013   :  { %7311 = vmatpush3.xpose.msk.msra.mxu0 %vm425_vm3, %v4351_v36 }
0x2014   :  { %7312 = vmatprep.subr.msk.mxu0 %vm425_vm3, %v4349_v39 }
0x2015   :  { %v4343_v51 = vpop.permute.xlu1 %4342 }
0x2017   :  { %7313 = vmatpush3.xpose.msk.msra.mxu0 %vm425_vm3, %v4349_v39 }
0x2018   :  { %7314 = vmatprep.subr.msk.mxu0 %vm425_vm3, %v4347_v29 }
0x201b   :  { %7315 = vmatpush3.xpose.msk.msra.mxu0 %vm425_vm3, %v4347_v29 }
0x201c   :  { %7316 = vmatprep.subr.msk.mxu0 %vm425_vm3, %v4345_v62 }
0x201f   :  { %7317 = vmatpush3.xpose.msk.msra.mxu0 %vm425_vm3, %v4345_v62 }
0x2020   :  { %7318 = vmatprep.subr.msk.mxu0 %vm425_vm3, %v4343_v51 }
0x2023   :  { %7319 = vmatpush3.xpose.msk.msra.mxu0 %vm425_vm3, %v4343_v51  ;;  %v4332_v51 = vmul.f32 %v9406_v48, %v8282_v18  ;;  %v4328_v18 = vmul.f32 %v9406_v48, %v8343_v14 }
0x2026   :  { %7321 = vmatmul.mubr.msk.f32.vlgmr.msra.gmra.mxu0 %vm425_vm3, %v9404_v55 }
0x2027   :  { %7323 = vmatprep.mubr.msk.f32.mxu0 %vm425_vm3, %v9406_v48 }
0x202a   :  { %7324 = vmatmul.mubr.msk.f32.gmra.mxu0 %vm425_vm3, %v9404_v55 }
0x202b   :  { %7326 = vmatprep.mubr.msk.f32.mxu0 %vm425_vm3, %v9406_v48 }
0x202e   :  { %7327 = vmatmul.mubr.msk.f32.gmra.mxu0 %vm425_vm3, %v9404_v55 }
0x202f   :  { %7329 = vmatprep.mubr.msk.f32.mxu0 %vm425_vm3, %v9406_v48 }
0x2032   :  { %7330 = vmatmul.mubr.msk.f32.gmra.mxu0 %vm425_vm3, %v9404_v55 }
0x20e6   :  { %v7322_v57 = vpop.f32.mrf.mxu0 }
0x20e7   :  { %v4486_v12 = vmul.f32 0.35355338, %v7322_v57 }
0x20e8   :  { %v4446_v49 = vpop.f32.mrf.mxu0 }
0x20e9   :  { %v4494_v16 = vadd.f32 %v4486_v12, %v8903_v44  ;;  %v4485_v22 = vmul.f32 0.35355338, %v4446_v49  ;;  %v4330_v49 = vmul.f32 %v9406_v48, %v8336_v40 }
0x20ea   :  { %v7325_v0 = vpop.f32.mrf.mxu0 }
0x20eb   :  { %v4493_v42 = vadd.f32 %v4485_v22, %v8909_v45  ;;  %v4504_v32 = vsel %vm343_vm0, %v4494_v16, -inf  ;;  %v4488_v24 = vmul.f32 0.35355338, %v7325_v0 }
0x20ec   :  { %4505 = vmax.xlane.f32.xlu1 %v4504_v32  ;;  %v4456_v30 = vpop.f32.mrf.mxu0 }
0x20ed   :  { %v4487_v1 = vmul.f32 0.35355338, %v4456_v30  ;;  %v4501_v28 = vsel %vm343_vm0, %v4493_v42, -inf  ;;  %v4496_v53 = vadd.f32 %v4488_v24, %v8938_v3 }
0x20ee   :  { %4502 = vmax.xlane.f32.xlu0 %v4501_v28  ;;  %v7328_v47 = vpop.f32.mrf.mxu0 }
0x20ef   :  { %v4495_v5 = vadd.f32 %v4487_v1, %v8928_v25  ;;  %v4490_v44 = vmul.f32 0.35355338, %v7328_v47  ;;  %v4510_v39 = vsel %vm343_vm0, %v4496_v53, -inf }
0x20f0   :  { %v4466_v43 = vpop.f32.mrf.mxu0 }
0x20f1   :  { %v4489_v52 = vmul.f32 0.35355338, %v4466_v43  ;;  %v4507_v17 = vsel %vm343_vm0, %v4495_v5, -inf  ;;  %v4498_v9 = vadd.f32 %v4490_v44, %v8950_v34  ;;  %v4331_v34 = vmul.f32 %v9404_v55, %v8334_v15 }
0x20f2   :  { %4508 = vmax.xlane.f32.xlu0 %v4507_v17  ;;  %v7331_v45 = vpop.f32.mrf.mxu0 }
0x20f3   :  { %v4497_v6 = vadd.f32 %v4489_v52, %v8944_v35  ;;  %v4492_v36 = vmul.f32 0.35355338, %v7331_v45  ;;  %v4516_v3 = vsel %vm343_vm0, %v4498_v9, -inf  ;;  %v4333_v35 = vmul.f32 %v9404_v55, %v8266_v31 }
0x20f4   :  { %v4476_v57 = vpop.f32.mrf.mxu0 }
0x20f5   :  { %v4513_v29 = vsel %vm343_vm0, %v4497_v6, -inf  ;;  %v4500_v25 = vadd.f32 %v4492_v36, %v8959_v56  ;;  %v4329_v56 = vmul.f32 %v9404_v55, %v8292_v54  ;;  %v4491_v12 = vmul.f32 0.35355338, %v4476_v57 }
0x20f6   :  { %4511 = vmax.xlane.f32.xlu0 %v4510_v39  ;;  %4514 = vmax.xlane.f32.xlu1 %v4513_v29 }
0x20f7   :  { %v4522_v62 = vsel %vm343_vm0, %v4500_v25, -inf  ;;  %v9491_v31 = vadd.f32 %v4491_v12, %v8982_v7 }
0x20f9   :  { %v4519_v15 = vsel %vm343_vm0, %v9491_v31, -inf }
0x20fa   :  { %4517 = vmax.xlane.f32.xlu0 %v4516_v3 }
0x20fe   :  { %4523 = vmax.xlane.f32.xlu0 %v4522_v62 }
0x2107   :  { %4611 = vrot.lane.b32.xlu1 %v4333_v35, %s7832_s21 }
0x210b   :  { %4607 = vrot.lane.b32.xlu1 %v4331_v34, %s7832_s21 }
0x2114   :  { %4609 = vrot.lane.b32.xlu0 %v4332_v51, %s7832_s21 }
0x2118   :  { %4603 = vrot.lane.b32.xlu0 %v4329_v56, %s7832_s21 }
0x212f   :  { %4520 = vmax.xlane.f32.xlu1 %v4519_v15 }
0x2140   :  { %4605 = vrot.lane.b32.xlu1 %v4330_v49, %s7832_s21 }
0x2144   :  { %4601 = vrot.lane.b32.xlu1 %v4328_v18, %s7832_s21 }
0x2175   :  { %v4506_v54 = vpop.xlane.xlu1 %4505 }
0x2176   :  { %v4526_v22 = vsub.f32 %v4494_v16, %v4506_v54  ;;  %v4327_v54 = vmul.f32 %v9404_v55, %v8351_v61  ;;  %v4326_v61 = vmul.f32 %v9406_v48, %v8349_v50 }
0x2177   :  { %v4503_v0 = vpop.xlane.xlu0 %4502 }
0x2178   :  { %v4535_v32 = vmul.f32 1.442695, %v4526_v22  ;;  %v4525_v7 = vsub.f32 %v4493_v42, %v4503_v0 }
0x217a   :  { %7708 = vpow2.f32 %v4535_v32  ;;  %v4533_v30 = vmul.f32 1.442695, %v4525_v7 }
0x217b   :  { %v4509_v24 = vpop.xlane.xlu0 %4508 }
0x217c   :  { %7710 = vpow2.f32 %v4533_v30  ;;  %v4527_v1 = vsub.f32 %v4495_v5, %v4509_v24 }
0x217e   :  { %v4537_v28 = vmul.f32 1.442695, %v4527_v1 }
0x217f   :  { %v4512_v47 = vpop.xlane.xlu0 %4511  ;;  %v4515_v40 = vpop.xlane.xlu1 %4514 }
0x2180   :  { %7712 = vpow2.f32 %v4537_v28  ;;  %v4528_v43 = vsub.f32 %v4496_v53, %v4512_v47  ;;  %v4529_v44 = vsub.f32 %v4497_v6, %v4515_v40 }
0x2182   :  { %v4539_v52 = vmul.f32 1.442695, %v4528_v43  ;;  %v4541_v14 = vmul.f32 1.442695, %v4529_v44 }
0x2183   :  { %v4518_v17 = vpop.xlane.xlu0 %4517  ;;  %v4612_v45 = vpop.permute.xlu1 %4611 }
0x2184   :  { %7714 = vpow2.f32 %v4539_v52  ;;  %v4530_v16 = vsub.f32 %v4498_v9, %v4518_v17  ;;  %7332 = vmatprep.subr.mxu1 %v4612_v45 }
0x2185   :  { %7716 = vpow2.f32 %v4541_v14  ;;  %7333 = vmatpush3.msra.mxu1 %v4612_v45 }
0x2186   :  { %v4543_v42 = vmul.f32 1.442695, %v4530_v16 }
0x2187   :  { %v9501_v36 = vpop.eup %7708  ;;  %v4524_v39 = vpop.xlane.xlu0 %4523 }
0x2188   :  { %7718 = vpow2.f32 %v4543_v42  ;;  %v4532_v5 = vsub.f32 %v4500_v25, %v4524_v39  ;;  %v4552_v29 = vsel %vm343_vm0, %v9501_v36, 0.0  ;;  %v4608_v35 = vpop.permute.xlu1 %4607  ;;  %v97_v39 = vld [vmem:[%s9891_s1 + $0x2a8] sm:$0xff] }
0x2189   :  { %v7711_v53 = vpop.eup %7710  ;;  %4553 = vadd.xlane.f32.xlu0 %v4552_v29 }
0x218a   :  { %v4547_v6 = vmul.f32 1.442695, %v4532_v5  ;;  %v4549_v3 = vsel %vm343_vm0, %v7711_v53, 0.0 }
0x218b   :  { %v4610_v62 = vpop.permute.xlu0 %4609  ;;  %4550 = vadd.xlane.f32.xlu1 %v4549_v3 }
0x218c   :  { %7720 = vpow2.f32 %v4547_v6  ;;  %7334 = vmatprep.subr.mxu1 %v4610_v62  ;;  %v96_v6 = vld [vmem:[%s9891_s1 + $0x2a0] sm:$0xff] }
0x218d   :  { %v9506_v9 = vpop.eup %7712  ;;  %7335 = vmatpush3.msra.mxu1 %v4610_v62  ;;  %v95_v62 = vld [vmem:[%s9891_s1 + $0x298] sm:$0xff] }
0x218e   :  { %7336 = vmatprep.subr.mxu1 %v4608_v35  ;;  %v4555_v25 = vsel %vm343_vm0, %v9506_v9, 0.0 }
0x218f   :  { %7337 = vmatpush3.msra.mxu1 %v4608_v35  ;;  %4556 = vadd.xlane.f32.xlu1 %v4555_v25  ;;  %v4604_v30 = vpop.permute.xlu0 %4603  ;;  %v94_v25 = vld [vmem:[%s9891_s1 + $0x290] sm:$0xff] }
0x2191   :  { %v9510_v34 = vpop.eup %7714 }
0x2192   :  { %v9512_v51 = vpop.eup %7716  ;;  %v4558_v56 = vsel %vm343_vm0, %v9510_v34, 0.0 }
0x2193   :  { %4559 = vadd.xlane.f32.xlu0 %v4558_v56  ;;  %v4561_v57 = vsel %vm343_vm0, %v9512_v51, 0.0 }
0x2194   :  { %4562 = vadd.xlane.f32.xlu1 %v4561_v57 }
0x2195   :  { %v9518_v12 = vpop.eup %7718 }
0x2196   :  { %v4564_v15 = vsel %vm343_vm0, %v9518_v12, 0.0 }
0x2197   :  { %4565 = vadd.xlane.f32.xlu0 %v4564_v15 }
0x2199   :  { %v9522_v49 = vpop.eup %7720 }
0x219a   :  { %v4570_v18 = vsel %vm343_vm0, %v9522_v49, 0.0 }
0x219b   :  { %4571 = vadd.xlane.f32.xlu0 %v4570_v18  ;;  %v63_v18 = vld [vmem:[%s9891_s1 + $0x198] sm:$0xff] }
0x21b1   :  { %4599 = vrot.lane.b32.xlu0 %v4327_v54, %s7832_s21 }
0x21b8   :  { %v4521_v22 = vpop.xlane.xlu1 %4520 }
0x21b9   :  { %v4531_v0 = vsub.f32 %v9491_v31, %v4521_v22 }
0x21bb   :  { %v4545_v32 = vmul.f32 1.442695, %v4531_v0 }
0x21bc   :  { %v4606_v7 = vpop.permute.xlu1 %4605 }
0x21bd   :  { %7722 = vpow2.f32 %v4545_v32  ;;  %7338 = vmatprep.subr.mxu1 %v4606_v7 }
0x21be   :  { %7339 = vmatpush3.msra.mxu1 %v4606_v7  ;;  %v60_v7 = vld [vmem:[%s9891_s1 + $0x180] sm:$0xff] }
0x21bf   :  { %7340 = vmatprep.subr.mxu1 %v4604_v30 }
0x21c0   :  { %7341 = vmatpush3.msra.mxu1 %v4604_v30  ;;  %v4602_v24 = vpop.permute.xlu1 %4601 }
0x21c1   :  { %7342 = vmatprep.subr.mxu1 %v4602_v24 }
0x21c2   :  { %7343 = vmatpush3.msra.mxu1 %v4602_v24 }
0x21ca   :  { %v7723_v1 = vpop.eup %7722 }
0x21cb   :  { %v4567_v28 = vsel %vm343_vm0, %v7723_v1, 0.0 }
0x21cc   :  { %4568 = vadd.xlane.f32.xlu1 %v4567_v28 }
0x21dd   :  { %4597 = vrot.lane.b32.xlu1 %v4326_v61, %s7832_s21  ;;  %v71_v61 = vld [vmem:[%s9891_s1 + $0x1d8] sm:$0xff] }
0x21de   :  { %7380 = vmatprep.subr.mxu0 %v71_v61 }
0x21df   :  { %7381 = vmatpush3.msra.mxu0 %v71_v61 }
0x2212   :  { %v4554_v31 = vpop.xlane.xlu0 %4553 }
0x2214   :  { %v4551_v55 = vpop.xlane.xlu1 %4550 }
0x2215   :  { %7724 = vrcp.f32 %v4551_v55  ;;  %v70_v55 = vld [vmem:[%s9891_s1 + $0x1d0] sm:$0xff] }
0x2216   :  { %7726 = vrcp.f32 %v4554_v31  ;;  %v69_v31 = vld [vmem:[%s9891_s1 + $0x1c8] sm:$0xff]  ;;  %7382 = vmatprep.subr.mxu0 %v70_v55 }
0x2217   :  { %7383 = vmatpush3.msra.mxu0 %v70_v55  ;;  %v6348_v55 = vld [vmem:[%s9891_s1 + $0x258] ss:$0 sm:$0xff] }
0x2218   :  { %v4557_v17 = vpop.xlane.xlu1 %4556  ;;  %7384 = vmatprep.subr.mxu0 %v69_v31 }
0x2219   :  { %7728 = vrcp.f32 %v4557_v17  ;;  %7385 = vmatpush3.msra.mxu0 %v69_v31 }
0x221c   :  { %v4560_v47 = vpop.xlane.xlu0 %4559 }
0x221d   :  { %v4563_v45 = vpop.xlane.xlu1 %4562  ;;  %7730 = vrcp.f32 %v4560_v47 }
0x221e   :  { %7732 = vrcp.f32 %v4563_v45 }
0x2220   :  { %v4566_v40 = vpop.xlane.xlu0 %4565 }
0x2221   :  { %7734 = vrcp.f32 %v4566_v40 }
0x2222   :  { %v7725_v43 = vpop.eup %7724 }
0x2223   :  { %v4581_v44 = vmul.f32 %v7725_v43, %v7711_v53  ;;  %v7727_v48 = vpop.eup %7726 }
0x2224   :  { %v4572_v52 = vpop.xlane.xlu0 %4571  ;;  %v4582_v5 = vmul.f32 %v7727_v48, %v9501_v36 }
0x2225   :  { %7348 = vmatprep.mubr.msk.f32.mxu1 %vm343_vm0, %v4581_v44  ;;  %7736 = vrcp.f32 %v4572_v52 }
0x2226   :  { %v7729_v16 = vpop.eup %7728 }
0x2227   :  { %v4583_v53 = vmul.f32 %v7729_v16, %v9506_v9 }
0x2228   :  { %v4600_v14 = vpop.permute.xlu0 %4599 }
0x2229   :  { %7344 = vmatprep.subr.mxu1 %v4600_v14 }
0x222a   :  { %7345 = vmatpush3.msra.mxu1 %v4600_v14  ;;  %v7731_v29 = vpop.eup %7730 }
0x222b   :  { %v7733_v3 = vpop.eup %7732  ;;  %v4584_v36 = vmul.f32 %v7731_v29, %v9510_v34 }
0x222c   :  { %v4585_v9 = vmul.f32 %v7733_v3, %v9512_v51 }
0x222e   :  { %v7735_v35 = vpop.eup %7734 }
0x222f   :  { %v4586_v57 = vmul.f32 %v7735_v35, %v9518_v12  ;;  %v62_v12 = vld [vmem:[%s9891_s1 + $0x190] sm:$0xff] }
0x2232   :  { %v7737_v56 = vpop.eup %7736 }
0x2233   :  { %v4588_v15 = vmul.f32 %v7737_v56, %v9522_v49  ;;  %v61_v49 = vld [vmem:[%s9891_s1 + $0x188] sm:$0xff] }
0x2255   :  { %v4569_v50 = vpop.xlane.xlu1 %4568 }
0x2256   :  { %7738 = vrcp.f32 %v4569_v50  ;;  %v6347_v50 = vld [vmem:[%s9891_s1 + $0x280] ss:$0 sm:$0xff] }
0x2259   :  { %v4598_v42 = vpop.permute.xlu1 %4597 }
0x225a   :  { %7346 = vmatprep.subr.mxu1 %v4598_v42 }
0x225b   :  { %7347 = vmatpush3.msra.mxu1 %v4598_v42 }
0x225c   :  { %7349 = vmatmul.mubr.msk.f32.vlgmr.msra.gmra.mxu1 %vm343_vm0, %v4582_v5  ;;  %7360 = vmatprep.subr.mxu1 %v97_v39  ;;  %v6353_v5 = vld [vmem:[%s9891_s1 + $0x168] ss:$0 sm:$0xff] }
0x225d   :  { %7351 = vmatprep.mubr.msk.f32.mxu1 %vm343_vm0, %v4583_v53  ;;  %7361 = vmatpush3.msra.mxu1 %v97_v39 }
0x225e   :  { %7362 = vmatprep.subr.mxu1 %v96_v6 }
0x225f   :  { %7363 = vmatpush3.msra.mxu1 %v96_v6 }
0x2260   :  { %7352 = vmatmul.mubr.msk.f32.gmra.mxu1 %vm343_vm0, %v4584_v36  ;;  %7364 = vmatprep.subr.mxu1 %v95_v62 }
0x2261   :  { %7354 = vmatprep.mubr.msk.f32.mxu1 %vm343_vm0, %v4585_v9  ;;  %7365 = vmatpush3.msra.mxu1 %v95_v62 }
0x2262   :  { %7366 = vmatprep.subr.mxu1 %v94_v25 }
0x2263   :  { %v7739_v34 = vpop.eup %7738  ;;  %7367 = vmatpush3.msra.mxu1 %v94_v25 }
0x2264   :  { %7355 = vmatmul.mubr.msk.f32.gmra.mxu1 %vm343_vm0, %v4586_v57  ;;  %v4587_v51 = vmul.f32 %v7739_v34, %v7723_v1  ;;  %7391 = vmatprep.subr.mxu1 %v63_v18 }
0x2266   :  { %7357 = vmatprep.mubr.msk.f32.mxu1 %vm343_vm0, %v4587_v51 }
0x2268   :  { %7358 = vmatmul.mubr.msk.f32.gmra.mxu1 %vm343_vm0, %v4588_v15 }
0x231c   :  { %v7350_v54 = vpop.f32.mrf.mxu1 }
0x231e   :  { %v4711_v22 = vpop.f32.mrf.mxu1 }
0x231f   :  { %7368 = vmatprep.mubr.msk.f32.mxu1 %vm425_vm3, %v4711_v22 }
0x2320   :  { %v7353_v0 = vpop.f32.mrf.mxu1  ;;  %7369 = vmatmul.mubr.msk.f32.vlgmr.msra.gmra.mxu1 %vm425_vm3, %v7350_v54 }
0x2321   :  { %7392 = vmatpush3.msra.mxu1 %v63_v18 }
0x2322   :  { %v4721_v32 = vpop.f32.mrf.mxu1  ;;  %7393 = vmatprep.subr.mxu1 %v62_v12 }
0x2323   :  { %7371 = vmatprep.mubr.msk.f32.mxu1 %vm425_vm3, %v4721_v32  ;;  %7394 = vmatpush3.msra.mxu1 %v62_v12 }
0x2324   :  { %v7356_v30 = vpop.f32.mrf.mxu1  ;;  %7372 = vmatmul.mubr.msk.f32.gmra.mxu1 %vm425_vm3, %v7353_v0  ;;  %7395 = vmatprep.subr.mxu1 %v61_v49 }
0x2325   :  { %7396 = vmatpush3.msra.mxu1 %v61_v49 }
0x2326   :  { %v4731_v24 = vpop.f32.mrf.mxu1  ;;  %7397 = vmatprep.subr.mxu1 %v60_v7 }
0x2327   :  { %7374 = vmatprep.mubr.msk.f32.mxu1 %vm425_vm3, %v4731_v24  ;;  %7398 = vmatpush3.msra.mxu1 %v60_v7 }
0x2328   :  { %v7359_v1 = vpop.f32.mrf.mxu1  ;;  %7375 = vmatmul.mubr.msk.f32.gmra.mxu1 %vm425_vm3, %v7356_v30 }
0x232a   :  { %v4741_v28 = vpop.f32.mrf.mxu1 }
0x232b   :  { %7377 = vmatprep.mubr.msk.f32.mxu1 %vm425_vm3, %v4741_v28 }
0x232c   :  { %7378 = vmatmul.mubr.msk.f32.gmra.mxu1 %vm425_vm3, %v7359_v1 }
0x232d   :  { %7399 = vmatprep.mubr.msk.f32.mxu1 %vm425_vm3, %v9112_v46  ;;  %v68_v46 = vld [vmem:[%s9891_s1 + $0x1c0] sm:$0xff] }
0x232e   :  { %7386 = vmatprep.subr.mxu0 %v68_v46 }
0x232f   :  { %7387 = vmatpush3.msra.mxu0 %v68_v46  ;;  %v6349_v46 = vld [vmem:[%s9891_s1 + $0x250] ss:$0 sm:$0xff] }
0x2330   :  { %7400 = vmatmul.mubr.msk.f32.vlgmr.msra.gmra.mxu1 %vm425_vm3, %v9117_v37 }
0x23e0   :  { %v7370_v37 = vpop.f32.mrf.mxu1 }
0x23e2   :  { %v4840_v47 = vpop.f32.mrf.mxu1 }
0x23e4   :  { %v7373_v40 = vpop.f32.mrf.mxu1 }
0x23e5   :  { %v4880_v52 = vadd.f32 %v7373_v40, %v7370_v37 }
0x23e6   :  { %v4850_v43 = vpop.f32.mrf.mxu1 }
0x23e7   :  { %v4879_v17 = vadd.f32 %v4850_v43, %v4840_v47 }
0x23e8   :  { %v7376_v44 = vpop.f32.mrf.mxu1 }
0x23e9   :  { %v4882_v45 = vadd.f32 %v7376_v44, %v4880_v52 }
0x23ea   :  { %v4860_v14 = vpop.f32.mrf.mxu1 }
0x23eb   :  { %v4881_v16 = vadd.f32 %v4879_v17, %v4860_v14 }
0x23ec   :  { %v7379_v48 = vpop.f32.mrf.mxu1 }
0x23ed   :  { %v4884_v42 = vadd.f32 %v7379_v48, %v4882_v45 }
0x23ee   :  { %v4870_v39 = vpop.f32.mrf.mxu1 }
0x23ef   :  { %v4890_v29 = vadd.f32 %v6347_v50, %v4884_v42  ;;  %v4883_v53 = vadd.f32 %v4881_v16, %v4870_v39  ;;  %v6350_v42 = vld [vmem:[%s9891_s1 + $0x178] ss:$0 sm:$0xff] }
0x23f0   :  { %v7401_v6 = vpop.f32.mrf.mxu1 }
0x23f1   :  { %v4892_v3 = vadd.f32 %v4890_v29, %v9395_v11  ;;  %v4889_v62 = vadd.f32 %v6347_v50, %v4883_v53  ;;  %v9603_v36 = vadd.f32 %v7401_v6, %v6353_v5 }
0x23f2   :  { %v5090_v43 = vpop.f32.mrf.mxu1 }
0x23f3   :  { %v4891_v35 = vadd.f32 %v4889_v62, %v9393_v38  ;;  %v4896_v9 = vsel %vm425_vm3, %v4892_v3, 0.0  ;;  %v5106_v25 = vmul.f32 %v9987_v10, %v9603_v36  ;;  %v4902_v11 = vmul.f32 %v4892_v3, %v4892_v3 }
0x23f4   :  { %4897 = vadd.xlane.f32.xlu1 %v4896_v9  ;;  %v9621_v14 = vadd.f32 %v6353_v5, %v5090_v43  ;;  %v5104_v48 = vmul.f32 %v9989_v13, %v9603_v36  ;;  %v5110_v43 = vmul.f32 %v9603_v36, %v8039_v60 }
0x23f5   :  { %7402 = vmatprep.subr.msk.mxu0 %vm425_vm3, %v5106_v25  ;;  %v4893_v56 = vsel %vm425_vm3, %v4891_v35, 0.0  ;;  %v4901_v57 = vmul.f32 %v4891_v35, %v4891_v35  ;;  %v4906_v51 = vsel %vm425_vm3, %v4902_v11, 0.0 }
0x23f6   :  { %4894 = vadd.xlane.f32.xlu0 %v4893_v56  ;;  %v5105_v50 = vmul.f32 %v9988_v58, %v9621_v14  ;;  %v5103_v16 = vmul.f32 %v9990_v19, %v9621_v14  ;;  %v5102_v58 = vmul.f32 %v9991_v2, %v9603_v36  ;;  %v5101_v13 = vmul.f32 %v9992_v41, %v9621_v14 }
0x23f7   :  { %v4903_v34 = vsel %vm425_vm3, %v4901_v57, 0.0  ;;  %v5100_v19 = vmul.f32 %v9993_v20, %v9603_v36  ;;  %v5099_v2 = vmul.f32 %v9994_v33, %v9621_v14 }
0x23fa   :  { %4904 = vadd.xlane.f32.xlu0 %v4903_v34  ;;  %v10000_v34 = vld [vmem:[#allocation16_spill] sm:$0xff] }
0x23fe   :  { %4907 = vadd.xlane.f32.xlu0 %v4906_v51 }
0x247d   :  { %v4898_v18 = vpop.xlane.xlu1 %4897 }
0x247e   :  { %v4900_v22 = vmul.f32 0.03125, %v4898_v18  ;;  %v10001_v18 = vld [vmem:[#allocation17_spill] sm:$0xff] }
0x247f   :  { %v4895_v38 = vpop.xlane.xlu0 %4894 }
0x2480   :  { %v4899_v15 = vmul.f32 0.03125, %v4895_v38  ;;  %v4912_v32 = vmul.f32 %v4900_v22, %v4900_v22  ;;  %v4920_v37 = vsub.f32 %v4892_v3, %v4900_v22 }
0x2482   :  { %v4911_v10 = vmul.f32 %v4899_v15, %v4899_v15  ;;  %v4919_v28 = vsub.f32 %v4891_v35, %v4899_v15  ;;  %v9999_v35 = vld [vmem:[#allocation15_spill] sm:$0xff] }
0x2483   :  { %v4905_v54 = vpop.xlane.xlu0 %4904 }
0x2484   :  { %v4909_v12 = vmul.f32 0.03125, %v4905_v54 }
0x2486   :  { %v4913_v0 = vsub.f32 %v4909_v12, %v4911_v10  ;;  %v10002_v12 = vld [vmem:[#allocation18_spill] sm:$0xff] }
0x2487   :  { %v4908_v49 = vpop.xlane.xlu0 %4907 }
0x2488   :  { %v4915_v7 = vadd.f32 1e-06, %v4913_v0  ;;  %v4910_v30 = vmul.f32 0.03125, %v4908_v49 }
0x248a   :  { %7740 = vrsqrt.f32 %v4915_v7  ;;  %v4914_v24 = vsub.f32 %v4910_v30, %v4912_v32  ;;  %v10003_v30 = vld [vmem:[#allocation21_spill] sm:$0xff] }
0x248c   :  { %v4916_v1 = vadd.f32 1e-06, %v4914_v24 }
0x248e   :  { %7742 = vrsqrt.f32 %v4916_v1 }
0x2497   :  { %v7741_v61 = vpop.eup %7740 }
0x2498   :  { %v4921_v31 = vmul.f32 %v7741_v61, %v4919_v28  ;;  %v10004_v61 = vld [vmem:[#allocation19_spill] sm:$0xff] }
0x249a   :  { %v4927_v47 = vmul.f32 %v6348_v55, %v4921_v31 }
0x249b   :  { %v7743_v40 = vpop.eup %7742 }
0x249c   :  { %v4922_v44 = vmul.f32 %v7743_v40, %v4920_v37  ;;  %v9619_v52 = vadd.f32 %v6349_v46, %v4927_v47  ;;  %v5114_v37 = vmul.f32 %v9603_v36, %v8018_v21  ;;  %v5112_v47 = vmul.f32 %v9603_v36, %v8022_v26  ;;  %v10005_v21 = vld [vmem:[#allocation22_spill] sm:$0xff] }
0x249d   :  { %v5113_v40 = vmul.f32 %v9621_v14, %v8020_v23  ;;  %v5109_v23 = vmul.f32 %v9621_v14, %v8037_v59 }
0x249e   :  { %v4928_v17 = vmul.f32 %v6348_v55, %v4922_v44  ;;  %7388 = vmatprep.mubr.msk.f32.mxu0 %vm425_vm3, %v9619_v52 }
0x24a0   :  { %v9625_v45 = vadd.f32 %v6349_v46, %v4928_v17 }
0x24a2   :  { %7389 = vmatmul.mubr.msk.f32.vlgmr.msra.gmra.mxu0 %vm425_vm3, %v9625_v45 }
0x24a3   :  { %7403 = vmatpush3.xpose.msk.msra.mxu0 %vm425_vm3, %v5106_v25 }
0x24a4   :  { %7404 = vmatprep.subr.msk.mxu0 %vm425_vm3, %v5105_v50 }
0x24a7   :  { %7405 = vmatpush3.xpose.msk.msra.mxu0 %vm425_vm3, %v5105_v50 }
0x24a8   :  { %7406 = vmatprep.subr.msk.mxu0 %vm425_vm3, %v5104_v48 }
0x24ab   :  { %7407 = vmatpush3.xpose.msk.msra.mxu0 %vm425_vm3, %v5104_v48  ;;  %v5111_v48 = vmul.f32 %v9621_v14, %v8024_v27 }
0x24ac   :  { %7408 = vmatprep.subr.msk.mxu0 %vm425_vm3, %v5103_v16 }
0x24af   :  { %7409 = vmatpush3.xpose.msk.msra.mxu0 %vm425_vm3, %v5103_v16 }
0x24b0   :  { %7410 = vmatprep.subr.msk.mxu0 %vm425_vm3, %v5102_v58 }
0x24b3   :  { %7411 = vmatpush3.xpose.msk.msra.mxu0 %vm425_vm3, %v5102_v58 }
0x24b4   :  { %7412 = vmatprep.subr.msk.mxu0 %vm425_vm3, %v5101_v13 }
0x24b7   :  { %7413 = vmatpush3.xpose.msk.msra.mxu0 %vm425_vm3, %v5101_v13 }
0x24b8   :  { %7414 = vmatprep.subr.msk.mxu0 %vm425_vm3, %v5100_v19 }
0x24bb   :  { %7415 = vmatpush3.xpose.msk.msra.mxu0 %vm425_vm3, %v5100_v19 }
0x24bc   :  { %7416 = vmatprep.subr.msk.mxu0 %vm425_vm3, %v5099_v2 }
0x24bf   :  { %7417 = vmatpush3.xpose.msk.msra.mxu0 %vm425_vm3, %v5099_v2 }
0x2562   :  { %v7390_v41 = vpop.f32.mrf.mxu0 }
0x2563   :  { %v5017_v5 = vadd.f32 %v7390_v41, %v6350_v42 }
0x2564   :  { %v5011_v39 = vpop.f32.mrf.mxu0 }
0x2565   :  { %v5012_v20 = vadd.f32 %v6350_v42, %v5011_v39 }
0x2567   :  { %7418 = vmatprep.mubr.msk.f32.mxu0 %vm425_vm3, %v5012_v20 }
0x2568   :  { %7419 = vmatmul.mubr.msk.f32.vlgmr.msra.gmra.mxu0 %vm425_vm3, %v5017_v5 }
0x2569   :  { %7421 = vmatprep.mubr.msk.f32.mxu0 %vm425_vm3, %v5012_v20 }
0x256c   :  { %7422 = vmatmul.mubr.msk.f32.gmra.mxu0 %vm425_vm3, %v5017_v5 }
0x256d   :  { %7424 = vmatprep.mubr.msk.f32.mxu0 %vm425_vm3, %v5012_v20 }
0x2570   :  { %7425 = vmatmul.mubr.msk.f32.gmra.mxu0 %vm425_vm3, %v5017_v5 }
0x2571   :  { %7427 = vmatprep.mubr.msk.f32.mxu0 %vm425_vm3, %v5012_v20 }
0x2574   :  { %7428 = vmatmul.mubr.msk.f32.gmra.mxu0 %vm425_vm3, %v5017_v5 }
0x2628   :  { %v7420_v33 = vpop.f32.mrf.mxu0 }
0x2629   :  { %v5251_v29 = vmul.f32 0.35355338, %v7420_v33 }
0x262a   :  { %v5211_v53 = vpop.f32.mrf.mxu0 }
0x262b   :  { %v5259_v6 = vadd.f32 %v5251_v29, %v8182_v8  ;;  %v5250_v3 = vmul.f32 0.35355338, %v5211_v53 }
0x262c   :  { %v7423_v62 = vpop.f32.mrf.mxu0 }
0x262d   :  { %v5258_v9 = vadd.f32 %v5250_v3, %v9999_v35  ;;  %v5253_v25 = vmul.f32 0.35355338, %v7423_v62  ;;  %v5269_v56 = vsel %vm343_vm0, %v5259_v6, -inf }
0x262e   :  { %5270 = vmax.xlane.f32.xlu0 %v5269_v56  ;;  %v5221_v57 = vpop.f32.mrf.mxu0 }
0x262f   :  { %v5261_v11 = vadd.f32 %v5253_v25, %v10000_v34  ;;  %v5252_v51 = vmul.f32 0.35355338, %v5221_v57  ;;  %v5266_v38 = vsel %vm343_vm0, %v5258_v9, -inf }
0x2630   :  { %5267 = vmax.xlane.f32.xlu1 %v5266_v38  ;;  %v7426_v15 = vpop.f32.mrf.mxu0 }
0x2631   :  { %v5260_v54 = vadd.f32 %v5252_v51, %v10001_v18  ;;  %v5255_v22 = vmul.f32 0.35355338, %v7426_v15  ;;  %v5275_v8 = vsel %vm343_vm0, %v5261_v11, -inf }
0x2632   :  { %5276 = vmax.xlane.f32.xlu0 %v5275_v8  ;;  %v5231_v10 = vpop.f32.mrf.mxu0 }
0x2633   :  { %v5263_v0 = vadd.f32 %v5255_v22, %v10002_v12  ;;  %v5254_v49 = vmul.f32 0.35355338, %v5231_v10  ;;  %v5272_v32 = vsel %vm343_vm0, %v5260_v54, -inf }
0x2634   :  { %5273 = vmax.xlane.f32.xlu1 %v5272_v32  ;;  %v7429_v7 = vpop.f32.mrf.mxu0 }
0x2635   :  { %v5262_v24 = vadd.f32 %v5254_v49, %v10003_v30  ;;  %v5257_v1 = vmul.f32 0.35355338, %v7429_v7  ;;  %v5281_v28 = vsel %vm343_vm0, %v5263_v0, -inf  ;;  %v5108_v7 = vmul.f32 %v9603_v36, %v8051_v63 }
0x2636   :  { %5282 = vmax.xlane.f32.xlu0 %v5281_v28  ;;  %v5241_v44 = vpop.f32.mrf.mxu0  ;;  %v5107_v63 = vmul.f32 %v9621_v14, %v8061_v4 }
0x2637   :  { %v5265_v55 = vadd.f32 %v5257_v1, %v10004_v61  ;;  %v5278_v31 = vsel %vm343_vm0, %v5262_v24, -inf  ;;  %v5256_v17 = vmul.f32 0.35355338, %v5241_v44 }
0x2638   :  { %5279 = vmax.xlane.f32.xlu1 %v5278_v31 }
0x2639   :  { %v5287_v46 = vsel %vm343_vm0, %v5265_v55, -inf  ;;  %v9696_v50 = vadd.f32 %v5256_v17, %v10005_v21 }
0x263a   :  { %5288 = vmax.xlane.f32.xlu0 %v5287_v46 }
0x263b   :  { %v5284_v26 = vsel %vm343_vm0, %v9696_v50, -inf }
0x2649   :  { %5376 = vrot.lane.b32.xlu1 %v5114_v37, %s7831_s20 }
0x264d   :  { %5372 = vrot.lane.b32.xlu1 %v5112_v47, %s7831_s20 }
0x2650   :  { %5374 = vrot.lane.b32.xlu0 %v5113_v40, %s7831_s20 }
0x2654   :  { %5368 = vrot.lane.b32.xlu0 %v5110_v43, %s7831_s20 }
0x2671   :  { %5285 = vmax.xlane.f32.xlu1 %v5284_v26 }
0x2682   :  { %5370 = vrot.lane.b32.xlu1 %v5111_v48, %s7831_s20 }
0x2686   :  { %5366 = vrot.lane.b32.xlu1 %v5109_v23, %s7831_s20 }
0x26b7   :  { %v5271_v60 = vpop.xlane.xlu0 %5270 }
0x26b8   :  { %v5291_v16 = vsub.f32 %v5259_v6, %v5271_v60  ;;  %v67_v60 = vld [vmem:[%s9891_s1 + $0x1b8] sm:$0xff] }
0x26b9   :  { %v5268_v58 = vpop.xlane.xlu1 %5267 }
0x26ba   :  { %v5300_v13 = vmul.f32 1.442695, %v5291_v16  ;;  %v5290_v19 = vsub.f32 %v5258_v9, %v5268_v58 }
0x26bb   :  { %v5277_v2 = vpop.xlane.xlu0 %5276 }
0x26bc   :  { %7744 = vpow2.f32 %v5300_v13  ;;  %v5298_v41 = vmul.f32 1.442695, %v5290_v19  ;;  %v5293_v42 = vsub.f32 %v5261_v11, %v5277_v2  ;;  %v66_v19 = vld [vmem:[%s9891_s1 + $0x1b0] sm:$0xff] }
0x26bd   :  { %v5274_v39 = vpop.xlane.xlu1 %5273 }
0x26be   :  { %7746 = vpow2.f32 %v5298_v41  ;;  %v5304_v20 = vmul.f32 1.442695, %v5293_v42  ;;  %v5292_v27 = vsub.f32 %v5260_v54, %v5274_v39  ;;  %v65_v41 = vld [vmem:[%s9891_s1 + $0x1a8] sm:$0xff] }
0x26bf   :  { %v5283_v5 = vpop.xlane.xlu0 %5282 }
0x26c0   :  { %7748 = vpow2.f32 %v5304_v20  ;;  %v5302_v33 = vmul.f32 1.442695, %v5292_v27  ;;  %v5295_v29 = vsub.f32 %v5263_v0, %v5283_v5  ;;  %v64_v27 = vld [vmem:[%s9891_s1 + $0x1a0] sm:$0xff] }
0x26c1   :  { %v5280_v59 = vpop.xlane.xlu1 %5279 }
0x26c2   :  { %7750 = vpow2.f32 %v5302_v33  ;;  %v5308_v53 = vmul.f32 1.442695, %v5295_v29  ;;  %v5294_v3 = vsub.f32 %v5262_v24, %v5280_v59 }
0x26c3   :  { %v5289_v6 = vpop.xlane.xlu0 %5288 }
0x26c4   :  { %7752 = vpow2.f32 %v5308_v53  ;;  %v5306_v62 = vmul.f32 1.442695, %v5294_v3  ;;  %v5297_v35 = vsub.f32 %v5265_v55, %v5289_v6 }
0x26c5   :  { %v5377_v9 = vpop.permute.xlu1 %5376 }
0x26c6   :  { %7754 = vpow2.f32 %v5306_v62  ;;  %v5312_v25 = vmul.f32 1.442695, %v5297_v35  ;;  %7430 = vmatprep.subr.mxu1 %v5377_v9 }
0x26c7   :  { %7431 = vmatpush3.msra.mxu1 %v5377_v9  ;;  %v5375_v56 = vpop.permute.xlu0 %5374 }
0x26c8   :  { %7756 = vpow2.f32 %v5312_v25  ;;  %7432 = vmatprep.subr.mxu1 %v5375_v56 }
0x26c9   :  { %v9706_v57 = vpop.eup %7744  ;;  %v5373_v34 = vpop.permute.xlu1 %5372  ;;  %7433 = vmatpush3.msra.mxu1 %v5375_v56 }
0x26ca   :  { %7434 = vmatprep.subr.mxu1 %v5373_v34  ;;  %v5317_v11 = vsel %vm343_vm0, %v9706_v57, 0.0 }
0x26cb   :  { %v7747_v51 = vpop.eup %7746  ;;  %5318 = vadd.xlane.f32.xlu0 %v5317_v11  ;;  %7435 = vmatpush3.msra.mxu1 %v5373_v34  ;;  %v5369_v61 = vpop.permute.xlu0 %5368 }
0x26cc   :  { %v5314_v38 = vsel %vm343_vm0, %v7747_v51, 0.0 }
0x26cd   :  { %v9711_v15 = vpop.eup %7748  ;;  %5315 = vadd.xlane.f32.xlu1 %v5314_v38 }
0x26ce   :  { %v5323_v18 = vsel %vm343_vm0, %v9711_v15, 0.0 }
0x26cf   :  { %v9715_v54 = vpop.eup %7750  ;;  %5324 = vadd.xlane.f32.xlu0 %v5323_v18 }
0x26d0   :  { %v5320_v22 = vsel %vm343_vm0, %v9715_v54, 0.0 }
0x26d1   :  { %v9719_v8 = vpop.eup %7752  ;;  %5321 = vadd.xlane.f32.xlu1 %v5320_v22 }
0x26d2   :  { %v5329_v10 = vsel %vm343_vm0, %v9719_v8, 0.0 }
0x26d3   :  { %v9723_v12 = vpop.eup %7754  ;;  %5330 = vadd.xlane.f32.xlu0 %v5329_v10  ;;  %v6388_v10 = vld [vmem:[%s9891_s1 + $0x170] ss:$0 sm:$0xff] }
0x26d4   :  { %v5326_v0 = vsel %vm343_vm0, %v9723_v12, 0.0 }
0x26d5   :  { %v9727_v49 = vpop.eup %7756  ;;  %5327 = vadd.xlane.f32.xlu1 %v5326_v0 }
0x26d6   :  { %v5335_v32 = vsel %vm343_vm0, %v9727_v49, 0.0 }
0x26d7   :  { %5336 = vadd.xlane.f32.xlu0 %v5335_v32 }
0x26ed   :  { %5364 = vrot.lane.b32.xlu0 %v5108_v7, %s7831_s20 }
0x26fa   :  { %v5286_v30 = vpop.xlane.xlu1 %5285 }
0x26fb   :  { %v5296_v24 = vsub.f32 %v9696_v50, %v5286_v30 }
0x26fd   :  { %v5310_v1 = vmul.f32 1.442695, %v5296_v24 }
0x26fe   :  { %v5371_v28 = vpop.permute.xlu1 %5370 }
0x26ff   :  { %7758 = vpow2.f32 %v5310_v1  ;;  %7436 = vmatprep.subr.mxu1 %v5371_v28 }
0x2700   :  { %7437 = vmatpush3.msra.mxu1 %v5371_v28 }
0x2701   :  { %7438 = vmatprep.subr.mxu1 %v5369_v61 }
0x2702   :  { %7439 = vmatpush3.msra.mxu1 %v5369_v61  ;;  %v5367_v55 = vpop.permute.xlu1 %5366 }
0x2703   :  { %7440 = vmatprep.subr.mxu1 %v5367_v55 }
0x2704   :  { %7441 = vmatpush3.msra.mxu1 %v5367_v55 }
0x270c   :  { %v7759_v31 = vpop.eup %7758 }
0x270d   :  { %v5332_v46 = vsel %vm343_vm0, %v7759_v31, 0.0 }
0x270e   :  { %5333 = vadd.xlane.f32.xlu1 %v5332_v46 }
0x271f   :  { %5362 = vrot.lane.b32.xlu1 %v5107_v63, %s7831_s20 }
0x2754   :  { %v5319_v36 = vpop.xlane.xlu0 %5318 }
0x2756   :  { %v5316_v37 = vpop.xlane.xlu1 %5315 }
0x2757   :  { %7760 = vrcp.f32 %v5316_v37  ;;  %v75_v37 = vld [vmem:[%s9891_s1 + $0x1f8] sm:$0xff] }
0x2758   :  { %v5325_v47 = vpop.xlane.xlu0 %5324  ;;  %7762 = vrcp.f32 %v5319_v36 }
0x275a   :  { %v5322_v50 = vpop.xlane.xlu1 %5321 }
0x275b   :  { %7764 = vrcp.f32 %v5322_v50 }
0x275c   :  { %v5331_v40 = vpop.xlane.xlu0 %5330  ;;  %7766 = vrcp.f32 %v5325_v47  ;;  %v74_v47 = vld [vmem:[%s9891_s1 + $0x1f0] sm:$0xff] }
0x275e   :  { %v5328_v26 = vpop.xlane.xlu1 %5327 }
0x275f   :  { %7768 = vrcp.f32 %v5328_v26 }
0x2760   :  { %v5337_v43 = vpop.xlane.xlu0 %5336  ;;  %7770 = vrcp.f32 %v5331_v40 }
0x2761   :  { %7772 = vrcp.f32 %v5337_v43 }
0x2764   :  { %v7761_v44 = vpop.eup %7760  ;;  %v5365_v17 = vpop.permute.xlu0 %5364 }
0x2765   :  { %7442 = vmatprep.subr.mxu1 %v5365_v17  ;;  %v5346_v21 = vmul.f32 %v7761_v44, %v7747_v51  ;;  %v7763_v14 = vpop.eup %7762 }
0x2766   :  { %7443 = vmatpush3.msra.mxu1 %v5365_v17  ;;  %v5347_v16 = vmul.f32 %v7763_v14, %v9706_v57 }
0x2767   :  { %7446 = vmatprep.mubr.msk.f32.mxu1 %vm343_vm0, %v5346_v21 }
0x2768   :  { %v7765_v48 = vpop.eup %7764 }
0x2769   :  { %v7767_v58 = vpop.eup %7766  ;;  %v5348_v13 = vmul.f32 %v7765_v48, %v9715_v54 }
0x276a   :  { %v5349_v42 = vmul.f32 %v7767_v58, %v9711_v15 }
0x276c   :  { %v7769_v2 = vpop.eup %7768 }
0x276d   :  { %v7771_v39 = vpop.eup %7770  ;;  %v5350_v20 = vmul.f32 %v7769_v2, %v9723_v12  ;;  %v6389_v2 = vld [vmem:[%s9891_s1 + $0x268] ss:$0 sm:$0xff] }
0x276e   :  { %v7773_v5 = vpop.eup %7772  ;;  %v5351_v33 = vmul.f32 %v7771_v39, %v9719_v8 }
0x276f   :  { %v5353_v53 = vmul.f32 %v7773_v5, %v9727_v49 }
0x2797   :  { %v5334_v4 = vpop.xlane.xlu1 %5333 }
0x2798   :  { %7774 = vrcp.f32 %v5334_v4 }
0x279b   :  { %v5363_v23 = vpop.permute.xlu1 %5362 }
0x279c   :  { %7444 = vmatprep.subr.mxu1 %v5363_v23 }
0x279d   :  { %7445 = vmatpush3.msra.mxu1 %v5363_v23 }
0x279e   :  { %7447 = vmatmul.mubr.msk.f32.vlgmr.msra.gmra.mxu1 %vm343_vm0, %v5347_v16  ;;  %7458 = vmatprep.subr.mxu1 %v67_v60 }
0x279f   :  { %7449 = vmatprep.mubr.msk.f32.mxu1 %vm343_vm0, %v5348_v13  ;;  %7459 = vmatpush3.msra.mxu1 %v67_v60 }
0x27a0   :  { %7460 = vmatprep.subr.mxu1 %v66_v19 }
0x27a1   :  { %7461 = vmatpush3.msra.mxu1 %v66_v19 }
0x27a2   :  { %7450 = vmatmul.mubr.msk.f32.gmra.mxu1 %vm343_vm0, %v5349_v42  ;;  %7462 = vmatprep.subr.mxu1 %v65_v41  ;;  %v6390_v42 = vld [vmem:[%s9891_s1 + $0x260] ss:$0 sm:$0xff] }
0x27a3   :  { %7452 = vmatprep.mubr.msk.f32.mxu1 %vm343_vm0, %v5350_v20  ;;  %7463 = vmatpush3.msra.mxu1 %v65_v41 }
0x27a4   :  { %7464 = vmatprep.subr.mxu1 %v64_v27 }
0x27a5   :  { %v7775_v29 = vpop.eup %7774  ;;  %7465 = vmatpush3.msra.mxu1 %v64_v27 }
0x27a6   :  { %7453 = vmatmul.mubr.msk.f32.gmra.mxu1 %vm343_vm0, %v5351_v33  ;;  %v5352_v59 = vmul.f32 %v7775_v29, %v7759_v31 }
0x27a8   :  { %7455 = vmatprep.mubr.msk.f32.mxu1 %vm343_vm0, %v5352_v59 }
0x27aa   :  { %7456 = vmatmul.mubr.msk.f32.gmra.mxu1 %vm343_vm0, %v5353_v53  ;;  %v85_v53 = vld [vmem:[%s9891_s1 + $0x248] sm:$0xff] }
0x27ab   :  { %7489 = vmatprep.subr.mxu1 %v85_v53 }
0x285e   :  { %v7448_v3 = vpop.f32.mrf.mxu1 }
0x2860   :  { %v5476_v6 = vpop.f32.mrf.mxu1 }
0x2861   :  { %7466 = vmatprep.mubr.msk.f32.mxu1 %vm425_vm3, %v5476_v6  ;;  %v83_v6 = vld [vmem:[%s9891_s1 + $0x238] sm:$0xff] }
0x2862   :  { %v7451_v62 = vpop.f32.mrf.mxu1  ;;  %7467 = vmatmul.mubr.msk.f32.vlgmr.msra.gmra.mxu1 %vm425_vm3, %v7448_v3  ;;  %v84_v3 = vld [vmem:[%s9891_s1 + $0x240] sm:$0xff] }
0x2863   :  { %7490 = vmatpush3.msra.mxu1 %v85_v53 }
0x2864   :  { %v5486_v35 = vpop.f32.mrf.mxu1  ;;  %7491 = vmatprep.subr.mxu1 %v84_v3 }
0x2865   :  { %7469 = vmatprep.mubr.msk.f32.mxu1 %vm425_vm3, %v5486_v35  ;;  %7492 = vmatpush3.msra.mxu1 %v84_v3  ;;  %v81_v35 = vld [vmem:[%s9891_s1 + $0x228] sm:$0xff]  ;;  %v6397_v3 = vld [vmem:[%s9891_s1 + $0x278] ss:$0 sm:$0xff] }
0x2866   :  { %v7454_v9 = vpop.f32.mrf.mxu1  ;;  %7470 = vmatmul.mubr.msk.f32.gmra.mxu1 %vm425_vm3, %v7451_v62  ;;  %7493 = vmatprep.subr.mxu1 %v83_v6  ;;  %v82_v62 = vld [vmem:[%s9891_s1 + $0x230] sm:$0xff] }
0x2867   :  { %7494 = vmatpush3.msra.mxu1 %v83_v6 }
0x2868   :  { %v5496_v25 = vpop.f32.mrf.mxu1  ;;  %7495 = vmatprep.subr.mxu1 %v82_v62 }
0x2869   :  { %7472 = vmatprep.mubr.msk.f32.mxu1 %vm425_vm3, %v5496_v25  ;;  %7496 = vmatpush3.msra.mxu1 %v82_v62  ;;  %v79_v25 = vld [vmem:[%s9891_s1 + $0x218] sm:$0xff] }
0x286a   :  { %v7457_v56 = vpop.f32.mrf.mxu1  ;;  %7473 = vmatmul.mubr.msk.f32.gmra.mxu1 %vm425_vm3, %v7454_v9  ;;  %v80_v9 = vld [vmem:[%s9891_s1 + $0x220] sm:$0xff]  ;;  %7497 = vmatprep.subr.mxu1 %v81_v35 }
0x286b   :  { %7498 = vmatpush3.msra.mxu1 %v81_v35 }
0x286c   :  { %v5506_v57 = vpop.f32.mrf.mxu1  ;;  %7499 = vmatprep.subr.mxu1 %v80_v9 }
0x286d   :  { %7475 = vmatprep.mubr.msk.f32.mxu1 %vm425_vm3, %v5506_v57  ;;  %7500 = vmatpush3.msra.mxu1 %v80_v9  ;;  %v6391_v57 = vld [vmem:[%s9891_s1 + $0x1e0] ss:$0 sm:$0xff] }
0x286e   :  { %7476 = vmatmul.mubr.msk.f32.gmra.mxu1 %vm425_vm3, %v7457_v56  ;;  %v78_v56 = vld [vmem:[%s9891_s1 + $0x210] sm:$0xff]  ;;  %7501 = vmatprep.subr.mxu1 %v79_v25 }
0x286f   :  { %7502 = vmatpush3.msra.mxu1 %v79_v25  ;;  %v6398_v25 = vld [vmem:[%s9891_s1 + $0x270] ss:$0 sm:$0xff] }
0x2870   :  { %7503 = vmatprep.subr.mxu1 %v78_v56 }
0x2871   :  { %7504 = vmatpush3.msra.mxu1 %v78_v56 }
0x2922   :  { %v7468_v34 = vpop.f32.mrf.mxu1 }
0x2924   :  { %v5605_v11 = vpop.f32.mrf.mxu1 }
0x2926   :  { %v7471_v51 = vpop.f32.mrf.mxu1 }
0x2927   :  { %v5645_v18 = vadd.f32 %v7471_v51, %v7468_v34 }
0x2928   :  { %v5615_v38 = vpop.f32.mrf.mxu1 }
0x2929   :  { %v5644_v22 = vadd.f32 %v5615_v38, %v5605_v11 }
0x292a   :  { %v7474_v15 = vpop.f32.mrf.mxu1 }
0x292b   :  { %v5647_v8 = vadd.f32 %v7474_v15, %v5645_v18 }
0x292c   :  { %v5625_v54 = vpop.f32.mrf.mxu1 }
0x292d   :  { %v5646_v0 = vadd.f32 %v5644_v22, %v5625_v54 }
0x292e   :  { %v7477_v12 = vpop.f32.mrf.mxu1 }
0x292f   :  { %v5649_v49 = vadd.f32 %v7477_v12, %v5647_v8 }
0x2930   :  { %v5635_v32 = vpop.f32.mrf.mxu1 }
0x2931   :  { %v5655_v7 = vadd.f32 %v6388_v10, %v5649_v49  ;;  %v5648_v30 = vadd.f32 %v5646_v0, %v5635_v32 }
0x2933   :  { %v5657_v24 = vadd.f32 %v5655_v7, %v9625_v45  ;;  %v5654_v1 = vadd.f32 %v6388_v10, %v5648_v30  ;;  %v77_v45 = vld [vmem:[%s9891_s1 + $0x208] sm:$0xff] }
0x2934   :  { %7478 = vmatprep.subr.mxu0 %v77_v45 }
0x2935   :  { %v5656_v28 = vadd.f32 %v5654_v1, %v9619_v52  ;;  %v5661_v61 = vsel %vm425_vm3, %v5657_v24, 0.0  ;;  %v5667_v63 = vmul.f32 %v5657_v24, %v5657_v24  ;;  %v76_v52 = vld [vmem:[%s9891_s1 + $0x200] sm:$0xff]  ;;  %7479 = vmatpush3.msra.mxu0 %v77_v45 }
0x2936   :  { %5662 = vadd.xlane.f32.xlu1 %v5661_v61  ;;  %7480 = vmatprep.subr.mxu0 %v76_v52 }
0x2937   :  { %v5658_v55 = vsel %vm425_vm3, %v5656_v28, 0.0  ;;  %v5666_v31 = vmul.f32 %v5656_v28, %v5656_v28  ;;  %v5671_v36 = vsel %vm425_vm3, %v5667_v63, 0.0  ;;  %7481 = vmatpush3.msra.mxu0 %v76_v52 }
0x2938   :  { %5659 = vadd.xlane.f32.xlu0 %v5658_v55  ;;  %7482 = vmatprep.subr.mxu0 %v75_v37 }
0x2939   :  { %v5668_v46 = vsel %vm425_vm3, %v5666_v31, 0.0  ;;  %7483 = vmatpush3.msra.mxu0 %v75_v37 }
0x293a   :  { %7484 = vmatprep.subr.mxu0 %v74_v47 }
0x293b   :  { %7485 = vmatpush3.msra.mxu0 %v74_v47 }
0x293c   :  { %5669 = vadd.xlane.f32.xlu0 %v5668_v46  ;;  %v6394_v46 = vld [vmem:[%s9891_s1 + $0x1e8] ss:$0 sm:$0xff] }
0x2940   :  { %5672 = vadd.xlane.f32.xlu0 %v5671_v36 }
0x29bf   :  { %v5663_v44 = vpop.xlane.xlu1 %5662 }
0x29c0   :  { %v5665_v21 = vmul.f32 0.03125, %v5663_v44 }
0x29c1   :  { %v5660_v40 = vpop.xlane.xlu0 %5659 }
0x29c2   :  { %v5664_v43 = vmul.f32 0.03125, %v5660_v40  ;;  %v5677_v48 = vmul.f32 %v5665_v21, %v5665_v21  ;;  %v5685_v39 = vsub.f32 %v5657_v24, %v5665_v21 }
0x29c4   :  { %v5676_v50 = vmul.f32 %v5664_v43, %v5664_v43  ;;  %v5684_v13 = vsub.f32 %v5656_v28, %v5664_v43 }
0x29c5   :  { %v5670_v17 = vpop.xlane.xlu0 %5669 }
0x29c6   :  { %v5674_v26 = vmul.f32 0.03125, %v5670_v17 }
0x29c8   :  { %v5678_v4 = vsub.f32 %v5674_v26, %v5676_v50  ;;  %v178_v26 = vld [vmem:[%s9891_s1 + $0x530] sm:$0xff] }
0x29c9   :  { %v5673_v14 = vpop.xlane.xlu0 %5672  ;;  %7508 = vmatprep.subr.mxu0 %v178_v26 }
0x29ca   :  { %v5680_v23 = vadd.f32 1e-06, %v5678_v4  ;;  %v5675_v60 = vmul.f32 0.03125, %v5673_v14  ;;  %v177_v4 = vld [vmem:[%s9891_s1 + $0x528] sm:$0xff]  ;;  %v176_v14 = vld [vmem:[%s9891_s1 + $0x520] sm:$0xff] }
0x29cc   :  { %7776 = vrsqrt.f32 %v5680_v23  ;;  %v5679_v16 = vsub.f32 %v5675_v60, %v5677_v48  ;;  %v175_v48 = vld [vmem:[%s9891_s1 + $0x518] sm:$0xff] }
0x29ce   :  { %v5681_v58 = vadd.f32 1e-06, %v5679_v16 }
0x29d0   :  { %7778 = vrsqrt.f32 %v5681_v58 }
0x29d9   :  { %v7777_v19 = vpop.eup %7776 }
0x29da   :  { %v5686_v41 = vmul.f32 %v7777_v19, %v5684_v13 }
0x29dc   :  { %v5692_v20 = vmul.f32 %v6389_v2, %v5686_v41 }
0x29dd   :  { %v7779_v27 = vpop.eup %7778 }
0x29de   :  { %v5687_v5 = vmul.f32 %v7779_v27, %v5685_v39  ;;  %v5698_v33 = vadd.f32 %v6390_v42, %v5692_v20 }
0x29e0   :  { %v5693_v29 = vmul.f32 %v6389_v2, %v5687_v5  ;;  %7486 = vmatprep.mubr.msk.f32.mxu0 %vm425_vm3, %v5698_v33 }
0x29e2   :  { %v5699_v59 = vadd.f32 %v6390_v42, %v5693_v29 }
0x29e4   :  { %7487 = vmatmul.mubr.msk.f32.vlgmr.msra.gmra.mxu0 %vm425_vm3, %v5699_v59 }
0x29e5   :  { %7509 = vmatpush3.msra.mxu0 %v178_v26 }
0x29e6   :  { %7510 = vmatprep.subr.mxu0 %v177_v4 }
0x29e7   :  { %7511 = vmatpush3.msra.mxu0 %v177_v4 }
0x29e8   :  { %7512 = vmatprep.subr.mxu0 %v176_v14 }
0x29e9   :  { %7513 = vmatpush3.msra.mxu0 %v176_v14 }
0x29ea   :  { %7514 = vmatprep.subr.mxu0 %v175_v48 }
0x29eb   :  { %7515 = vmatpush3.msra.mxu0 %v175_v48 }
0x2aa4   :  { %v7488_v34 = vpop.f32.mrf.mxu0 }
0x2aa5   :  { %v5782_v11 = vadd.f32 %v7488_v34, %v6391_v57 }
0x2aa6   :  { %v5776_v51 = vpop.f32.mrf.mxu0 }
0x2aa7   :  { %v5786_v38 = vmul.f32 %v5782_v11, %v5782_v11  ;;  %v5777_v15 = vadd.f32 %v6391_v57, %v5776_v51 }
0x2aa9   :  { %v5788_v18 = vmul.f32 %v5786_v38, %v5782_v11  ;;  %v5785_v54 = vmul.f32 %v5777_v15, %v5777_v15 }
0x2aab   :  { %v5790_v22 = vmul.f32 0.044715, %v5788_v18  ;;  %v5787_v8 = vmul.f32 %v5785_v54, %v5777_v15 }
0x2aad   :  { %v5792_v10 = vadd.f32 %v5790_v22, %v5782_v11  ;;  %v5789_v12 = vmul.f32 0.044715, %v5787_v8  ;;  %v183_v8 = vld [vmem:[%s9890_s0 + $0x20] sm:$0xff] }
0x2aaf   :  { %v5794_v0 = vmul.f32 0.7978846, %v5792_v10  ;;  %v5791_v49 = vadd.f32 %v5789_v12, %v5777_v15  ;;  %v184_v10 = vld [vmem:[%s9890_s0 + $0x28] sm:$0xff] }
0x2ab1   :  { %7780 = vtanh.f32 %v5794_v0  ;;  %v5793_v32 = vmul.f32 0.7978846, %v5791_v49 }
0x2ab3   :  { %7782 = vtanh.f32 %v5793_v32 }
0x2abe   :  { %v7781_v7 = vpop.eup %7780 }
0x2abf   :  { %v5798_v30 = vadd.f32 1.0, %v7781_v7 }
0x2ac0   :  { %v7783_v24 = vpop.eup %7782 }
0x2ac1   :  { %v5797_v1 = vadd.f32 1.0, %v7783_v24  ;;  %v5800_v28 = vmul.f32 0.5, %v5798_v30 }
0x2ac3   :  { %v5799_v61 = vmul.f32 0.5, %v5797_v1  ;;  %v5802_v31 = vmul.f32 %v5800_v28, %v5782_v11  ;;  %v6399_v11 = vld [vmem:[%s9891_s1 + $0x4a0] ss:$0 sm:$0xff]  ;;  %v10006_v28 = vld [vmem:[#allocation5_spill] sm:$0xff] }
0x2ac5   :  { %v5801_v55 = vmul.f32 %v5799_v61, %v5777_v15 }
0x2ac7   :  { %7505 = vmatprep.mubr.msk.f32.mxu1 %vm343_vm0, %v5801_v55 }
0x2ac8   :  { %7506 = vmatmul.mubr.msk.f32.vlgmr.msra.gmra.mxu1 %vm343_vm0, %v5802_v31 }
0x2b88   :  { %v7507_v63 = vpop.f32.mrf.mxu1 }
0x2b89   :  { %v5885_v36 = vadd.f32 %v7507_v63, %v6394_v46 }
0x2b8a   :  { %v5879_v45 = vpop.f32.mrf.mxu1 }
0x2b8b   :  { %v5889_v52 = vadd.f32 %v5885_v36, %v5699_v59  ;;  %v5880_v37 = vadd.f32 %v6394_v46, %v5879_v45 }
0x2b8d   :  { %v5888_v47 = vadd.f32 %v5880_v37, %v5698_v33  ;;  %v5893_v40 = vsel %vm425_vm3, %v5889_v52, 0.0  ;;  %v5899_v43 = vmul.f32 %v5889_v52, %v5889_v52  ;;  %v186_v37 = vld [vmem:[%s9890_s0 + $0x38] sm:$0xff] }
0x2b8e   :  { %5894 = vadd.xlane.f32.xlu0 %v5893_v40  ;;  %vm6058_vm14 = vcmp.gt.s32.totalorder %v186_v37, 0 }
0x2b8f   :  { %v5890_v44 = vsel %vm425_vm3, %v5888_v47, 0.0  ;;  %v5898_v17 = vmul.f32 %v5888_v47, %v5888_v47  ;;  %v5903_v21 = vsel %vm425_vm3, %v5899_v43, 0.0  ;;  %v185_v43 = vld [vmem:[%s9890_s0 + $0x30] sm:$0xff] }
0x2b90   :  { %5891 = vadd.xlane.f32.xlu1 %v5890_v44  ;;  %vm6057_vm4 = vcmp.gt.s32.totalorder %v185_v43, 0 }
0x2b91   :  { %v5900_v50 = vsel %vm425_vm3, %v5898_v17, 0.0 }
0x2b92   :  { %5904 = vadd.xlane.f32.xlu0 %v5903_v21 }
0x2b94   :  { %5901 = vadd.xlane.f32.xlu1 %v5900_v50 }
0x2c17   :  { %v5895_v23 = vpop.xlane.xlu0 %5894 }
0x2c18   :  { %v5897_v60 = vmul.f32 0.03125, %v5895_v23 }
0x2c19   :  { %v5892_v16 = vpop.xlane.xlu1 %5891 }
0x2c1a   :  { %v5896_v58 = vmul.f32 0.03125, %v5892_v16  ;;  %v5909_v19 = vmul.f32 %v5897_v60, %v5897_v60  ;;  %v5917_v29 = vsub.f32 %v5889_v52, %v5897_v60 }
0x2c1b   :  { %v5905_v13 = vpop.xlane.xlu0 %5904 }
0x2c1c   :  { %v5907_v2 = vmul.f32 0.03125, %v5905_v13  ;;  %v5908_v42 = vmul.f32 %v5896_v58, %v5896_v58  ;;  %v5916_v53 = vsub.f32 %v5888_v47, %v5896_v58  ;;  %v10007_v47 = vmov 0.0  }
0x2c1d   :  { %v5902_v41 = vpop.xlane.xlu1 %5901  ;;  %v6403_v40 = vsel %vm6058_vm14, 1.0, %v10007_v47  ;;  %v6402_v17 = vsel %vm6057_vm4, 1.0, %v10007_v47 }
0x2c1e   :  { %v5911_v39 = vsub.f32 %v5907_v2, %v5909_v19  ;;  %v5906_v20 = vmul.f32 0.03125, %v5902_v41  ;;  %v6082_v44 = vsel %vm6067_vm2, %v6403_v40, 0.0  ;;  %v6081_v21 = vsel %vm6067_vm2, %v6402_v17, 0.0 }
0x2c1f   :  { %v6083_v50 = vadd.f32 %v6082_v44, %v6081_v21 }
0x2c20   :  { %v5913_v27 = vadd.f32 1e-06, %v5911_v39  ;;  %v5910_v5 = vsub.f32 %v5906_v20, %v5908_v42 }
0x2c22   :  { %7784 = vrsqrt.f32 %v5913_v27  ;;  %v5912_v33 = vadd.f32 1e-06, %v5910_v5 }
0x2c24   :  { %7786 = vrsqrt.f32 %v5912_v33 }
0x2c2f   :  { %v7785_v59 = vpop.eup %7784 }
0x2c30   :  { %v5919_v6 = vmul.f32 %v7785_v59, %v5917_v29 }
0x2c31   :  { %v7787_v62 = vpop.eup %7786 }
0x2c32   :  { %v5918_v35 = vmul.f32 %v7787_v62, %v5916_v53  ;;  %v5925_v9 = vmul.f32 %v6397_v3, %v5919_v6 }
0x2c34   :  { %v5924_v56 = vmul.f32 %v6397_v3, %v5918_v35  ;;  %v5931_v34 = vadd.f32 %v6398_v25, %v5925_v9 }
0x2c36   :  { %v5930_v57 = vadd.f32 %v6398_v25, %v5924_v56 }
0x2c38   :  { %7516 = vmatprep.mubr.msk.f32.mxu0 %vm425_vm3, %v5930_v57 }
0x2c39   :  { %7517 = vmatmul.mubr.msk.f32.vlgmr.msra.gmra.mxu0 %vm425_vm3, %v5931_v34 }
0x2cf9   :  { %v7518_v51 = vpop.f32.mrf.mxu0 }
0x2cfa   :  { %v6014_v38 = vadd.f32 %v7518_v51, %v6399_v11 }
0x2cfb   :  { %v6008_v15 = vpop.f32.mrf.mxu0 }
0x2cfc   :  { %v6009_v18 = vadd.f32 %v6399_v11, %v6008_v15  ;;  %v6020_v54 = vsel %vm343_vm0, %v6014_v38, -inf }
0x2cfd   :  { %6021 = vmax.xlane.f32.xlu0 %v6020_v54 }
0x2cfe   :  { %v6017_v22 = vsel %vm343_vm0, %v6009_v18, -inf }
0x2cff   :  { %6018 = vmax.xlane.f32.xlu1 %v6017_v22 }
0x2d10   :  { %6042 = vperm.xlu1 %7531, %v183_v8  }
0x2d13   :  { %6045 = vperm.xlu0 %7530, %v184_v10  }
0x2d86   :  { %v6022_v12 = vpop.xlane.xlu0 %6021 }
0x2d87   :  { %v6024_v0 = vsub.f32 %v6014_v38, %v6022_v12 }
0x2d88   :  { %v6019_v49 = vpop.xlane.xlu1 %6018 }
0x2d89   :  { %v6027_v32 = vmul.f32 1.442695, %v6024_v0  ;;  %v6023_v7 = vsub.f32 %v6009_v18, %v6019_v49 }
0x2d8b   :  { %7788 = vpow2.f32 %v6027_v32  ;;  %v6025_v30 = vmul.f32 1.442695, %v6023_v7 }
0x2d8c   :  { %v6043_v1 = vpop.permute.xlu1 %6042 }
0x2d8d   :  { %7790 = vpow2.f32 %v6025_v30  ;;  %vm6047_vm13 = vcmp.eq.s32.totalorder %v10006_v28, %v6043_v1 }
0x2d8e   :  { %v6046_v24 = vpop.permute.xlu0 %6045  ;;  %v6049_v36 = vsel %vm6047_vm13, %v6009_v18, 0.0 }
0x2d8f   :  { %vm6048_vm3 = vcmp.eq.s32.totalorder %v10006_v28, %v6046_v24  ;;  %v6051_v52 = vsel %vm343_vm0, %v6049_v36, 0.0 }
0x2d90   :  { %v6050_v46 = vsel %vm6048_vm3, %v6014_v38, 0.0 }
0x2d91   :  { %v6054_v45 = vsel %vm343_vm0, %v6050_v46, 0.0 }
0x2d98   :  { %v7789_v61 = vpop.eup %7788 }
0x2d99   :  { %v6032_v55 = vsel %vm343_vm0, %v7789_v61, 0.0 }
0x2d9a   :  { %v7791_v31 = vpop.eup %7790  ;;  %6033 = vadd.xlane.f32.xlu0 %v6032_v55 }
0x2d9b   :  { %v6029_v63 = vsel %vm343_vm0, %v7791_v31, 0.0  ;;  %vm6097_vm0 = vcmask 0  }
0x2d9c   :  { %6030 = vadd.xlane.f32.xlu1 %v6029_v63 }
0x2d9e   :  { %6055 = vadd.xlane.f32.xlu0 %v6054_v45 }
0x2da0   :  { %6052 = vadd.xlane.f32.xlu1 %v6051_v52 }
0x2da2   :  { %6084 = vadd.xlane.f32.xlu0 %v6083_v50 }
0x2e23   :  { %v6034_v26 = vpop.xlane.xlu0 %6033 }
0x2e24   :  { %7792 = vlog2.f32 %v6034_v26 }
0x2e25   :  { %v6031_v4 = vpop.xlane.xlu1 %6030 }
0x2e26   :  { %7794 = vlog2.f32 %v6031_v4 }
0x2e27   :  { %v6056_v58 = vpop.xlane.xlu0 %6055 }
0x2e29   :  { %v6053_v2 = vpop.xlane.xlu1 %6052 }
0x2e2b   :  { %v6085_v33 = vpop.xlane.xlu0 %6084 }
0x2e2c   :  { %v6086_v29 = vrot.slane %v6085_v33, 4 }
0x2e2e   :  { %v6087_v59 = vadd.f32 %v6086_v29, %v6085_v33 }
0x2e30   :  { %v6088_v53 = vrot.slane %v6087_v59, 2 }
0x2e31   :  { %v7793_v14 = vpop.eup %7792 }
0x2e32   :  { %v6038_v48 = vmul.f32 0.6931472, %v7793_v14  ;;  %v6089_v35 = vadd.f32 %v6088_v53, %v6087_v59 }
0x2e33   :  { %v7795_v23 = vpop.eup %7794 }
0x2e34   :  { %v6036_v60 = vmul.f32 0.6931472, %v7795_v23  ;;  %v6040_v16 = vadd.f32 %v6038_v48, %v6022_v12  ;;  %v6090_v56 = vrot.slane %v6089_v35, 1 }
0x2e36   :  { %v6064_v13 = vsub.f32 %v6040_v16, %v6056_v58  ;;  %v6039_v19 = vadd.f32 %v6036_v60, %v6019_v49  ;;  %v6091_v11 = vadd.f32 %v6090_v56, %v6089_v35 }
0x2e38   :  { %v6066_v41 = vmul.f32 %v6403_v40, %v6064_v13  ;;  %v6063_v42 = vsub.f32 %v6039_v19, %v6053_v2 }
0x2e3a   :  { %v6065_v39 = vmul.f32 %v6402_v17, %v6063_v42  ;;  %v6069_v20 = vsel %vm6067_vm2, %v6066_v41, 0.0 }
0x2e3c   :  { %v6068_v27 = vsel %vm6067_vm2, %v6065_v39, 0.0 }
0x2e3d   :  { %v6070_v5 = vadd.f32 %v6069_v20, %v6068_v27 }
0x2e3f   :  { %6071 = vadd.xlane.f32.xlu1 %v6070_v5 }
0x2ec8   :  { %v6072_v3 = vpop.xlane.xlu1 %6071 }
0x2ec9   :  { %v6073_v6 = vrot.slane %v6072_v3, 4 }
0x2ecb   :  { %v6074_v62 = vadd.f32 %v6073_v6, %v6072_v3 }
0x2ecd   :  { %v6075_v9 = vrot.slane %v6074_v62, 2 }
0x2ecf   :  { %v6076_v25 = vadd.f32 %v6075_v9, %v6074_v62 }
0x2ed1   :  { %v6077_v57 = vrot.slane %v6076_v25, 1 }
0x2ed3   :  { %v6078_v34 = vadd.f32 %v6077_v57, %v6076_v25 }
0x2ed5   :  { %7519 = vpush %v6078_v34 }
0x2ed6   :  { %7521 = vpush %v6091_v11 }
0x2f06   :  { %s7520_s0 = spop %7519 }
0x2f07   :  { %s7522_s4 = spop %7521  ;;  %v6080_v18 = vstv %s7520_s0 }
0x2f08   :  { %v6093_v51 = vstv %s7522_s4 }
0x2f09   :  { %v6094_v38 = vadd.f32 1e-06, %v6093_v51 }
0x2f0b   :  { %7796 = vrcp.f32 %v6094_v38 }
0x2f18   :  { %v7797_v15 = vpop.eup %7796 }
0x2f19   :  { %v6096_v54 = vmul.f32 %v7797_v15, %v6080_v18 }
0x2f1b   :  { %6098 = vst.msk [vmem:[#allocation2] sm:$0x1] %vm6097_vm0, %v6096_v54 }
0x2f1c   :  { %7817 = shalt.err (!%p7814_p4)
}
0x2f1d   :  { %6108 = dma.vmem_to_hbm [thread:$0]  %s6106_s6, 16, %s9892_s2, [#allocation3]  }
0x2f1e   :  { %7826 = dma.done.wait [#allocation3], 16  }
0x2f1f   :  { %7827 = vsyncadd [#allocation3], 4294967280 }
0x2f20   :  { %6112 = vsyncpa [#allocation3], 1 }

</bundles_post_ra>
